<compile_context>
chip_gen: v6e
topology: v6e:2x2x1
jax: 0.10.0
libtpu: 0.0.40
codegen_flags: <defaults>
</compile_context>

<pallas_src>
import functools
import math

import jax
import jax.numpy as jnp
from jax.experimental import pallas as pl
from jax.experimental.pallas import tpu as pltpu


_SQRT_HALF = 0.7071067811865476


def _erf_approx(x):
    """erf via Abramowitz & Stegun 7.1.26 (max abs err ~1.5e-7).

    Built only from exp/mul/add/div/where so it is guaranteed to lower on
    Mosaic (lax.erf itself may not have a TPU lowering rule).
    """
    p = 0.3275911
    a1, a2, a3, a4, a5 = (0.254829592, -0.284496736, 1.421413741,
                          -1.453152027, 1.061405429)
    z = jnp.abs(x)
    t = 1.0 / (1.0 + p * z)
    poly = t * (a1 + t * (a2 + t * (a3 + t * (a4 + t * a5))))
    y = 1.0 - poly * jnp.exp(-z * z)
    return jnp.where(x >= 0.0, y, -y)


def _gelu_erf(x):
    """Exact-form GELU: 0.5*x*(1+erf(x/sqrt(2))) (PyTorch nn.GELU default)."""
    return 0.5 * x * (1.0 + _erf_approx(x * _SQRT_HALF))


def _mixmlp_kernel(x_ref, w1_ref, b1_ref, dw_ref, db_ref, w2_ref, b2_ref,
                   o_ref, hpad_ref, *, H, W):
    """Fused MixMlp forward for one batch sample.

    x_ref   : (1, H, W, Cin)       input tile (NHWC)
    w1_ref  : (Cin, Chid)          fc1 weight (1x1 conv)
    b1_ref  : (1, Chid)            fc1 bias
    dw_ref  : (9, Chid)            depthwise 3x3 weights, taps flattened row-major
    db_ref  : (1, Chid)            depthwise bias
    w2_ref  : (Chid, Cout)         fc2 weight (1x1 conv)
    b2_ref  : (1, Cout)            fc2 bias
    o_ref   : (1, H, W, Cout)      output tile (NHWC)
    hpad_ref: (H+2, W+2, Chid)     VMEM scratch: zero-padded hidden activation
    """
    C_in = x_ref.shape[-1]
    C_hid = w1_ref.shape[1]
    C_out = o_ref.shape[-1]
    HW = H * W

    # --- fc1: 1x1 conv == one per-pixel matmul on the MXU ---
    x2d = x_ref[...].reshape(HW, C_in)
    h1 = jnp.dot(x2d, w1_ref[...], preferred_element_type=jnp.float32)
    h1 = h1 + b1_ref[...]                                  # (HW, Chid)

    # --- zero-pad the hidden activation into VMEM scratch (pad inside kernel) ---
    hpad_ref[...] = jnp.zeros_like(hpad_ref)
    hpad_ref[1:H + 1, 1:W + 1, :] = h1.reshape(H, W, C_hid)

    # --- 3x3 depthwise conv: 9 shifted, contiguous VPU multiply-accumulates ---
    acc = jnp.zeros((HW, C_hid), jnp.float32)
    for kh in range(3):
        for kw in range(3):
            k = kh * 3 + kw
            patch = hpad_ref[kh:kh + H, kw:kw + W, :].reshape(HW, C_hid)
            acc = acc + patch * dw_ref[k:k + 1, :]
    acc = acc + db_ref[...]

    # --- GELU (exact erf form) ---
    act = _gelu_erf(acc)

    # --- fc2: 1x1 conv == one MXU matmul ---
    out = jnp.dot(act, w2_ref[...], preferred_element_type=jnp.float32)
    out = out + b2_ref[...]

    o_ref[...] = out.reshape(1, H, W, C_out)


def mixmlp_forward(x_nchw, params):
    """MixMlp.forward.  Input/output are NCHW like the PyTorch module."""
    w1, b1, dw, db, w2, b2 = params
    N, C_in, H, W = x_nchw.shape
    C_hid = w1.shape[1]
    C_out = w2.shape[1]

    x = jnp.transpose(x_nchw, (0, 2, 3, 1))  # NCHW -> NHWC (channels on lanes)

    kern = functools.partial(_mixmlp_kernel, H=H, W=W)
    out_nhwc = pl.pallas_call(
        kern,
        out_shape=jax.ShapeDtypeStruct((N, H, W, C_out), jnp.float32),
        grid_spec=pltpu.PrefetchScalarGridSpec(
            num_scalar_prefetch=0,
            grid=(N,),
            in_specs=[
                pl.BlockSpec((1, H, W, C_in), lambda n: (n, 0, 0, 0)),
                pl.BlockSpec((C_in, C_hid), lambda n: (0, 0)),
                pl.BlockSpec((1, C_hid), lambda n: (0, 0)),
                pl.BlockSpec((9, C_hid), lambda n: (0, 0)),
                pl.BlockSpec((1, C_hid), lambda n: (0, 0)),
                pl.BlockSpec((C_hid, C_out), lambda n: (0, 0)),
                pl.BlockSpec((1, C_out), lambda n: (0, 0)),
            ],
            out_specs=pl.BlockSpec((1, H, W, C_out), lambda n: (n, 0, 0, 0)),
            scratch_shapes=[pltpu.VMEM((H + 2, W + 2, C_hid), jnp.float32)],
        ),
        compiler_params=pltpu.CompilerParams(
            dimension_semantics=("parallel",)),
    )(x, w1, b1, dw, db, w2, b2)

    return jnp.transpose(out_nhwc, (0, 3, 1, 2))  # NHWC -> NCHW


def init_mixmlp_params(key, in_features, hidden_features=None, out_features=None):
    """Matches MixMlp._init_weights for nn.Conv2d:
    weight ~ N(0, sqrt(2/fan_out)), fan_out = k*k*out_ch/groups; bias = 0."""
    out_features = out_features or in_features
    hidden_features = hidden_features or in_features
    k1, k2, k3 = jax.random.split(key, 3)
    w1 = jax.random.normal(k1, (in_features, hidden_features), jnp.float32) \
        * math.sqrt(2.0 / hidden_features)                       # fc1: 1x1 conv
    b1 = jnp.zeros((1, hidden_features), jnp.float32)
    dw = jax.random.normal(k2, (9, hidden_features), jnp.float32) \
        * math.sqrt(2.0 / 9.0)                                   # dwconv: 3x3, groups=Chid
    db = jnp.zeros((1, hidden_features), jnp.float32)
    w2 = jax.random.normal(k3, (hidden_features, out_features), jnp.float32) \
        * math.sqrt(2.0 / out_features)                          # fc2: 1x1 conv
    b2 = jnp.zeros((1, out_features), jnp.float32)
    return (w1, b1, dw, db, w2, b2)


def mixmlp_reference(x_nchw, params):
    """Pure-JAX reference (mirrors the PyTorch forward) for a numeric check."""
    w1, b1, dw, db, w2, b2 = params
    N, C_in, H, W = x_nchw.shape
    C_hid = w1.shape[1]
    C_out = w2.shape[1]
    x = jnp.transpose(x_nchw, (0, 2, 3, 1))
    h1 = (x.reshape(N * H * W, C_in) @ w1 + b1).reshape(N, H, W, C_hid)
    hp = jnp.pad(h1, ((0, 0), (1, 1), (1, 1), (0, 0)))
    acc = jnp.zeros((N, H, W, C_hid), jnp.float32)
    for kh in range(3):
        for kw in range(3):
            acc = acc + hp[:, kh:kh + H, kw:kw + W, :] * dw[kh * 3 + kw]
    acc = acc + db.reshape(1, 1, 1, C_hid)
    act = jax.nn.gelu(acc, approximate=False)        # exact erf GELU
    out = (act.reshape(N * H * W, C_hid) @ w2 + b2).reshape(N, H, W, C_out)
    return jnp.transpose(out, (0, 3, 1, 2))


if __name__ == "__main__":
    key = jax.random.PRNGKey(0)
    kx, kp = jax.random.split(key)

    N, C_in, H, W = 2, 4, 16, 16
    C_hid = 32  # hidden_features; out_features defaults to in_features

    x = jax.random.normal(kx, (N, C_in, H, W), jnp.float32)
    params = init_mixmlp_params(kp, C_in, hidden_features=C_hid)

    out = mixmlp_forward(x, params)
    out = jax.block_until_ready(out)

    assert out.shape == (N, C_in, H, W), out.shape
    assert bool(jnp.all(jnp.isfinite(out)))

    ref = mixmlp_reference(x, params)
    max_err = float(jnp.max(jnp.abs(out - ref)))
    # Generous tolerance: covers default-precision matmul differences between
    # the Pallas MXU path and the XLA reference; structural bugs give O(1) error.
    assert bool(jnp.allclose(out, ref, atol=5e-2, rtol=5e-2)), max_err

    print("KERNEL_OK")
</pallas_src>

<mosaic_0001>
module attributes {stable_mosaic.version = 11 : i64} {
  func.func @_mixmlp_kernel(%arg0: i32, %arg1: memref<1x16x16x4xf32, #tpu.memory_space<vmem>>, %arg2: memref<4x32xf32, #tpu.memory_space<vmem>>, %arg3: memref<1x32xf32, #tpu.memory_space<vmem>>, %arg4: memref<9x32xf32, #tpu.memory_space<vmem>>, %arg5: memref<1x32xf32, #tpu.memory_space<vmem>>, %arg6: memref<32x4xf32, #tpu.memory_space<vmem>>, %arg7: memref<1x4xf32, #tpu.memory_space<vmem>>, %arg8: memref<1x16x16x4xf32, #tpu.memory_space<vmem>>, %arg9: memref<18x18x32xf32, #tpu.memory_space<vmem>>) attributes {dimension_semantics = [#tpu.dimension_semantics<parallel>], iteration_bounds = array<i64: 2>, scalar_prefetch = 0 : i64, scratch_operands = 1 : i64, tpu.core_type = #tpu.core_type<tc>, window_params = [{transform_indices = @transform_0, window_bounds = array<i64: 1, 16, 16, 4>}, {pipeline_mode = #tpu.pipeline_mode<synchronous>, transform_indices = @transform_1, window_bounds = array<i64: 4, 32>}, {pipeline_mode = #tpu.pipeline_mode<synchronous>, transform_indices = @transform_2, window_bounds = array<i64: 1, 32>}, {pipeline_mode = #tpu.pipeline_mode<synchronous>, transform_indices = @transform_3, window_bounds = array<i64: 9, 32>}, {pipeline_mode = #tpu.pipeline_mode<synchronous>, transform_indices = @transform_4, window_bounds = array<i64: 1, 32>}, {pipeline_mode = #tpu.pipeline_mode<synchronous>, transform_indices = @transform_5, window_bounds = array<i64: 32, 4>}, {pipeline_mode = #tpu.pipeline_mode<synchronous>, transform_indices = @transform_6, window_bounds = array<i64: 1, 4>}, {transform_indices = @transform_7, window_bounds = array<i64: 1, 16, 16, 4>}]} {
    %c0 = arith.constant 0 : index
    %c0_0 = arith.constant 0 : index
    %c0_1 = arith.constant 0 : index
    %c0_2 = arith.constant 0 : index
    %0 = vector.load %arg1[%c0, %c0_0, %c0_1, %c0_2] : memref<1x16x16x4xf32, #tpu.memory_space<vmem>>, vector<1x16x16x4xf32>
    %1 = vector.shape_cast %0 : vector<1x16x16x4xf32> to vector<256x4xf32>
    %c0_3 = arith.constant 0 : index
    %c0_4 = arith.constant 0 : index
    %2 = vector.load %arg2[%c0_3, %c0_4] : memref<4x32xf32, #tpu.memory_space<vmem>>, vector<4x32xf32>
    %cst = arith.constant dense<0.000000e+00> : vector<256x32xf32>
    %3 = tpu.matmul %1, %2, %cst {dimension_numbers = #tpu.dot_dimension_numbers<[1], [0], [0], [1], [0, 0, 1, 1], [], []>} : vector<256x4xf32>, vector<4x32xf32>, vector<256x32xf32> -> vector<256x32xf32>
    %c0_5 = arith.constant 0 : index
    %c0_6 = arith.constant 0 : index
    %4 = vector.load %arg3[%c0_5, %c0_6] : memref<1x32xf32, #tpu.memory_space<vmem>>, vector<1x32xf32>
    %5 = vector.broadcast %4 : vector<1x32xf32> to vector<256x32xf32>
    %6 = arith.addf %3, %5 : vector<256x32xf32>
    %cst_7 = arith.constant 0.000000e+00 : f32
    %7 = vector.broadcast %cst_7 : f32 to vector<18x18x32xf32>
    %c0_8 = arith.constant 0 : index
    %c0_9 = arith.constant 0 : index
    %c0_10 = arith.constant 0 : index
    %8 = vector.load %arg9[%c0_8, %c0_9, %c0_10] : memref<18x18x32xf32, #tpu.memory_space<vmem>>, vector<18x18x32xf32>
    tpu.vector_store %arg9[%c0_8, %c0_9, %c0_10], %7 {strides = array<i32>} : memref<18x18x32xf32, #tpu.memory_space<vmem>>, vector<18x18x32xf32>,
    %9 = vector.shape_cast %6 : vector<256x32xf32> to vector<16x16x32xf32>
    %c1 = arith.constant 1 : index
    %c1_11 = arith.constant 1 : index
    %c0_12 = arith.constant 0 : index
    %10 = vector.load %arg9[%c1, %c1_11, %c0_12] : memref<18x18x32xf32, #tpu.memory_space<vmem>>, vector<16x16x32xf32>
    tpu.vector_store %arg9[%c1, %c1_11, %c0_12], %9 {strides = array<i32>} : memref<18x18x32xf32, #tpu.memory_space<vmem>>, vector<16x16x32xf32>,
    %cst_13 = arith.constant 0.000000e+00 : f32
    %11 = vector.broadcast %cst_13 : f32 to vector<256x32xf32>
    %c0_14 = arith.constant 0 : index
    %c0_15 = arith.constant 0 : index
    %c0_16 = arith.constant 0 : index
    %12 = vector.load %arg9[%c0_14, %c0_15, %c0_16] : memref<18x18x32xf32, #tpu.memory_space<vmem>>, vector<16x16x32xf32>
    %13 = vector.shape_cast %12 : vector<16x16x32xf32> to vector<256x32xf32>
    %c0_17 = arith.constant 0 : index
    %c0_18 = arith.constant 0 : index
    %14 = vector.load %arg4[%c0_17, %c0_18] : memref<9x32xf32, #tpu.memory_space<vmem>>, vector<1x32xf32>
    %15 = vector.broadcast %14 : vector<1x32xf32> to vector<256x32xf32>
    %16 = arith.mulf %13, %15 : vector<256x32xf32>
    %17 = arith.addf %11, %16 : vector<256x32xf32>
    %c0_19 = arith.constant 0 : index
    %c1_20 = arith.constant 1 : index
    %c0_21 = arith.constant 0 : index
    %18 = vector.load %arg9[%c0_19, %c1_20, %c0_21] : memref<18x18x32xf32, #tpu.memory_space<vmem>>, vector<16x16x32xf32>
    %19 = vector.shape_cast %18 : vector<16x16x32xf32> to vector<256x32xf32>
    %c1_22 = arith.constant 1 : index
    %c0_23 = arith.constant 0 : index
    %20 = vector.load %arg4[%c1_22, %c0_23] : memref<9x32xf32, #tpu.memory_space<vmem>>, vector<1x32xf32>
    %21 = vector.broadcast %20 : vector<1x32xf32> to vector<256x32xf32>
    %22 = arith.mulf %19, %21 : vector<256x32xf32>
    %23 = arith.addf %17, %22 : vector<256x32xf32>
    %c0_24 = arith.constant 0 : index
    %c2 = arith.constant 2 : index
    %c0_25 = arith.constant 0 : index
    %24 = vector.load %arg9[%c0_24, %c2, %c0_25] : memref<18x18x32xf32, #tpu.memory_space<vmem>>, vector<16x16x32xf32>
    %25 = vector.shape_cast %24 : vector<16x16x32xf32> to vector<256x32xf32>
    %c2_26 = arith.constant 2 : index
    %c0_27 = arith.constant 0 : index
    %26 = vector.load %arg4[%c2_26, %c0_27] : memref<9x32xf32, #tpu.memory_space<vmem>>, vector<1x32xf32>
    %27 = vector.broadcast %26 : vector<1x32xf32> to vector<256x32xf32>
    %28 = arith.mulf %25, %27 : vector<256x32xf32>
    %29 = arith.addf %23, %28 : vector<256x32xf32>
    %c1_28 = arith.constant 1 : index
    %c0_29 = arith.constant 0 : index
    %c0_30 = arith.constant 0 : index
    %30 = vector.load %arg9[%c1_28, %c0_29, %c0_30] : memref<18x18x32xf32, #tpu.memory_space<vmem>>, vector<16x16x32xf32>
    %31 = vector.shape_cast %30 : vector<16x16x32xf32> to vector<256x32xf32>
    %c3 = arith.constant 3 : index
    %c0_31 = arith.constant 0 : index
    %32 = vector.load %arg4[%c3, %c0_31] : memref<9x32xf32, #tpu.memory_space<vmem>>, vector<1x32xf32>
    %33 = vector.broadcast %32 : vector<1x32xf32> to vector<256x32xf32>
    %34 = arith.mulf %31, %33 : vector<256x32xf32>
    %35 = arith.addf %29, %34 : vector<256x32xf32>
    %c1_32 = arith.constant 1 : index
    %c1_33 = arith.constant 1 : index
    %c0_34 = arith.constant 0 : index
    %36 = vector.load %arg9[%c1_32, %c1_33, %c0_34] : memref<18x18x32xf32, #tpu.memory_space<vmem>>, vector<16x16x32xf32>
    %37 = vector.shape_cast %36 : vector<16x16x32xf32> to vector<256x32xf32>
    %c4 = arith.constant 4 : index
    %c0_35 = arith.constant 0 : index
    %38 = vector.load %arg4[%c4, %c0_35] : memref<9x32xf32, #tpu.memory_space<vmem>>, vector<1x32xf32>
    %39 = vector.broadcast %38 : vector<1x32xf32> to vector<256x32xf32>
    %40 = arith.mulf %37, %39 : vector<256x32xf32>
    %41 = arith.addf %35, %40 : vector<256x32xf32>
    %c1_36 = arith.constant 1 : index
    %c2_37 = arith.constant 2 : index
    %c0_38 = arith.constant 0 : index
    %42 = vector.load %arg9[%c1_36, %c2_37, %c0_38] : memref<18x18x32xf32, #tpu.memory_space<vmem>>, vector<16x16x32xf32>
    %43 = vector.shape_cast %42 : vector<16x16x32xf32> to vector<256x32xf32>
    %c5 = arith.constant 5 : index
    %c0_39 = arith.constant 0 : index
    %44 = vector.load %arg4[%c5, %c0_39] : memref<9x32xf32, #tpu.memory_space<vmem>>, vector<1x32xf32>
    %45 = vector.broadcast %44 : vector<1x32xf32> to vector<256x32xf32>
    %46 = arith.mulf %43, %45 : vector<256x32xf32>
    %47 = arith.addf %41, %46 : vector<256x32xf32>
    %c2_40 = arith.constant 2 : index
    %c0_41 = arith.constant 0 : index
    %c0_42 = arith.constant 0 : index
    %48 = vector.load %arg9[%c2_40, %c0_41, %c0_42] : memref<18x18x32xf32, #tpu.memory_space<vmem>>, vector<16x16x32xf32>
    %49 = vector.shape_cast %48 : vector<16x16x32xf32> to vector<256x32xf32>
    %c6 = arith.constant 6 : index
    %c0_43 = arith.constant 0 : index
    %50 = vector.load %arg4[%c6, %c0_43] : memref<9x32xf32, #tpu.memory_space<vmem>>, vector<1x32xf32>
    %51 = vector.broadcast %50 : vector<1x32xf32> to vector<256x32xf32>
    %52 = arith.mulf %49, %51 : vector<256x32xf32>
    %53 = arith.addf %47, %52 : vector<256x32xf32>
    %c2_44 = arith.constant 2 : index
    %c1_45 = arith.constant 1 : index
    %c0_46 = arith.constant 0 : index
    %54 = vector.load %arg9[%c2_44, %c1_45, %c0_46] : memref<18x18x32xf32, #tpu.memory_space<vmem>>, vector<16x16x32xf32>
    %55 = vector.shape_cast %54 : vector<16x16x32xf32> to vector<256x32xf32>
    %c7 = arith.constant 7 : index
    %c0_47 = arith.constant 0 : index
    %56 = vector.load %arg4[%c7, %c0_47] : memref<9x32xf32, #tpu.memory_space<vmem>>, vector<1x32xf32>
    %57 = vector.broadcast %56 : vector<1x32xf32> to vector<256x32xf32>
    %58 = arith.mulf %55, %57 : vector<256x32xf32>
    %59 = arith.addf %53, %58 : vector<256x32xf32>
    %c2_48 = arith.constant 2 : index
    %c2_49 = arith.constant 2 : index
    %c0_50 = arith.constant 0 : index
    %60 = vector.load %arg9[%c2_48, %c2_49, %c0_50] : memref<18x18x32xf32, #tpu.memory_space<vmem>>, vector<16x16x32xf32>
    %61 = vector.shape_cast %60 : vector<16x16x32xf32> to vector<256x32xf32>
    %c8 = arith.constant 8 : index
    %c0_51 = arith.constant 0 : index
    %62 = vector.load %arg4[%c8, %c0_51] : memref<9x32xf32, #tpu.memory_space<vmem>>, vector<1x32xf32>
    %63 = vector.broadcast %62 : vector<1x32xf32> to vector<256x32xf32>
    %64 = arith.mulf %61, %63 : vector<256x32xf32>
    %65 = arith.addf %59, %64 : vector<256x32xf32>
    %c0_52 = arith.constant 0 : index
    %c0_53 = arith.constant 0 : index
    %66 = vector.load %arg5[%c0_52, %c0_53] : memref<1x32xf32, #tpu.memory_space<vmem>>, vector<1x32xf32>
    %67 = vector.broadcast %66 : vector<1x32xf32> to vector<256x32xf32>
    %68 = arith.addf %65, %67 : vector<256x32xf32>
    %cst_54 = arith.constant 5.000000e-01 : f32
    %69 = vector.broadcast %cst_54 : f32 to vector<256x32xf32>
    %70 = arith.mulf %69, %68 : vector<256x32xf32>
    %cst_55 = arith.constant 0.707106769 : f32
    %71 = vector.broadcast %cst_55 : f32 to vector<256x32xf32>
    %72 = arith.mulf %68, %71 : vector<256x32xf32>
    %73 = math.absf %72 : vector<256x32xf32>
    %cst_56 = arith.constant 0.327591091 : f32
    %74 = vector.broadcast %cst_56 : f32 to vector<256x32xf32>
    %75 = arith.mulf %74, %73 : vector<256x32xf32>
    %cst_57 = arith.constant 1.000000e+00 : f32
    %76 = vector.broadcast %cst_57 : f32 to vector<256x32xf32>
    %77 = arith.addf %76, %75 : vector<256x32xf32>
    %cst_58 = arith.constant 1.000000e+00 : f32
    %78 = vector.broadcast %cst_58 : f32 to vector<256x32xf32>
    %79 = arith.divf %78, %77 : vector<256x32xf32>
    %cst_59 = arith.constant 1.06140542 : f32
    %80 = vector.broadcast %cst_59 : f32 to vector<256x32xf32>
    %81 = arith.mulf %79, %80 : vector<256x32xf32>
    %cst_60 = arith.constant -1.45315206 : f32
    %82 = vector.broadcast %cst_60 : f32 to vector<256x32xf32>
    %83 = arith.addf %82, %81 : vector<256x32xf32>
    %84 = arith.mulf %79, %83 : vector<256x32xf32>
    %cst_61 = arith.constant 1.42141378 : f32
    %85 = vector.broadcast %cst_61 : f32 to vector<256x32xf32>
    %86 = arith.addf %85, %84 : vector<256x32xf32>
    %87 = arith.mulf %79, %86 : vector<256x32xf32>
    %cst_62 = arith.constant -0.284496725 : f32
    %88 = vector.broadcast %cst_62 : f32 to vector<256x32xf32>
    %89 = arith.addf %88, %87 : vector<256x32xf32>
    %90 = arith.mulf %79, %89 : vector<256x32xf32>
    %cst_63 = arith.constant 0.254829586 : f32
    %91 = vector.broadcast %cst_63 : f32 to vector<256x32xf32>
    %92 = arith.addf %91, %90 : vector<256x32xf32>
    %93 = arith.mulf %79, %92 : vector<256x32xf32>
    %cst_64 = arith.constant 0.000000e+00 : f32
    %94 = vector.broadcast %cst_64 : f32 to vector<256x32xf32>
    %95 = arith.subf %94, %73 : vector<256x32xf32>
    %96 = arith.mulf %95, %73 : vector<256x32xf32>
    %97 = math.exp %96 : vector<256x32xf32>
    %98 = arith.mulf %93, %97 : vector<256x32xf32>
    %cst_65 = arith.constant 1.000000e+00 : f32
    %99 = vector.broadcast %cst_65 : f32 to vector<256x32xf32>
    %100 = arith.subf %99, %98 : vector<256x32xf32>
    %cst_66 = arith.constant 0.000000e+00 : f32
    %101 = vector.broadcast %cst_66 : f32 to vector<256x32xf32>
    %102 = arith.cmpf oge, %72, %101 : vector<256x32xf32>
    %cst_67 = arith.constant 0.000000e+00 : f32
    %103 = vector.broadcast %cst_67 : f32 to vector<256x32xf32>
    %104 = arith.subf %103, %100 : vector<256x32xf32>
    %105 = arith.select %102, %100, %104 : vector<256x32xi1>, vector<256x32xf32>
    %cst_68 = arith.constant 1.000000e+00 : f32
    %106 = vector.broadcast %cst_68 : f32 to vector<256x32xf32>
    %107 = arith.addf %106, %105 : vector<256x32xf32>
    %108 = arith.mulf %70, %107 : vector<256x32xf32>
    %c0_69 = arith.constant 0 : index
    %c0_70 = arith.constant 0 : index
    %109 = vector.load %arg6[%c0_69, %c0_70] : memref<32x4xf32, #tpu.memory_space<vmem>>, vector<32x4xf32>
    %cst_71 = arith.constant dense<0.000000e+00> : vector<256x4xf32>
    %110 = tpu.matmul %108, %109, %cst_71 {dimension_numbers = #tpu.dot_dimension_numbers<[1], [0], [0], [1], [0, 0, 1, 1], [], []>} : vector<256x32xf32>, vector<32x4xf32>, vector<256x4xf32> -> vector<256x4xf32>
    %c0_72 = arith.constant 0 : index
    %c0_73 = arith.constant 0 : index
    %111 = vector.load %arg7[%c0_72, %c0_73] : memref<1x4xf32, #tpu.memory_space<vmem>>, vector<1x4xf32>
    %112 = vector.broadcast %111 : vector<1x4xf32> to vector<256x4xf32>
    %113 = arith.addf %110, %112 : vector<256x4xf32>
    %114 = vector.shape_cast %113 : vector<256x4xf32> to vector<1x16x16x4xf32>
    %c0_74 = arith.constant 0 : index
    %c0_75 = arith.constant 0 : index
    %c0_76 = arith.constant 0 : index
    %c0_77 = arith.constant 0 : index
    %115 = vector.load %arg8[%c0_74, %c0_75, %c0_76, %c0_77] : memref<1x16x16x4xf32, #tpu.memory_space<vmem>>, vector<1x16x16x4xf32>
    tpu.vector_store %arg8[%c0_74, %c0_75, %c0_76, %c0_77], %114 {strides = array<i32>} : memref<1x16x16x4xf32, #tpu.memory_space<vmem>>, vector<1x16x16x4xf32>,
    return
  }
  func.func @transform_0(%arg0: i32) -> (i32, i32, i32, i32) {
    %c0_i32 = arith.constant 0 : i32
    %c0_i32_0 = arith.constant 0 : i32
    %c0_i32_1 = arith.constant 0 : i32
    %c0_i32_2 = arith.constant 0 : i32
    return %arg0, %c0_i32, %c0_i32_0, %c0_i32_1 : i32, i32, i32, i32
  }
  func.func @transform_1(%arg0: i32) -> (i32, i32) {
    %c0_i32 = arith.constant 0 : i32
    %c0_i32_0 = arith.constant 0 : i32
    %c0_i32_1 = arith.constant 0 : i32
    return %c0_i32, %c0_i32_0 : i32, i32
  }
  func.func @transform_2(%arg0: i32) -> (i32, i32) {
    %c0_i32 = arith.constant 0 : i32
    %c0_i32_0 = arith.constant 0 : i32
    %c0_i32_1 = arith.constant 0 : i32
    return %c0_i32, %c0_i32_0 : i32, i32
  }
  func.func @transform_3(%arg0: i32) -> (i32, i32) {
    %c0_i32 = arith.constant 0 : i32
    %c0_i32_0 = arith.constant 0 : i32
    %c0_i32_1 = arith.constant 0 : i32
    return %c0_i32, %c0_i32_0 : i32, i32
  }
  func.func @transform_4(%arg0: i32) -> (i32, i32) {
    %c0_i32 = arith.constant 0 : i32
    %c0_i32_0 = arith.constant 0 : i32
    %c0_i32_1 = arith.constant 0 : i32
    return %c0_i32, %c0_i32_0 : i32, i32
  }
  func.func @transform_5(%arg0: i32) -> (i32, i32) {
    %c0_i32 = arith.constant 0 : i32
    %c0_i32_0 = arith.constant 0 : i32
    %c0_i32_1 = arith.constant 0 : i32
    return %c0_i32, %c0_i32_0 : i32, i32
  }
  func.func @transform_6(%arg0: i32) -> (i32, i32) {
    %c0_i32 = arith.constant 0 : i32
    %c0_i32_0 = arith.constant 0 : i32
    %c0_i32_1 = arith.constant 0 : i32
    return %c0_i32, %c0_i32_0 : i32, i32
  }
  func.func @transform_7(%arg0: i32) -> (i32, i32, i32, i32) {
    %c0_i32 = arith.constant 0 : i32
    %c0_i32_0 = arith.constant 0 : i32
    %c0_i32_1 = arith.constant 0 : i32
    %c0_i32_2 = arith.constant 0 : i32
    return %arg0, %c0_i32, %c0_i32_0, %c0_i32_1 : i32, i32, i32, i32
  }
}

</mosaic_0001>

<bundles_post_ra>
// kernel: tpu_custom_call.1
= control target key start
LH: loop header
LB: loop body
LE: loop exit
PB: predicated region body
PF: predicated region fallthrough
CT: control target
= control target key end

     0   :  { %s3437_s24 = smov 0   ;;  %s5259_s0 = inlined_call_operand.vmem [shape: f32[2,16,16,4], index: 0, kind: input, shape index: {}]   ;;  %s5260_s1 = inlined_call_operand.vmem [shape: f32[4,32], index: 1, kind: input, shape index: {}]   ;;  %s5261_s2 = inlined_call_operand.vmem [shape: f32[1,32], index: 2, kind: input, shape index: {}]   ;;  %s5262_s3 = inlined_call_operand.vmem [shape: f32[9,32], index: 3, kind: input, shape index: {}]   ;;  %s5263_s4 = inlined_call_operand.vmem [shape: f32[1,32], index: 4, kind: input, shape index: {}]   ;;  %s5264_s5 = inlined_call_operand.vmem [shape: f32[32,4], index: 5, kind: input, shape index: {}]   ;;  %s5265_s6 = inlined_call_operand.vmem [shape: f32[1,4], index: 6, kind: input, shape index: {}]   ;;  %s5266_s7 = inlined_call_operand.vmem [shape: f32[2,16,16,4], index: 7, kind: output, shape index: {}]  }
   0x1 LB: > { %s2966_s25 = sadd.s32 4294967295, %s3394_s24   ;;  %p2970_p0 = scmp.ge.s32.totalorder %s3394_s24, 1  ;;  %s3394_s24 = sphi %s3437_s24, %s17_s24  }
   0x2   : > { %p237_p1 = scmp.lt.s32.totalorder %s3394_s24, 3 }
   0x4   : > { %p238_p2 = pnand %p2970_p0, %p237_p1 }
   0x5   : > { %p269_p3 = scmp.lt.s32.totalorder (!%p238_p2), %s2966_s25, 1 }
   0x6   : > { %241 = sbr.rel (%p238_p2) target bundleno = 808 (0x328), region = 48 }
   0xb   : > { %v311_v0 = vld [vmem:[%s5260_s1] sm:$0xf]  ;;  %vm416_vm0 = vcmask 1043456   ;;  %s5268_s25 = smov (!%p269_p3, %s2966_s25), 1  ;;  %vm319_vm1 = vcmask 31744   ;;  %vm645_vm2 = vcmask 261120  }
   0xc   : > { %3125 = vmatprep.subr.msk.mxu0 %vm416_vm0, %v311_v0  ;;  %s3054_s28 = sshll.u32 %s5268_s25, 8  ;;  %vm648_vm3 = vcmask 254976   ;;  %v3396_v33 = vmov 0.0   ;;  %v2550_v34 = vld [vmem:[%s5264_s5 + $0x18] sm:$0xff]  ;;  %v2549_v35 = vld [vmem:[%s5264_s5 + $0x10] sm:$0xff]  ;;  %v2548_v36 = vld [vmem:[%s5264_s5 + $0x8] sm:$0xff] }
   0xd   : > { %3126 = vmatpush3.msk.msra.mxu0 %vm416_vm0, %v311_v0  ;;  %s3456_s8 = scalar_lea.vmem %s5259_s0, %s3054_s28  ;;  %651 = vst.msk [vmem:[#allocation2 + $0x20] sm:$0xff] %vm645_vm2, %v3396_v33  ;;  %646 = vst.msk [vmem:[#allocation2] sm:$0xff] %vm645_vm2, %v3396_v33  ;;  %3175 = vmatprep.subr.mxu1 %v2550_v34  ;;  %v2547_v37 = vld [vmem:[%s5264_s5] sm:$0xff]  ;;  %s5119_s23 = scalar_lea.vmem %s5266_s7, %s3054_s28 }
   0xe   : > { %v279_v1 = vld [vmem:[%s3456_s8] sm:$0xff]  ;;  %v280_v2 = vld [vmem:[%s3456_s8 + $0x8] sm:$0xff]  ;;  %v281_v3 = vld [vmem:[%s3456_s8 + $0x10] sm:$0xff]  ;;  %652 = vst.msk [vmem:[#allocation2 + $0x28] sm:$0x3] %vm648_vm3, %v3396_v33  ;;  %3176 = vmatpush3.msra.mxu1 %v2550_v34 }
   0xf   : > { %3127 = vmatprep.mubr.msk.f32.mxu0 %vm319_vm1, %v279_v1  ;;  %v282_v4 = vld [vmem:[%s3456_s8 + $0x18] sm:$0xff]  ;;  %v283_v5 = vld [vmem:[%s3456_s8 + $0x20] sm:$0xff]  ;;  %v284_v6 = vld [vmem:[%s3456_s8 + $0x28] sm:$0xff]  ;;  %647 = vst.msk [vmem:[#allocation2 + $0x8] sm:$0xff] %vm645_vm2, %v3396_v33  ;;  %3177 = vmatprep.subr.mxu1 %v2549_v35 }
  0x10   : > { %3128 = vmatmul.mubr.msk.f32.vlgmr.msra.gmra.mxu0 %vm319_vm1, %v280_v2  ;;  %v285_v7 = vld [vmem:[%s3456_s8 + $0x30] sm:$0xff]  ;;  %v286_v8 = vld [vmem:[%s3456_s8 + $0x38] sm:$0xff]  ;;  %v287_v9 = vld [vmem:[%s3456_s8 + $0x40] sm:$0xff]  ;;  %649 = vst.msk [vmem:[#allocation2 + $0x10] sm:$0x3] %vm648_vm3, %v3396_v33  ;;  %3178 = vmatpush3.msra.mxu1 %v2549_v35 }
  0x11   : > { %3130 = vmatprep.mubr.msk.f32.mxu0 %vm319_vm1, %v281_v3  ;;  %v288_v10 = vld [vmem:[%s3456_s8 + $0x48] sm:$0xff]  ;;  %v289_v11 = vld [vmem:[%s3456_s8 + $0x50] sm:$0xff]  ;;  %v290_v12 = vld [vmem:[%s3456_s8 + $0x58] sm:$0xff]  ;;  %650 = vst.msk [vmem:[#allocation2 + $0x18] sm:$0xff] %vm645_vm2, %v3396_v33  ;;  %3179 = vmatprep.subr.mxu1 %v2548_v36 }
  0x12   : > { %v291_v13 = vld [vmem:[%s3456_s8 + $0x60] sm:$0xff]  ;;  %v292_v14 = vld [vmem:[%s3456_s8 + $0x68] sm:$0xff]  ;;  %v293_v15 = vld [vmem:[%s3456_s8 + $0x70] sm:$0xff]  ;;  %653 = vst.msk [vmem:[#allocation2 + $0x30] sm:$0xff] %vm645_vm2, %v3396_v33  ;;  %3180 = vmatpush3.msra.mxu1 %v2548_v36 }
  0x13   : > { %v294_v16 = vld [vmem:[%s3456_s8 + $0x78] sm:$0xff]  ;;  %v295_v17 = vld [vmem:[%s3456_s8 + $0x80] sm:$0xff]  ;;  %v296_v18 = vld [vmem:[%s3456_s8 + $0x88] sm:$0xff]  ;;  %654 = vst.msk [vmem:[#allocation2 + $0x38] sm:$0xff] %vm645_vm2, %v3396_v33  ;;  %3181 = vmatprep.subr.mxu1 %v2547_v37 }
  0x14   : > { %3131 = vmatmul.mubr.msk.f32.gmra.mxu0 %vm319_vm1, %v282_v4  ;;  %v297_v19 = vld [vmem:[%s3456_s8 + $0x90] sm:$0xff]  ;;  %v298_v20 = vld [vmem:[%s3456_s8 + $0x98] sm:$0xff]  ;;  %v299_v21 = vld [vmem:[%s3456_s8 + $0xa0] sm:$0xff]  ;;  %655 = vst.msk [vmem:[#allocation2 + $0x40] sm:$0x3] %vm648_vm3, %v3396_v33  ;;  %3182 = vmatpush3.msra.mxu1 %v2547_v37 }
  0x15   : > { %3133 = vmatprep.mubr.msk.f32.mxu0 %vm319_vm1, %v283_v5  ;;  %v300_v22 = vld [vmem:[%s3456_s8 + $0xa8] sm:$0xff]  ;;  %v301_v23 = vld [vmem:[%s3456_s8 + $0xb0] sm:$0xff]  ;;  %v302_v24 = vld [vmem:[%s3456_s8 + $0xb8] sm:$0xff]  ;;  %656 = vst.msk [vmem:[#allocation2 + $0x48] sm:$0xff] %vm645_vm2, %v3396_v33 }
  0x16   : > { %v303_v25 = vld [vmem:[%s3456_s8 + $0xc0] sm:$0xff]  ;;  %v304_v26 = vld [vmem:[%s3456_s8 + $0xc8] sm:$0xff]  ;;  %v305_v27 = vld [vmem:[%s3456_s8 + $0xd0] sm:$0xff]  ;;  %657 = vst.msk [vmem:[#allocation2 + $0x50] sm:$0xff] %vm645_vm2, %v3396_v33 }
  0x17   : > { %v306_v28 = vld [vmem:[%s3456_s8 + $0xd8] sm:$0xff]  ;;  %v307_v29 = vld [vmem:[%s3456_s8 + $0xe0] sm:$0xff]  ;;  %v308_v30 = vld [vmem:[%s3456_s8 + $0xe8] sm:$0xff]  ;;  %658 = vst.msk [vmem:[#allocation2 + $0x58] sm:$0x3] %vm648_vm3, %v3396_v33 }
  0x18   : > { %3134 = vmatmul.mubr.msk.f32.gmra.mxu0 %vm319_vm1, %v284_v6  ;;  %v309_v31 = vld [vmem:[%s3456_s8 + $0xf0] sm:$0xff]  ;;  %v310_v32 = vld [vmem:[%s3456_s8 + $0xf8] sm:$0xff]  ;;  %659 = vst.msk [vmem:[#allocation2 + $0x60] sm:$0xff] %vm645_vm2, %v3396_v33  ;;  %660 = vst.msk [vmem:[#allocation2 + $0x68] sm:$0xff] %vm645_vm2, %v3396_v33 }
  0x19   : > { %3136 = vmatprep.mubr.msk.f32.mxu0 %vm319_vm1, %v285_v7  ;;  %661 = vst.msk [vmem:[#allocation2 + $0x70] sm:$0x3] %vm648_vm3, %v3396_v33  ;;  %664 = vst.msk [vmem:[#allocation2 + $0x88] sm:$0x3] %vm648_vm3, %v3396_v33  ;;  %v3591_v38 = vld [vmem:[%s5261_s2] ss:$0 sm:$0xff] }
  0x1a   : > { %662 = vst.msk [vmem:[#allocation2 + $0x78] sm:$0xff] %vm645_vm2, %v3396_v33  ;;  %663 = vst.msk [vmem:[#allocation2 + $0x80] sm:$0xff] %vm645_vm2, %v3396_v33  ;;  %v734_v39 = vld [vmem:[#allocation2] sm:$0xff]  ;;  %v735_v45 = vld [vmem:[#allocation2 + $0x8] sm:$0xff] }
  0x1b   : > { %665 = vst.msk [vmem:[#allocation2 + $0x90] sm:$0xff] %vm645_vm2, %v3396_v33  ;;  %666 = vst.msk [vmem:[#allocation2 + $0x98] sm:$0xff] %vm645_vm2, %v3396_v33  ;;  %v3596_v41 = vld [vmem:[%s5262_s3] ss:$0 sm:$0xff]  ;;  %v835_v42 = vld [vmem:[#allocation2 + $0x1] sm:$0xff] }
  0x1c   : > { %3137 = vmatmul.mubr.msk.f32.gmra.mxu0 %vm319_vm1, %v286_v8  ;;  %667 = vst.msk [vmem:[#allocation2 + $0xa0] sm:$0x3] %vm648_vm3, %v3396_v33  ;;  %670 = vst.msk [vmem:[#allocation2 + $0xb8] sm:$0x3] %vm648_vm3, %v3396_v33  ;;  %v3601_v43 = vld [vmem:[%s5262_s3 + $0x1] ss:$0 sm:$0xff]  ;;  %v771_v49 = vmul.f32 %v3596_v41, %v734_v39  ;;  %v772_v54 = vmul.f32 %v3596_v41, %v735_v45 }
  0x1d   : > { %3139 = vmatprep.mubr.msk.f32.mxu0 %vm319_vm1, %v287_v9  ;;  %668 = vst.msk [vmem:[#allocation2 + $0xa8] sm:$0xff] %vm645_vm2, %v3396_v33  ;;  %669 = vst.msk [vmem:[#allocation2 + $0xb0] sm:$0xff] %vm645_vm2, %v3396_v33  ;;  %v836_v46 = vld [vmem:[#allocation2 + $0x9] sm:$0xff]  ;;  %v872_v50 = vmul.f32 %v3601_v43, %v835_v42  ;;  %v3611_v53 = vld [vmem:[%s5262_s3 + $0x2] ss:$0 sm:$0xff] }
  0x1e   : > { %671 = vst.msk [vmem:[#allocation2 + $0xc0] sm:$0xff] %vm645_vm2, %v3396_v33  ;;  %672 = vst.msk [vmem:[#allocation2 + $0xc8] sm:$0xff] %vm645_vm2, %v3396_v33  ;;  %v936_v52 = vld [vmem:[#allocation2 + $0x2] sm:$0xff]  ;;  %v873_v55 = vmul.f32 %v3601_v43, %v836_v46  ;;  %v937_v57 = vld [vmem:[#allocation2 + $0xa] sm:$0xff] }
  0x1f   : > { %673 = vst.msk [vmem:[#allocation2 + $0xd0] sm:$0x3] %vm648_vm3, %v3396_v33  ;;  %676 = vst.msk [vmem:[#allocation2 + $0xe8] sm:$0x3] %vm648_vm3, %v3396_v33  ;;  %v904_v60 = vadd.f32 %v872_v50, %v771_v49  ;;  %v973_v61 = vmul.f32 %v3611_v53, %v936_v52  ;;  %v974_v0 = vmul.f32 %v3611_v53, %v937_v57  ;;  %v3626_v2 = vld [vmem:[%s5262_s3 + $0x4] ss:$0 sm:$0xff] }
  0x20   : > { %3140 = vmatmul.mubr.msk.f32.gmra.mxu0 %vm319_vm1, %v288_v10  ;;  %674 = vst.msk [vmem:[#allocation2 + $0xd8] sm:$0xff] %vm645_vm2, %v3396_v33  ;;  %675 = vst.msk [vmem:[#allocation2 + $0xe0] sm:$0xff] %vm645_vm2, %v3396_v33  ;;  %v905_v63 = vadd.f32 %v873_v55, %v772_v54  ;;  %v3631_v3 = vld [vmem:[%s5262_s3 + $0x5] ss:$0 sm:$0xff]  ;;  %v3636_v5 = vld [vmem:[%s5262_s3 + $0x3] ss:$0 sm:$0xff] }
  0x21   : > { %3142 = vmatprep.mubr.msk.f32.mxu0 %vm319_vm1, %v289_v11  ;;  %677 = vst.msk [vmem:[#allocation2 + $0xf0] sm:$0xff] %vm645_vm2, %v3396_v33  ;;  %678 = vst.msk [vmem:[#allocation2 + $0xf8] sm:$0xff] %vm645_vm2, %v3396_v33  ;;  %v1005_v9 = vadd.f32 %v973_v61, %v904_v60  ;;  %v3671_v34 = vld [vmem:[%s5262_s3 + $0x6] ss:$0 sm:$0xff] }
  0x22   : > { %679 = vst.msk [vmem:[#allocation2 + $0x100] sm:$0x3] %vm648_vm3, %v3396_v33  ;;  %682 = vst.msk [vmem:[#allocation2 + $0x118] sm:$0x3] %vm648_vm3, %v3396_v33 }
  0x23   : > { %680 = vst.msk [vmem:[#allocation2 + $0x108] sm:$0xff] %vm645_vm2, %v3396_v33  ;;  %681 = vst.msk [vmem:[#allocation2 + $0x110] sm:$0xff] %vm645_vm2, %v3396_v33 }
  0x24   : > { %3143 = vmatmul.mubr.msk.f32.gmra.mxu0 %vm319_vm1, %v290_v12  ;;  %683 = vst.msk [vmem:[#allocation2 + $0x120] sm:$0xff] %vm645_vm2, %v3396_v33  ;;  %684 = vst.msk [vmem:[#allocation2 + $0x128] sm:$0xff] %vm645_vm2, %v3396_v33 }
  0x25   : > { %3145 = vmatprep.mubr.msk.f32.mxu0 %vm319_vm1, %v291_v13  ;;  %685 = vst.msk [vmem:[#allocation2 + $0x130] sm:$0x3] %vm648_vm3, %v3396_v33  ;;  %688 = vst.msk [vmem:[#allocation2 + $0x148] sm:$0x3] %vm648_vm3, %v3396_v33 }
  0x26   : > { %686 = vst.msk [vmem:[#allocation2 + $0x138] sm:$0xff] %vm645_vm2, %v3396_v33  ;;  %687 = vst.msk [vmem:[#allocation2 + $0x140] sm:$0xff] %vm645_vm2, %v3396_v33 }
  0x27   : > { %689 = vst.msk [vmem:[#allocation2 + $0x150] sm:$0xff] %vm645_vm2, %v3396_v33  ;;  %690 = vst.msk [vmem:[#allocation2 + $0x158] sm:$0xff] %vm645_vm2, %v3396_v33 }
  0x28   : > { %3146 = vmatmul.mubr.msk.f32.gmra.mxu0 %vm319_vm1, %v292_v14  ;;  %691 = vst.msk [vmem:[#allocation2 + $0x160] sm:$0x3] %vm648_vm3, %v3396_v33  ;;  %694 = vst.msk [vmem:[#allocation2 + $0x178] sm:$0x3] %vm648_vm3, %v3396_v33  ;;  %v1006_v14 = vadd.f32 %v974_v0, %v905_v63 }
  0x29   : > { %3148 = vmatprep.mubr.msk.f32.mxu0 %vm319_vm1, %v293_v15  ;;  %692 = vst.msk [vmem:[#allocation2 + $0x168] sm:$0xff] %vm645_vm2, %v3396_v33  ;;  %693 = vst.msk [vmem:[#allocation2 + $0x170] sm:$0xff] %vm645_vm2, %v3396_v33 }
  0x2a   : > { %695 = vst.msk [vmem:[#allocation2 + $0x180] sm:$0xff] %vm645_vm2, %v3396_v33  ;;  %696 = vst.msk [vmem:[#allocation2 + $0x188] sm:$0xff] %vm645_vm2, %v3396_v33 }
  0x2b   : > { %697 = vst.msk [vmem:[#allocation2 + $0x190] sm:$0x3] %vm648_vm3, %v3396_v33  ;;  %700 = vst.msk [vmem:[#allocation2 + $0x1a8] sm:$0x3] %vm648_vm3, %v3396_v33 }
  0x2c   : > { %3149 = vmatmul.mubr.msk.f32.gmra.mxu0 %vm319_vm1, %v294_v16  ;;  %698 = vst.msk [vmem:[#allocation2 + $0x198] sm:$0xff] %vm645_vm2, %v3396_v33  ;;  %699 = vst.msk [vmem:[#allocation2 + $0x1a0] sm:$0xff] %vm645_vm2, %v3396_v33 }
  0x2d   : > { %3151 = vmatprep.mubr.msk.f32.mxu0 %vm319_vm1, %v295_v17 }
  0x30   : > { %3152 = vmatmul.mubr.msk.f32.gmra.mxu0 %vm319_vm1, %v296_v18  ;;  %v3647_v18 = vld [vmem:[%s5262_s3 + $0x7] ss:$0 sm:$0xff] }
  0x31   : > { %3154 = vmatprep.mubr.msk.f32.mxu0 %vm319_vm1, %v297_v19 }
  0x34   : > { %3155 = vmatmul.mubr.msk.f32.gmra.mxu0 %vm319_vm1, %v298_v20 }
  0x35   : > { %3157 = vmatprep.mubr.msk.f32.mxu0 %vm319_vm1, %v299_v21 }
  0x38   : > { %3158 = vmatmul.mubr.msk.f32.gmra.mxu0 %vm319_vm1, %v300_v22 }
  0x39   : > { %3160 = vmatprep.mubr.msk.f32.mxu0 %vm319_vm1, %v301_v23  ;;  %v3654_v23 = vld [vmem:[%s5262_s3 + $0x8] ss:$0 sm:$0xff] }
  0x3c   : > { %3161 = vmatmul.mubr.msk.f32.gmra.mxu0 %vm319_vm1, %v302_v24 }
  0x3d   : > { %3163 = vmatprep.mubr.msk.f32.mxu0 %vm319_vm1, %v303_v25 }
  0x40   : > { %3164 = vmatmul.mubr.msk.f32.gmra.mxu0 %vm319_vm1, %v304_v26 }
  0x41   : > { %3166 = vmatprep.mubr.msk.f32.mxu0 %vm319_vm1, %v305_v27 }
  0x44   : > { %3167 = vmatmul.mubr.msk.f32.gmra.mxu0 %vm319_vm1, %v306_v28 }
  0x45   : > { %3169 = vmatprep.mubr.msk.f32.mxu0 %vm319_vm1, %v307_v29 }
  0x48   : > { %3170 = vmatmul.mubr.msk.f32.gmra.mxu0 %vm319_vm1, %v308_v30 }
  0x49   : > { %3172 = vmatprep.mubr.msk.f32.mxu0 %vm319_vm1, %v309_v31 }
  0x4c   : > { %3173 = vmatmul.mubr.msk.f32.gmra.mxu0 %vm319_vm1, %v310_v32 }
  0xd0   : > { %v3129_v40 = vpop.f32.mrf.mxu0 }
  0xd1   : > { %v492_v44 = vadd.f32 %v3129_v40, %v3591_v38 }
  0xd2   : > { %v486_v47 = vpop.f32.mrf.mxu0 }
  0xd3   : > { %703 = vst.msk [vmem:[#allocation2 + $0x21] sm:$0xff] %vm645_vm2, %v492_v44  ;;  %v487_v48 = vadd.f32 %v3591_v38, %v486_v47 }
  0xd4   : > { %v3132_v51 = vpop.f32.mrf.mxu0 }
  0xd5   : > { %702 = vst.msk [vmem:[#allocation2 + $0x19] sm:$0xff] %vm645_vm2, %v487_v48  ;;  %v502_v56 = vadd.f32 %v3132_v51, %v3591_v38 }
  0xd6   : > { %v496_v58 = vpop.f32.mrf.mxu0 }
  0xd7   : > { %705 = vst.msk [vmem:[#allocation2 + $0x39] sm:$0xff] %vm645_vm2, %v502_v56  ;;  %v497_v59 = vadd.f32 %v3591_v38, %v496_v58 }
  0xd8   : > { %v3135_v62 = vpop.f32.mrf.mxu0 }
  0xd9   : > { %704 = vst.msk [vmem:[#allocation2 + $0x31] sm:$0xff] %vm645_vm2, %v497_v59  ;;  %v512_v1 = vadd.f32 %v3135_v62, %v3591_v38 }
  0xda   : > { %v506_v4 = vpop.f32.mrf.mxu0  ;;  %v1139_v6 = vld [vmem:[#allocation2 + $0x21] sm:$0xff] }
  0xdb   : > { %v1240_v7 = vld [vmem:[#allocation2 + $0x22] sm:$0xff]  ;;  %707 = vst.msk [vmem:[#allocation2 + $0x51] sm:$0xff] %vm645_vm2, %v512_v1  ;;  %v507_v8 = vadd.f32 %v3591_v38, %v506_v4  ;;  %v1176_v15 = vmul.f32 %v3626_v2, %v1139_v6  ;;  %v875_v21 = vmul.f32 %v3601_v43, %v1139_v6 }
  0xdc   : > { %v3138_v10 = vpop.f32.mrf.mxu0  ;;  %v1037_v11 = vld [vmem:[#allocation2 + $0x18] sm:$0xff]  ;;  %v1038_v19 = vld [vmem:[#allocation2 + $0x20] sm:$0xff]  ;;  %v1277_v20 = vmul.f32 %v3631_v3, %v1240_v7  ;;  %v976_v29 = vmul.f32 %v3611_v53, %v1240_v7 }
  0xdd   : > { %v1138_v12 = vld [vmem:[#allocation2 + $0x19] sm:$0xff]  ;;  %706 = vst.msk [vmem:[#allocation2 + $0x49] sm:$0xff] %vm645_vm2, %v507_v8  ;;  %v522_v16 = vadd.f32 %v3138_v10, %v3591_v38  ;;  %v1074_v17 = vmul.f32 %v3636_v5, %v1037_v11  ;;  %v1075_v24 = vmul.f32 %v3636_v5, %v1038_v19  ;;  %v773_v27 = vmul.f32 %v3596_v41, %v1037_v11 }
  0xde   : > { %v1239_v13 = vld [vmem:[#allocation2 + $0x1a] sm:$0xff]  ;;  %v516_v22 = vpop.f32.mrf.mxu0  ;;  %v874_v28 = vmul.f32 %v3601_v43, %v1138_v12  ;;  %v1175_v32 = vmul.f32 %v3626_v2, %v1138_v12  ;;  %v774_v44 = vmul.f32 %v3596_v41, %v1038_v19 }
  0xdf   : > { %v3657_v25 = vld [vmem:[#allocation2 + $0x39] sm:$0xff]  ;;  %709 = vst.msk [vmem:[#allocation2 + $0x69] sm:$0xff] %vm645_vm2, %v522_v16  ;;  %v517_v30 = vadd.f32 %v3591_v38, %v516_v22  ;;  %v1106_v31 = vadd.f32 %v1074_v17, %v1005_v9  ;;  %v1276_v33 = vmul.f32 %v3631_v3, %v1239_v13  ;;  %v1107_v39 = vadd.f32 %v1075_v24, %v1006_v14 }
  0xe0   : > { %v3659_v26 = vld [vmem:[#allocation2 + $0x3a] sm:$0xff]  ;;  %v3141_v35 = vpop.f32.mrf.mxu0  ;;  %v1341_v36 = vld [vmem:[#allocation2 + $0x30] sm:$0xff]  ;;  %v906_v40 = vadd.f32 %v874_v28, %v773_v27  ;;  %v975_v42 = vmul.f32 %v3611_v53, %v1239_v13  ;;  %v1480_v48 = vmul.f32 %v3647_v18, %v3657_v25  ;;  %v1178_v55 = vmul.f32 %v3626_v2, %v3657_v25 }
  0xe1   : > { %v1442_v37 = vld [vmem:[#allocation2 + $0x31] sm:$0xff]  ;;  %708 = vst.msk [vmem:[#allocation2 + $0x61] sm:$0xff] %vm645_vm2, %v517_v30  ;;  %v532_v45 = vadd.f32 %v3141_v35, %v3591_v38  ;;  %v1207_v46 = vadd.f32 %v1175_v32, %v1106_v31  ;;  %v1581_v49 = vmul.f32 %v3654_v23, %v3659_v26  ;;  %v1378_v51 = vmul.f32 %v3671_v34, %v1341_v36  ;;  %v3712_v24 = vld [vmem:[%s5263_s4] ss:$0 sm:$0xff] }
  0xe2   : > { %v3677_v47 = vld [vmem:[#allocation2 + $0x38] sm:$0xff]  ;;  %v526_v50 = vpop.f32.mrf.mxu0  ;;  %v1208_v52 = vadd.f32 %v1176_v15, %v1107_v39  ;;  %v1007_v54 = vadd.f32 %v975_v42, %v906_v40  ;;  %v1479_v58 = vmul.f32 %v3647_v18, %v1442_v37  ;;  %v1076_v60 = vmul.f32 %v3636_v5, %v1341_v36 }
  0xe3   : > { %711 = vst.msk [vmem:[#allocation2 + $0x81] sm:$0xff] %vm645_vm2, %v532_v45  ;;  %v527_v56 = vadd.f32 %v3591_v38, %v526_v50  ;;  %v1308_v57 = vadd.f32 %v1276_v33, %v1207_v46  ;;  %v1543_v59 = vld [vmem:[#allocation2 + $0x32] sm:$0xff]  ;;  %v1379_v63 = vmul.f32 %v3671_v34, %v3677_v47  ;;  %v907_v1 = vadd.f32 %v875_v21, %v774_v44 }
  0xe4   : > { %v3144_v61 = vpop.f32.mrf.mxu0  ;;  %v1309_v62 = vadd.f32 %v1277_v20, %v1208_v52  ;;  %v3692_v0 = vld [vmem:[#allocation2 + $0x48] sm:$0xff]  ;;  %v1077_v4 = vmul.f32 %v3636_v5, %v3677_v47  ;;  %v1108_v8 = vadd.f32 %v1076_v60, %v1007_v54  ;;  %v1177_v9 = vmul.f32 %v3626_v2, %v1442_v37  ;;  %v3718_v31 = vld [vmem:[#allocation2 + $0x50] sm:$0xff] }
  0xe5   : > { %710 = vst.msk [vmem:[#allocation2 + $0x79] sm:$0xff] %vm645_vm2, %v527_v56  ;;  %v542_v6 = vadd.f32 %v3144_v61, %v3591_v38  ;;  %v1410_v7 = vadd.f32 %v1378_v51, %v1308_v57  ;;  %v3699_v10 = vld [vmem:[#allocation2 + $0x49] sm:$0xff]  ;;  %v1580_v13 = vmul.f32 %v3654_v23, %v1543_v59  ;;  %v1278_v15 = vmul.f32 %v3631_v3, %v1543_v59  ;;  %v3724_v45 = vld [vmem:[#allocation2 + $0x51] sm:$0xff] }
  0xe6   : > { %v3701_v11 = vld [vmem:[#allocation2 + $0x4a] sm:$0xff]  ;;  %v536_v12 = vpop.f32.mrf.mxu0  ;;  %v1411_v14 = vadd.f32 %v1379_v63, %v1309_v62  ;;  %v1008_v16 = vadd.f32 %v976_v29, %v907_v1  ;;  %v1209_v20 = vadd.f32 %v1177_v9, %v1108_v8  ;;  %v1380_v21 = vmul.f32 %v3671_v34, %v3692_v0  ;;  %v3746_v62 = vld [vmem:[#allocation2 + $0x52] sm:$0xff] }
  0xe7   : > { %713 = vst.msk [vmem:[#allocation2 + $0x99] sm:$0xff] %vm645_vm2, %v542_v6  ;;  %v537_v17 = vadd.f32 %v3591_v38, %v536_v12  ;;  %v1511_v19 = vadd.f32 %v1479_v58, %v1410_v7  ;;  %v1481_v28 = vmul.f32 %v3647_v18, %v3699_v10  ;;  %v1582_v29 = vmul.f32 %v3654_v23, %v3701_v11 }
  0xe8   : > { %v3147_v22 = vpop.f32.mrf.mxu0  ;;  %v1512_v27 = vadd.f32 %v1480_v48, %v1411_v14  ;;  %v1109_v30 = vadd.f32 %v1077_v4, %v1008_v16  ;;  %v1310_v35 = vadd.f32 %v1278_v15, %v1209_v20  ;;  %v1279_v39 = vmul.f32 %v3631_v3, %v3659_v26 }
  0xe9   : > { %712 = vst.msk [vmem:[#allocation2 + $0x91] sm:$0xff] %vm645_vm2, %v537_v17  ;;  %v552_v32 = vadd.f32 %v3147_v22, %v3591_v38  ;;  %v1612_v33 = vadd.f32 %v1580_v13, %v1511_v19  ;;  %v775_v46 = vmul.f32 %v3596_v41, %v1341_v36  ;;  %v876_v48 = vmul.f32 %v3601_v43, %v1442_v37 }
  0xea   : > { %v546_v40 = vpop.f32.mrf.mxu0  ;;  %v1613_v42 = vadd.f32 %v1581_v49, %v1512_v27  ;;  %v1210_v44 = vadd.f32 %v1178_v55, %v1109_v30  ;;  %v1412_v52 = vadd.f32 %v1380_v21, %v1310_v35  ;;  %v1381_v54 = vmul.f32 %v3671_v34, %v3718_v31 }
  0xeb   : > { %715 = vst.msk [vmem:[#allocation2 + $0xb1] sm:$0xff] %vm645_vm2, %v552_v32  ;;  %v547_v50 = vadd.f32 %v3591_v38, %v546_v40  ;;  %v3731_v51 = vadd.f32 %v3712_v24, %v1612_v33  ;;  %v908_v57 = vadd.f32 %v876_v48, %v775_v46  ;;  %v977_v36 = vmul.f32 %v3611_v53, %v1543_v59 }
  0xec   : > { %v3150_v56 = vpop.f32.mrf.mxu0  ;;  %v3736_v49 = vadd.f32 %v3712_v24, %v1613_v42  ;;  %v1311_v55 = vadd.f32 %v1279_v39, %v1210_v44  ;;  %v1513_v60 = vadd.f32 %v1481_v28, %v1412_v52  ;;  %v1482_v61 = vmul.f32 %v3647_v18, %v3724_v45 }
  0xed   : > { %714 = vst.msk [vmem:[#allocation2 + $0xa9] sm:$0xff] %vm645_vm2, %v547_v50  ;;  %v562_v37 = vadd.f32 %v3150_v56, %v3591_v38  ;;  %v3742_v58 = vmul.f32 0.70710677, %v3731_v51  ;;  %v1009_v6 = vadd.f32 %v977_v36, %v908_v57  ;;  %v1078_v59 = vmul.f32 %v3636_v5, %v3692_v0  ;;  %v3782_v57 = vld [vmem:[#allocation2 + $0x60] sm:$0xff] }
  0xee   : > { %v556_v63 = vpop.f32.mrf.mxu0  ;;  %v3749_v1 = vmul.f32 0.70710677, %v3736_v49  ;;  %v1413_v4 = vadd.f32 %v1381_v54, %v1311_v55  ;;  %v1614_v9 = vadd.f32 %v1582_v29, %v1513_v60  ;;  %v1583_v15 = vmul.f32 %v3654_v23, %v3746_v62 }
  0xef   : > { %717 = vst.msk [vmem:[#allocation2 + $0xc9] sm:$0xff] %vm645_vm2, %v562_v37  ;;  %v557_v7 = vadd.f32 %v3591_v38, %v556_v63  ;;  %v1747_v8 = vand.u32 2147483647, %v3742_v58  ;;  %v1110_v28 = vadd.f32 %v1078_v59, %v1009_v6  ;;  %v1179_v42 = vmul.f32 %v3626_v2, %v3699_v10  ;;  %v3786_v63 = vld [vmem:[#allocation2 + $0x61] sm:$0xff] }
  0xf0   : > { %v3153_v12 = vpop.f32.mrf.mxu0  ;;  %v1748_v13 = vand.u32 2147483647, %v3749_v1  ;;  %v1514_v14 = vadd.f32 %v1482_v61, %v1413_v4  ;;  %v3762_v20 = vadd.f32 %v3712_v24, %v1614_v9  ;;  %v1280_v61 = vmul.f32 %v3631_v3, %v3701_v11 }
  0xf1   : > { %716 = vst.msk [vmem:[#allocation2 + $0xc1] sm:$0xff] %vm645_vm2, %v557_v7  ;;  %v572_v16 = vadd.f32 %v3153_v12, %v3591_v38  ;;  %v1779_v17 = vmul.f32 0.3275911, %v1747_v8  ;;  %v2195_v19 = vsub.f32 0.0, %v1747_v8  ;;  %v1211_v52 = vadd.f32 %v1179_v42, %v1110_v28 }
  0xf2   : > { %v566_v21 = vpop.f32.mrf.mxu0  ;;  %v1780_v22 = vmul.f32 0.3275911, %v1748_v13  ;;  %v1615_v27 = vadd.f32 %v1583_v15, %v1514_v14  ;;  %v2196_v32 = vsub.f32 0.0, %v1748_v13  ;;  %v3767_v39 = vmul.f32 0.70710677, %v3762_v20 }
  0xf3   : > { %719 = vst.msk [vmem:[#allocation2 + $0xe1] sm:$0xff] %vm645_vm2, %v572_v16  ;;  %v567_v29 = vadd.f32 %v3591_v38, %v566_v21  ;;  %v1811_v30 = vadd.f32 1.0, %v1779_v17  ;;  %v2227_v46 = vmul.f32 %v2195_v19, %v1747_v8  ;;  %v1312_v12 = vadd.f32 %v1280_v61, %v1211_v52  ;;  %v3797_v19 = vld [vmem:[#allocation2 + $0x62] sm:$0xff] }
  0xf4   : > { %v3156_v33 = vpop.f32.mrf.mxu0  ;;  %v1812_v35 = vadd.f32 1.0, %v1780_v22  ;;  %v3770_v40 = vadd.f32 %v3712_v24, %v1615_v27  ;;  %v1749_v50 = vand.u32 2147483647, %v3767_v39  ;;  %v2228_v56 = vmul.f32 %v2196_v32, %v1748_v13 }
  0xf5   : > { %718 = vst.msk [vmem:[#allocation2 + $0xd9] sm:$0xff] %vm645_vm2, %v567_v29  ;;  %v582_v44 = vadd.f32 %v3156_v33, %v3591_v38  ;;  %3240 = vrcp.f32 %v1811_v30  ;;  %v2259_v6 = vmul.f32 1.442695, %v2227_v46  ;;  %v1382_v13 = vmul.f32 %v3671_v34, %v3782_v57 }
  0xf6   : > { %v576_v48 = vpop.f32.mrf.mxu0  ;;  %3242 = vrcp.f32 %v1812_v35  ;;  %v3780_v55 = vmul.f32 0.70710677, %v3770_v40  ;;  %v1781_v37 = vmul.f32 0.3275911, %v1749_v50  ;;  %v2197_v60 = vsub.f32 0.0, %v1749_v50 }
  0xf7   : > { %721 = vst.msk [vmem:[#allocation2 + $0xf9] sm:$0xff] %vm645_vm2, %v582_v44  ;;  %v577_v54 = vadd.f32 %v3591_v38, %v576_v48  ;;  %v2261_v15 = vmul.f32 1.442695, %v2228_v56  ;;  %v1483_v17 = vmul.f32 %v3647_v18, %v3786_v63  ;;  %v1414_v27 = vadd.f32 %v1382_v13, %v1312_v12 }
  0xf8   : > { %v3159_v36 = vpop.f32.mrf.mxu0  ;;  %v1750_v59 = vand.u32 2147483647, %v3780_v55  ;;  %v1813_v8 = vadd.f32 1.0, %v1781_v37  ;;  %v2229_v9 = vmul.f32 %v2197_v60, %v1749_v50  ;;  %v776_v28 = vmul.f32 %v3596_v41, %v3677_v47 }
  0xf9   : > { %720 = vst.msk [vmem:[#allocation2 + $0xf1] sm:$0xff] %vm645_vm2, %v577_v54  ;;  %v592_v4 = vadd.f32 %v3159_v36, %v3591_v38  ;;  %v877_v33 = vmul.f32 %v3601_v43, %v3657_v25  ;;  %v1515_v42 = vadd.f32 %v1483_v17, %v1414_v27  ;;  %v1584_v44 = vmul.f32 %v3654_v23, %v3797_v19  ;;  %v3846_v27 = vld [vmem:[#allocation2 + $0x69] sm:$0xff] }
  0xfa   : > { %v586_v7 = vpop.f32.mrf.mxu0  ;;  %v1782_v16 = vmul.f32 0.3275911, %v1750_v59  ;;  %3244 = vrcp.f32 %v1813_v8  ;;  %v2198_v22 = vsub.f32 0.0, %v1750_v59  ;;  %v2263_v30 = vmul.f32 1.442695, %v2229_v9 }
  0xfb   : > { %723 = vst.msk [vmem:[#allocation2 + $0x111] sm:$0xff] %vm645_vm2, %v592_v4  ;;  %v587_v14 = vadd.f32 %v3591_v38, %v586_v7  ;;  %3246 = vpow2.f32 %v2259_v6  ;;  %v978_v46 = vmul.f32 %v3611_v53, %v3659_v26  ;;  %v909_v48 = vadd.f32 %v877_v33, %v776_v28 }
  0xfc   : > { %v3162_v21 = vpop.f32.mrf.mxu0  ;;  %v1814_v32 = vadd.f32 1.0, %v1782_v16  ;;  %v1079_v50 = vmul.f32 %v3636_v5, %v3718_v31  ;;  %v3814_v25 = vmul.f32 0.5, %v3731_v51  ;;  %v1616_v54 = vadd.f32 %v1584_v44, %v1515_v42 }
  0xfd   : > { %722 = vst.msk [vmem:[#allocation2 + $0x109] sm:$0xff] %vm645_vm2, %v587_v14  ;;  %v602_v29 = vadd.f32 %v3162_v21, %v3591_v38  ;;  %v2230_v26 = vmul.f32 %v2198_v22, %v1750_v59  ;;  %v1010_v36 = vadd.f32 %v978_v46, %v909_v48  ;;  %v1180_v4 = vmul.f32 %v3626_v2, %v3724_v45 }
  0xfe   : > { %v596_v35 = vpop.f32.mrf.mxu0  ;;  %3248 = vrcp.f32 %v1814_v32  ;;  %v3821_v61 = vadd.f32 %v3712_v24, %v1616_v54  ;;  %v777_v51 = vmul.f32 %v3596_v41, %v3692_v0  ;;  %v878_v6 = vmul.f32 %v3601_v43, %v3699_v10 }
  0xff   : > { %725 = vst.msk [vmem:[#allocation2 + $0x129] sm:$0xff] %vm645_vm2, %v602_v29  ;;  %v597_v47 = vadd.f32 %v3591_v38, %v596_v35  ;;  %3250 = vpow2.f32 %v2261_v15  ;;  %v1111_v9 = vadd.f32 %v1079_v50, %v1010_v36  ;;  %v1281_v12 = vmul.f32 %v3631_v3, %v3746_v62  ;;  %v3840_v15 = vld [vmem:[#allocation2 + $0x68] sm:$0xff] }
 0x100   : > { %v3165_v52 = vpop.f32.mrf.mxu0  ;;  %3252 = vpow2.f32 %v2263_v30  ;;  %v3838_v0 = vmul.f32 0.70710677, %v3821_v61  ;;  %v910_v10 = vadd.f32 %v878_v6, %v777_v51  ;;  %v979_v16 = vmul.f32 %v3611_v53, %v3701_v11 }
 0x101   : > { %724 = vst.msk [vmem:[#allocation2 + $0x121] sm:$0xff] %vm645_vm2, %v597_v47  ;;  %v612_v56 = vadd.f32 %v3165_v52, %v3591_v38  ;;  %v1212_v22 = vadd.f32 %v1180_v4, %v1111_v9  ;;  %v1080_v28 = vmul.f32 %v3636_v5, %v3782_v57  ;;  %v3850_v32 = vmul.f32 1.442695, %v2230_v26  ;;  %v3860_v47 = vld [vmem:[#allocation2 + $0x6a] sm:$0xff] }
 0x102   : > { %v3818_v37 = vpop.eup %3240  ;;  %v606_v60 = vpop.f32.mrf.mxu0  ;;  %v3853_v33 = vand.u32 2147483647, %v3838_v0  ;;  %v1011_v35 = vadd.f32 %v979_v16, %v910_v10  ;;  %v1383_v46 = vmul.f32 %v3671_v34, %v3840_v15  ;;  %v1484_v54 = vmul.f32 %v3647_v18, %v3846_v27 }
 0x103   : > { %v3829_v7 = vpop.eup %3242  ;;  %727 = vst.msk [vmem:[#allocation2 + $0x141] sm:$0xff] %vm645_vm2, %v612_v56  ;;  %v607_v59 = vadd.f32 %v3591_v38, %v606_v60  ;;  %v1907_v8 = vmul.f32 1.0614054, %v3818_v37  ;;  %v1313_v44 = vadd.f32 %v1281_v12, %v1212_v22  ;;  %v1181_v51 = vmul.f32 %v3626_v2, %v3786_v63 }
 0x104   : > { %v3168_v13 = vpop.f32.mrf.mxu0  ;;  %v1908_v14 = vmul.f32 1.0614054, %v3829_v7  ;;  %v1783_v52 = vmul.f32 0.3275911, %v3853_v33  ;;  %v1112_v56 = vadd.f32 %v1080_v28, %v1011_v35  ;;  %v1585_v12 = vmul.f32 %v3654_v23, %v3860_v47 }
 0x105   : > { %726 = vst.msk [vmem:[#allocation2 + $0x139] sm:$0xff] %vm645_vm2, %v607_v59  ;;  %v622_v17 = vadd.f32 %v3168_v13, %v3591_v38  ;;  %v1939_v21 = vadd.f32 -1.4531521, %v1907_v8  ;;  %v1415_v4 = vadd.f32 %v1383_v46, %v1313_v44  ;;  %vm2387_vm4 = vcmp.ge.f32.partialorder %v3742_v58, 0.0 }
 0x106   : > { %v616_v29 = vpop.f32.mrf.mxu0  ;;  %v1940_v30 = vadd.f32 -1.4531521, %v1908_v14  ;;  %v1815_v9 = vadd.f32 1.0, %v1783_v52  ;;  %vm2388_vm5 = vcmp.ge.f32.partialorder %v3749_v1, 0.0  ;;  %vm2389_vm6 = vcmp.ge.f32.partialorder %v3767_v39, 0.0 }
 0x107   : > { %729 = vst.msk [vmem:[#allocation2 + $0x159] sm:$0xff] %vm645_vm2, %v622_v17  ;;  %v617_v11 = vadd.f32 %v3591_v38, %v616_v29  ;;  %v1971_v42 = vmul.f32 %v3818_v37, %v1939_v21  ;;  %v3866_v26 = vpop.eup %3244  ;;  %v1516_v16 = vadd.f32 %v1484_v54, %v1415_v4  ;;  %v1213_v17 = vadd.f32 %v1181_v51, %v1112_v56 }
 0x108   : > { %v3171_v48 = vpop.f32.mrf.mxu0  ;;  %v1972_v50 = vmul.f32 %v3829_v7, %v1940_v30  ;;  %v1909_v8 = vmul.f32 1.0614054, %v3866_v26  ;;  %v3247_v13 = vpop.eup %3246  ;;  %3254 = vrcp.f32 %v1815_v9  ;;  %v1282_v30 = vmul.f32 %v3631_v3, %v3797_v19 }
 0x109   : > { %728 = vst.msk [vmem:[#allocation2 + $0x151] sm:$0xff] %vm645_vm2, %v617_v11  ;;  %v632_v36 = vadd.f32 %v3171_v48, %v3591_v38  ;;  %v2003_v60 = vadd.f32 1.4214138, %v1971_v42  ;;  %v1617_v46 = vadd.f32 %v1585_v12, %v1516_v16  ;;  %v3886_v48 = vld [vmem:[#allocation2 + $0x78] sm:$0xff]  ;;  %v3901_v9 = vmul.f32 0.5, %v3736_v49 }
 0x10a   : > { %v626_v6 = vpop.f32.mrf.mxu0  ;;  %v2004_v59 = vadd.f32 1.4214138, %v1972_v50  ;;  %v1941_v29 = vadd.f32 -1.4531521, %v1909_v8  ;;  %v3898_v8 = vld [vmem:[#allocation2 + $0x79] sm:$0xff]  ;;  %3256 = vpow2.f32 %v3850_v32  ;;  %vm2390_vm7 = vcmp.ge.f32.partialorder %v3780_v55, 0.0 }
 0x10b   : > { %731 = vst.msk [vmem:[#allocation2 + $0x171] sm:$0xff] %vm645_vm2, %v632_v36  ;;  %v627_v14 = vadd.f32 %v3591_v38, %v626_v6  ;;  %v2035_v10 = vmul.f32 %v3818_v37, %v2003_v60  ;;  %v3878_v21 = vpop.eup %3248  ;;  %v2199_v36 = vsub.f32 0.0, %v3853_v33  ;;  %v1314_v60 = vadd.f32 %v1282_v30, %v1213_v17 }
 0x10c   : > { %v3174_v22 = vpop.f32.mrf.mxu0  ;;  %v2036_v28 = vmul.f32 %v3829_v7, %v2004_v59  ;;  %v3251_v35 = vpop.eup %3250  ;;  %v1910_v44 = vmul.f32 1.0614054, %v3878_v21  ;;  %v1973_v56 = vmul.f32 %v3866_v26, %v1941_v29  ;;  %v3896_v59 = vadd.f32 %v3712_v24, %v1617_v46 }
 0x10d   : > { %730 = vst.msk [vmem:[#allocation2 + $0x169] sm:$0xff] %vm645_vm2, %v627_v14  ;;  %v642_v11 = vadd.f32 %v3174_v22, %v3591_v38  ;;  %v2067_v42 = vadd.f32 -0.28449672, %v2035_v10  ;;  %v3888_v50 = vpop.eup %3252  ;;  %v1384_v10 = vmul.f32 %v3671_v34, %v3886_v48  ;;  %v3912_v22 = vld [vmem:[#allocation2 + $0x7a] sm:$0xff]  ;;  %v1485_v30 = vmul.f32 %v3647_v18, %v3898_v8 }
 0x10e   : > { %v636_v52 = vpop.f32.mrf.mxu0  ;;  %v2068_v54 = vadd.f32 -0.28449672, %v2036_v28  ;;  %v1942_v6 = vadd.f32 -1.4531521, %v1910_v44  ;;  %v2005_v14 = vadd.f32 1.4214138, %v1973_v56  ;;  %v2231_v44 = vmul.f32 %v2199_v36, %v3853_v33 }
 0x10f   : > { %733 = vst.msk [vmem:[#allocation2 + $0x189] sm:$0xff] %vm645_vm2, %v642_v11  ;;  %v637_v4 = vadd.f32 %v3591_v38, %v636_v52  ;;  %v2099_v51 = vmul.f32 %v3818_v37, %v2067_v42  ;;  %v3910_v17 = vmul.f32 0.70710677, %v3896_v59  ;;  %v1416_v29 = vadd.f32 %v1384_v10, %v1314_v60 }
 0x110   : > { %v2100_v12 = vmul.f32 %v3829_v7, %v2068_v54  ;;  %v1974_v16 = vmul.f32 %v3878_v21, %v1942_v6  ;;  %v2037_v28 = vmul.f32 %v3866_v26, %v2005_v14  ;;  %v1586_v56 = vmul.f32 %v3654_v23, %v3912_v22 }
 0x111   : > { %732 = vst.msk [vmem:[#allocation2 + $0x181] sm:$0xff] %vm645_vm2, %v637_v4  ;;  %v2131_v38 = vadd.f32 0.2548296, %v2099_v51  ;;  %v1752_v32 = vand.u32 2147483647, %v3910_v17  ;;  %v1517_v54 = vadd.f32 %v1485_v30, %v1416_v29  ;;  %v778_v10 = vmul.f32 %v3596_v41, %v3718_v31 }
 0x112   : > { %v2132_v49 = vadd.f32 0.2548296, %v2100_v12  ;;  %v2006_v42 = vadd.f32 1.4214138, %v1974_v16  ;;  %v2069_v52 = vadd.f32 -0.28449672, %v2037_v28  ;;  %v879_v29 = vmul.f32 %v3601_v43, %v3724_v45 }
 0x113   : > { %v2163_v11 = vmul.f32 %v3818_v37, %v2131_v38  ;;  %v1784_v51 = vmul.f32 0.3275911, %v1752_v32  ;;  %v3927_v37 = vmul.f32 0.5, %v3762_v20  ;;  %v1618_v36 = vadd.f32 %v1586_v56, %v1517_v54 }
 0x114   : > { %v2164_v46 = vmul.f32 %v3829_v7, %v2132_v49  ;;  %v2038_v60 = vmul.f32 %v3878_v21, %v2006_v42  ;;  %v2101_v33 = vmul.f32 %v3866_v26, %v2069_v52  ;;  %v2267_v16 = vmul.f32 1.442695, %v2231_v44 }
 0x115   : > { %v2323_v4 = vmul.f32 %v3247_v13, %v2163_v11  ;;  %v1816_v14 = vadd.f32 1.0, %v1784_v51  ;;  %v3933_v49 = vadd.f32 %v3712_v24, %v1618_v36  ;;  %v3935_v28 = vpop.eup %3254  ;;  %v2200_v42 = vsub.f32 0.0, %v1752_v32 }
 0x116   : > { %v2324_v6 = vmul.f32 %v3251_v35, %v2164_v46  ;;  %v2070_v7 = vadd.f32 -0.28449672, %v2038_v60  ;;  %v2133_v13 = vadd.f32 0.2548296, %v2101_v33  ;;  %v1911_v11 = vmul.f32 1.0614054, %v3935_v28 }
 0x117   : > { %v2355_v12 = vsub.f32 1.0, %v2323_v4  ;;  %3258 = vrcp.f32 %v1816_v14  ;;  %v3946_v52 = vmul.f32 0.70710677, %v3933_v49  ;;  %v911_v54 = vadd.f32 %v879_v29, %v778_v10  ;;  %v3257_v58 = vpop.eup %3256 }
 0x118   : > { %v2356_v38 = vsub.f32 1.0, %v2324_v6  ;;  %v2102_v20 = vmul.f32 %v3878_v21, %v2070_v7  ;;  %v2165_v31 = vmul.f32 %v3866_v26, %v2133_v13  ;;  %v1943_v60 = vadd.f32 -1.4531521, %v1911_v11 }
 0x119   : > { %v2419_v35 = vsub.f32 0.0, %v2355_v12  ;;  %3260 = vpow2.f32 %v2267_v16  ;;  %v1753_v6 = vand.u32 2147483647, %v3946_v52  ;;  %v980_v7 = vmul.f32 %v3611_v53, %v3746_v62 }
 0x11a   : > { %v2420_v30 = vsub.f32 0.0, %v2356_v38  ;;  %v2134_v46 = vadd.f32 0.2548296, %v2102_v20  ;;  %v2325_v45 = vmul.f32 %v3888_v50, %v2165_v31  ;;  %v2232_v50 = vmul.f32 %v2200_v42, %v1752_v32  ;;  %v3968_v31 = vld [vmem:[#allocation2 + $0x80] sm:$0xff] }
 0x11b   : > { %v2451_v44 = vsel %vm2387_vm4, %v2355_v12, %v2419_v35  ;;  %v1975_v12 = vmul.f32 %v3935_v28, %v1943_v60  ;;  %v1785_v10 = vmul.f32 0.3275911, %v1753_v6  ;;  %v1012_v13 = vadd.f32 %v980_v7, %v911_v54  ;;  %v3976_v60 = vld [vmem:[#allocation2 + $0x81] sm:$0xff] }
 0x11c   : > { %v2483_v56 = vadd.f32 1.0, %v2451_v44  ;;  %v2452_v4 = vsel %vm2388_vm5, %v2356_v38, %v2420_v30  ;;  %v2166_v26 = vmul.f32 %v3878_v21, %v2134_v46  ;;  %v2357_v36 = vsub.f32 1.0, %v2325_v45 }
 0x11d   : > { %v2484_v51 = vadd.f32 1.0, %v2452_v4  ;;  %v2007_v38 = vadd.f32 1.4214138, %v1975_v12  ;;  %v1081_v16 = vmul.f32 %v3636_v5, %v3840_v15  ;;  %v1817_v20 = vadd.f32 1.0, %v1785_v10 }
 0x11e   : > { %v2515_v33 = vmul.f32 %v2483_v56, %v3814_v25  ;;  %v2326_v14 = vmul.f32 %v3257_v58, %v2166_v26  ;;  %v2421_v21 = vsub.f32 0.0, %v2357_v36  ;;  %v1686_v25 = vmul.f32 0.5, %v3770_v40 }
 0x11f   : > { %v2516_v1 = vmul.f32 %v2484_v51, %v3901_v9  ;;  %v2201_v62 = vsub.f32 0.0, %v1753_v6  ;;  %v2039_v32 = vmul.f32 %v3935_v28, %v2007_v38  ;;  %v1113_v29 = vadd.f32 %v1081_v16, %v1012_v13 }
 0x120   : > { %3183 = vmatprep.mubr.msk.f32.mxu1 %vm645_vm2, %v2515_v33  ;;  %v2358_v35 = vsub.f32 1.0, %v2326_v14  ;;  %v2453_v9 = vsel %vm2389_vm6, %v2357_v36, %v2421_v21  ;;  %v1182_v30 = vmul.f32 %v3626_v2, %v3846_v27  ;;  %v2269_v44 = vmul.f32 1.442695, %v2232_v50  ;;  %v3988_v36 = vld [vmem:[#allocation2 + $0x82] sm:$0xff] }
 0x121   : > { %3184 = vmatmul.mubr.msk.f32.vlgmr.msra.gmra.mxu1 %vm645_vm2, %v2516_v1  ;;  %v2485_v11 = vadd.f32 1.0, %v2453_v9  ;;  %3262 = vrcp.f32 %v1817_v20  ;;  %v2071_v40 = vadd.f32 -0.28449672, %v2039_v32  ;;  %v1283_v39 = vmul.f32 %v3631_v3, %v3860_v47 }
 0x122   : > { %v2422_v42 = vsub.f32 0.0, %v2358_v35  ;;  %v1214_v46 = vadd.f32 %v1182_v30, %v1113_v29  ;;  %v2233_v4 = vmul.f32 %v2201_v62, %v1753_v6  ;;  %v1385_v45 = vmul.f32 %v3671_v34, %v3968_v31 }
 0x123   : > { %v2517_v54 = vmul.f32 %v2485_v11, %v3927_v37  ;;  %v2103_v58 = vmul.f32 %v3935_v28, %v2071_v40  ;;  %v779_v33 = vmul.f32 %v3596_v41, %v3782_v57  ;;  %v3985_v37 = vmul.f32 0.5, %v3821_v61  ;;  %v4016_v40 = vld [vmem:[#allocation2 + $0x92] sm:$0xff] }
 0x124   : > { %v2454_v56 = vsel %vm2390_vm7, %v2358_v35, %v2422_v42  ;;  %v3978_v51 = vpop.eup %3258  ;;  %v1315_v55 = vadd.f32 %v1283_v39, %v1214_v46  ;;  %3264 = vpow2.f32 %v2269_v44  ;;  %v880_v12 = vmul.f32 %v3601_v43, %v3786_v63  ;;  %v4014_v44 = vld [vmem:[#allocation2 + $0x91] sm:$0xff] }
 0x125   : > { %v2486_v26 = vadd.f32 1.0, %v2454_v56  ;;  %3186 = vmatprep.mubr.msk.f32.mxu1 %vm645_vm2, %v2517_v54  ;;  %v1912_v6 = vmul.f32 1.0614054, %v3978_v51  ;;  %v2135_v1 = vadd.f32 0.2548296, %v2103_v58  ;;  %v1486_v50 = vmul.f32 %v3647_v18, %v3976_v60 }
 0x126   : > { %v1417_v14 = vadd.f32 %v1385_v45, %v1315_v55  ;;  %vm2391_vm8 = vcmp.ge.f32.partialorder %v3838_v0, 0.0  ;;  %v912_v10 = vadd.f32 %v880_v12, %v779_v33  ;;  %v981_v61 = vmul.f32 %v3611_v53, %v3797_v19  ;;  %v3261_v38 = vpop.eup %3260 }
 0x127   : > { %v2518_v7 = vmul.f32 %v2486_v26, %v1686_v25  ;;  %v1944_v57 = vadd.f32 -1.4531521, %v1912_v6  ;;  %v1082_v21 = vmul.f32 %v3636_v5, %v3886_v48  ;;  %v2167_v63 = vmul.f32 %v3935_v28, %v2135_v1  ;;  %v4010_v28 = vld [vmem:[#allocation2 + $0x90] sm:$0xff] }
 0x128   : > { %v2271_v13 = vmul.f32 1.442695, %v2233_v4  ;;  %v1518_v16 = vadd.f32 %v1486_v50, %v1417_v14  ;;  %v1587_v25 = vmul.f32 %v3654_v23, %v3988_v36  ;;  %v1013_v20 = vadd.f32 %v981_v61, %v912_v10 }
 0x129   : > { %3187 = vmatmul.mubr.msk.f32.gmra.mxu1 %vm645_vm2, %v2518_v7  ;;  %v1976_v35 = vmul.f32 %v3978_v51, %v1944_v57  ;;  %v780_v62 = vmul.f32 %v3596_v41, %v3840_v15  ;;  %v881_v19 = vmul.f32 %v3601_v43, %v3846_v27  ;;  %v2327_v9 = vmul.f32 %v3261_v38, %v2167_v63 }
 0x12a   : > { %v1619_v32 = vadd.f32 %v1587_v25, %v1518_v16  ;;  %v1183_v29 = vmul.f32 %v3626_v2, %v3898_v8  ;;  %v982_v30 = vmul.f32 %v3611_v53, %v3860_v47  ;;  %v1114_v42 = vadd.f32 %v1082_v21, %v1013_v20  ;;  %v4046_v16 = vld [vmem:[#allocation2 + $0x98] sm:$0xff] }
 0x12b   : > { %v2008_v11 = vadd.f32 1.4214138, %v1976_v35  ;;  %v913_v15 = vadd.f32 %v881_v19, %v780_v62  ;;  %v1083_v27 = vmul.f32 %v3636_v5, %v3968_v31  ;;  %v2359_v46 = vsub.f32 1.0, %v2327_v9 }
 0x12c   : > { %3266 = vpow2.f32 %v2271_v13  ;;  %v4021_v39 = vadd.f32 %v3712_v24, %v1619_v32  ;;  %v1284_v54 = vmul.f32 %v3631_v3, %v3912_v22  ;;  %v1215_v56 = vadd.f32 %v1183_v29, %v1114_v42  ;;  %v4054_v32 = vld [vmem:[#allocation2 + $0x99] sm:$0xff] }
 0x12d   : > { %v2040_v47 = vmul.f32 %v3978_v51, %v2008_v11  ;;  %v1386_v4 = vmul.f32 %v3671_v34, %v4010_v28  ;;  %v1014_v45 = vadd.f32 %v982_v30, %v913_v15  ;;  %v2423_v58 = vsub.f32 0.0, %v2359_v46 }
 0x12e   : > { %v4028_v26 = vpop.eup %3262  ;;  %v4031_v55 = vmul.f32 0.70710677, %v4021_v39  ;;  %v1487_v33 = vmul.f32 %v3647_v18, %v4014_v44  ;;  %v1588_v6 = vmul.f32 %v3654_v23, %v4016_v40  ;;  %v1316_v1 = vadd.f32 %v1284_v54, %v1215_v56 }
 0x12f   : > { %v2072_v12 = vadd.f32 -0.28449672, %v2040_v47  ;;  %v1913_v7 = vmul.f32 1.0614054, %v4028_v26  ;;  %v1115_v14 = vadd.f32 %v1083_v27, %v1014_v45  ;;  %v2455_v50 = vsel %vm2391_vm8, %v2359_v46, %v2423_v58 }
 0x130   : > { %v1754_v57 = vand.u32 2147483647, %v4031_v55  ;;  %v1184_v10 = vmul.f32 %v3626_v2, %v3976_v60  ;;  %v781_v61 = vmul.f32 %v3596_v41, %v3886_v48  ;;  %v2487_v21 = vadd.f32 1.0, %v2455_v50 }
 0x131   : > { %v2104_v38 = vmul.f32 %v3978_v51, %v2072_v12  ;;  %v1945_v63 = vadd.f32 -1.4531521, %v1913_v7  ;;  %v1418_v13 = vadd.f32 %v1386_v4, %v1316_v1  ;;  %v3265_v25 = vpop.eup %3264  ;;  %v1285_v0 = vmul.f32 %v3631_v3, %v3988_v36 }
 0x132   : > { %v1786_v35 = vmul.f32 0.3275911, %v1754_v57  ;;  %v1216_v20 = vadd.f32 %v1184_v10, %v1115_v14  ;;  %v882_v62 = vmul.f32 %v3601_v43, %v3898_v8  ;;  %v2519_v19 = vmul.f32 %v2487_v21, %v3985_v37  ;;  %v4060_v8 = vld [vmem:[#allocation2 + $0x9a] sm:$0xff] }
 0x133   : > { %v2136_v9 = vadd.f32 0.2548296, %v2104_v38  ;;  %v1977_v41 = vmul.f32 %v4028_v26, %v1945_v63  ;;  %v1519_v48 = vadd.f32 %v1487_v33, %v1418_v13  ;;  %v1387_v11 = vmul.f32 %v3671_v34, %v4046_v16  ;;  %v4083_v38 = vld [vmem:[#allocation2 + $0xa8] sm:$0xff] }
 0x134   : > { %v1818_v29 = vadd.f32 1.0, %v1786_v35  ;;  %v1317_v30 = vadd.f32 %v1285_v0, %v1216_v20  ;;  %v914_v42 = vadd.f32 %v882_v62, %v781_v61  ;;  %3189 = vmatprep.mubr.msk.f32.mxu1 %vm645_vm2, %v2519_v19  ;;  %v983_v37 = vmul.f32 %v3611_v53, %v3912_v22  ;;  %v4090_v35 = vld [vmem:[#allocation2 + $0xa9] sm:$0xff]  ;;  %v4095_v0 = vld [vmem:[%s5262_s3] ss:$0 sm:$0xff] }
 0x135   : > { %v2168_v15 = vmul.f32 %v3978_v51, %v2136_v9  ;;  %v2009_v27 = vadd.f32 1.4214138, %v1977_v41  ;;  %v1620_v43 = vadd.f32 %v1588_v6, %v1519_v48  ;;  %v1488_v54 = vmul.f32 %v3647_v18, %v4054_v32 }
 0x136   : > { %3268 = vrcp.f32 %v1818_v29  ;;  %v1419_v46 = vadd.f32 %v1387_v11, %v1317_v30  ;;  %v1084_v47 = vmul.f32 %v3636_v5, %v4010_v28  ;;  %v1015_v45 = vadd.f32 %v983_v37, %v914_v42  ;;  %v4107_v30 = vld [vmem:[#allocation2 + $0xaa] sm:$0xff] }
 0x137   : > { %v2328_v56 = vmul.f32 %v3265_v25, %v2168_v15  ;;  %v2041_v4 = vmul.f32 %v4028_v26, %v2009_v27  ;;  %v4070_v51 = vadd.f32 %v3712_v24, %v1620_v43  ;;  %v2202_v58 = vsub.f32 0.0, %v1754_v57 }
 0x138   : > { %v1520_v33 = vadd.f32 %v1488_v54, %v1419_v46  ;;  %v1589_v53 = vmul.f32 %v3654_v23, %v4060_v8  ;;  %v1688_v5 = vmul.f32 0.5, %v3896_v59  ;;  %v1116_v14 = vadd.f32 %v1084_v47, %v1015_v45  ;;  %v4126_v45 = vld [vmem:[%s5262_s3 + $0x2] ss:$0 sm:$0xff] }
 0x139   : > { %v3267_v22 = vpop.eup %3266  ;;  %v2360_v6 = vsub.f32 1.0, %v2328_v56  ;;  %v2073_v12 = vadd.f32 -0.28449672, %v2041_v4  ;;  %v4075_v7 = vmul.f32 0.70710677, %v4070_v51  ;;  %v1185_v50 = vmul.f32 %v3626_v2, %v4014_v44 }
 0x13a   : > { %v1621_v1 = vadd.f32 %v1589_v53, %v1520_v33  ;;  %vm2392_vm9 = vcmp.ge.f32.partialorder %v3910_v17, 0.0  ;;  %v2234_v63 = vmul.f32 %v2202_v58, %v1754_v57  ;;  %v1286_v59 = vmul.f32 %v3631_v3, %v4016_v40  ;;  %v4133_v58 = vld [vmem:[%s5262_s3 + $0x3] ss:$0 sm:$0xff] }
 0x13b   : > { %v2424_v10 = vsub.f32 0.0, %v2360_v6  ;;  %v2105_v61 = vmul.f32 %v4028_v26, %v2073_v12  ;;  %v1755_v21 = vand.u32 2147483647, %v4075_v7  ;;  %v1217_v25 = vadd.f32 %v1185_v50, %v1116_v14 }
 0x13c   : > { %v4086_v13 = vadd.f32 %v3712_v24, %v1621_v1  ;;  %v782_v57 = vmul.f32 %v4095_v0, %v3968_v31  ;;  %v1388_v3 = vmul.f32 %v3671_v34, %v4083_v38  ;;  %v1489_v29 = vmul.f32 %v3647_v18, %v4090_v35  ;;  %v4112_v31 = vld [vmem:[%s5262_s3 + $0x1] ss:$0 sm:$0xff] }
 0x13d   : > { %v2456_v2 = vsel %vm2392_vm9, %v2360_v6, %v2424_v10  ;;  %v2137_v20 = vadd.f32 0.2548296, %v2105_v61  ;;  %v1787_v17 = vmul.f32 0.3275911, %v1755_v21  ;;  %v1318_v9 = vadd.f32 %v1286_v59, %v1217_v25 }
 0x13e   : > { %v2488_v62 = vadd.f32 1.0, %v2456_v2  ;;  %v4100_v19 = vmul.f32 0.70710677, %v4086_v13  ;;  %v883_v11 = vmul.f32 %v4112_v31, %v3976_v60  ;;  %v2203_v15 = vsub.f32 0.0, %v1755_v21 }
 0x13f   : > { %v2169_v41 = vmul.f32 %v4028_v26, %v2137_v20  ;;  %v1819_v48 = vadd.f32 1.0, %v1787_v17  ;;  %v1420_v27 = vadd.f32 %v1388_v3, %v1318_v9  ;;  %v1689_v26 = vmul.f32 0.5, %v3933_v49 }
 0x140   : > { %v2520_v42 = vmul.f32 %v2488_v62, %v1688_v5  ;;  %v1756_v34 = vand.u32 2147483647, %v4100_v19  ;;  %v915_v18 = vadd.f32 %v883_v11, %v782_v57  ;;  %v1590_v47 = vmul.f32 %v3654_v23, %v4107_v30  ;;  %v4165_v57 = vld [vmem:[#allocation2 + $0xb1] sm:$0xff] }
 0x141   : > { %v2329_v43 = vmul.f32 %v3267_v22, %v2169_v41  ;;  %3270 = vrcp.f32 %v1819_v48  ;;  %v1521_v54 = vadd.f32 %v1489_v29, %v1420_v27  ;;  %v2273_v4 = vmul.f32 1.442695, %v2234_v63  ;;  %v4174_v29 = vld [vmem:[%s5262_s3 + $0x6] ss:$0 sm:$0xff] }
 0x142   : > { %3190 = vmatmul.mubr.msk.f32.gmra.mxu1 %vm645_vm2, %v2520_v42  ;;  %v1788_v37 = vmul.f32 0.3275911, %v1756_v34  ;;  %v2204_v46 = vsub.f32 0.0, %v1756_v34  ;;  %v984_v49 = vmul.f32 %v4126_v45, %v3988_v36  ;;  %v1085_v23 = vmul.f32 %v4133_v58, %v4046_v16  ;;  %v4178_v42 = vld [vmem:[#allocation2 + $0xb2] sm:$0xff] }
 0x143   : > { %v4121_v56 = vpop.eup %3268  ;;  %v2361_v60 = vsub.f32 1.0, %v2329_v43  ;;  %v2235_v53 = vmul.f32 %v2203_v15, %v1755_v21  ;;  %v1622_v6 = vadd.f32 %v1590_v47, %v1521_v54  ;;  %vm2393_vm10 = vcmp.ge.f32.partialorder %v3946_v52, 0.0  ;;  %v4148_v21 = vld [vmem:[%s5262_s3 + $0x4] ss:$0 sm:$0xff] }
 0x144   : > { %v1914_v33 = vmul.f32 1.0614054, %v4121_v56  ;;  %v1820_v22 = vadd.f32 1.0, %v1788_v37  ;;  %v4140_v5 = vmul.f32 0.5, %v4021_v39  ;;  %v1016_v36 = vadd.f32 %v984_v49, %v915_v18  ;;  %v4152_v39 = vld [vmem:[#allocation2 + $0xb0] sm:$0xff] }
 0x145   : > { %v2425_v12 = vsub.f32 0.0, %v2361_v60  ;;  %v2236_v14 = vmul.f32 %v2204_v46, %v1756_v34  ;;  %v4143_v50 = vadd.f32 %v3712_v24, %v1622_v6  ;;  %v1186_v52 = vmul.f32 %v4148_v21, %v4054_v32  ;;  %v4158_v24 = vld [vmem:[%s5262_s3 + $0x5] ss:$0 sm:$0xff] }
 0x146   : > { %v1946_v1 = vadd.f32 -1.4531521, %v1914_v33  ;;  %3272 = vrcp.f32 %v1820_v22  ;;  %v1117_v61 = vadd.f32 %v1085_v23, %v1016_v36  ;;  %v2275_v59 = vmul.f32 1.442695, %v2235_v53 }
 0x147   : > { %v2457_v10 = vsel %vm2393_vm10, %v2361_v60, %v2425_v12  ;;  %3274 = vpow2.f32 %v2273_v4  ;;  %v1287_v2 = vmul.f32 %v4158_v24, %v4060_v8  ;;  %v4163_v20 = vmul.f32 0.70710677, %v4143_v50 }
 0x148   : > { %v2489_v63 = vadd.f32 1.0, %v2457_v10  ;;  %v1978_v25 = vmul.f32 %v4121_v56, %v1946_v1  ;;  %v1218_v17 = vadd.f32 %v1186_v52, %v1117_v61  ;;  %v783_v62 = vmul.f32 %v4095_v0, %v4010_v28  ;;  %v4213_v10 = vld [vmem:[#allocation2 + $0xc1] sm:$0xff] }
 0x149   : > { %v884_v9 = vmul.f32 %v4112_v31, %v4014_v44  ;;  %v2277_v48 = vmul.f32 1.442695, %v2236_v14  ;;  %v1389_v11 = vmul.f32 %v4174_v29, %v4152_v39  ;;  %v1757_v15 = vand.u32 2147483647, %v4163_v20  ;;  %v4211_v14 = vld [vmem:[#allocation2 + $0xc0] sm:$0xff] }
 0x14a   : > { %v2521_v3 = vmul.f32 %v2489_v63, %v1689_v26  ;;  %v2010_v41 = vadd.f32 1.4214138, %v1978_v25  ;;  %v1319_v34 = vadd.f32 %v1287_v2, %v1218_v17  ;;  %v985_v44 = vmul.f32 %v4126_v45, %v4016_v40  ;;  %v4188_v26 = vld [vmem:[%s5262_s3 + $0x7] ss:$0 sm:$0xff]  ;;  %v4197_v40 = vld [vmem:[%s5262_s3 + $0x8] ss:$0 sm:$0xff] }
 0x14b   : > { %v916_v28 = vadd.f32 %v884_v9, %v783_v62  ;;  %3276 = vpow2.f32 %v2275_v59  ;;  %v1490_v43 = vmul.f32 %v4188_v26, %v4165_v57  ;;  %v1086_v18 = vmul.f32 %v4133_v58, %v4083_v38 }
 0x14c   : > { %3192 = vmatprep.mubr.msk.f32.mxu1 %vm645_vm2, %v2521_v3  ;;  %v2042_v27 = vmul.f32 %v4121_v56, %v2010_v41  ;;  %v1789_v37 = vmul.f32 0.3275911, %v1757_v15  ;;  %v1421_v46 = vadd.f32 %v1389_v11, %v1319_v34  ;;  %v1591_v54 = vmul.f32 %v4197_v40, %v4178_v42 }
 0x14d   : > { %v1017_v47 = vadd.f32 %v985_v44, %v916_v28  ;;  %3278 = vpow2.f32 %v2277_v48  ;;  %v1187_v49 = vmul.f32 %v4148_v21, %v4090_v35  ;;  %v784_v23 = vmul.f32 %v4095_v0, %v4046_v16  ;;  %v4239_v44 = vld [vmem:[#allocation2 + $0xc2] sm:$0xff] }
 0x14e   : > { %v4201_v60 = vpop.eup %3270  ;;  %v2074_v4 = vadd.f32 -0.28449672, %v2042_v27  ;;  %v1821_v53 = vadd.f32 1.0, %v1789_v37  ;;  %v1522_v22 = vadd.f32 %v1490_v43, %v1421_v46  ;;  %v1288_v6 = vmul.f32 %v4158_v24, %v4107_v30 }
 0x14f   : > { %v1915_v33 = vmul.f32 1.0614054, %v4201_v60  ;;  %v2205_v36 = vsub.f32 0.0, %v1757_v15  ;;  %v1118_v1 = vadd.f32 %v1086_v18, %v1017_v47  ;;  %v885_v61 = vmul.f32 %v4112_v31, %v4054_v32  ;;  %v4228_v32 = vld [vmem:[%s5263_s4] ss:$0 sm:$0xff] }
 0x150   : > { %v2106_v12 = vmul.f32 %v4121_v56, %v2074_v4  ;;  %3280 = vrcp.f32 %v1821_v53  ;;  %v1623_v16 = vadd.f32 %v1591_v54, %v1522_v22  ;;  %v986_v63 = vmul.f32 %v4126_v45, %v4060_v8 }
 0x151   : > { %v1947_v52 = vadd.f32 -1.4531521, %v1915_v33  ;;  %v1219_v59 = vadd.f32 %v1187_v49, %v1118_v1  ;;  %v917_v2 = vadd.f32 %v885_v61, %v784_v23  ;;  %v1087_v17 = vmul.f32 %v4133_v58, %v4152_v39  ;;  %v4246_v23 = vld [vmem:[#allocation2 + $0xc8] sm:$0xff] }
 0x152   : > { %v2138_v25 = vadd.f32 0.2548296, %v2106_v12  ;;  %vm2394_vm11 = vcmp.ge.f32.partialorder %v4031_v55, 0.0  ;;  %v4231_v3 = vadd.f32 %v4228_v32, %v1623_v16  ;;  %v1390_v8 = vmul.f32 %v4174_v29, %v4211_v14  ;;  %v4255_v1 = vld [vmem:[#allocation2 + $0xc9] sm:$0xff] }
 0x153   : > { %v4221_v62 = vpop.eup %3272  ;;  %v1979_v9 = vmul.f32 %v4201_v60, %v1947_v52  ;;  %v1491_v41 = vmul.f32 %v4188_v26, %v4213_v10  ;;  %v1320_v28 = vadd.f32 %v1288_v6, %v1219_v59  ;;  %v1018_v27 = vadd.f32 %v986_v63, %v917_v2 }
 0x154   : > { %v3275_v48 = vpop.eup %3274  ;;  %v2170_v11 = vmul.f32 %v4121_v56, %v2138_v25  ;;  %v1916_v34 = vmul.f32 1.0614054, %v4221_v62  ;;  %v2237_v18 = vmul.f32 %v2205_v36, %v1757_v15  ;;  %v4242_v37 = vmul.f32 0.70710677, %v4231_v3 }
 0x155   : > { %v2011_v43 = vadd.f32 1.4214138, %v1979_v9  ;;  %v1188_v46 = vmul.f32 %v4148_v21, %v4165_v57  ;;  %v1422_v4 = vadd.f32 %v1390_v8, %v1320_v28  ;;  %v1119_v49 = vadd.f32 %v1087_v17, %v1018_v27  ;;  %v4262_v28 = vld [vmem:[#allocation2 + $0xca] sm:$0xff] }
 0x156   : > { %v2330_v54 = vmul.f32 %v3275_v48, %v2170_v11  ;;  %v1948_v47 = vadd.f32 -1.4531521, %v1916_v34  ;;  %v1758_v33 = vand.u32 2147483647, %v4242_v37  ;;  %v1592_v53 = vmul.f32 %v4197_v40, %v4239_v44 }
 0x157   : > { %v2043_v56 = vmul.f32 %v4201_v60, %v2011_v43  ;;  %v1289_v15 = vmul.f32 %v4158_v24, %v4178_v42  ;;  %v1523_v12 = vadd.f32 %v1491_v41, %v1422_v4  ;;  %v1220_v36 = vadd.f32 %v1188_v46, %v1119_v49 }
 0x158   : > { %v2362_v22 = vsub.f32 1.0, %v2330_v54  ;;  %v1980_v6 = vmul.f32 %v4221_v62, %v1948_v47  ;;  %v3277_v61 = vpop.eup %3276  ;;  %v2279_v16 = vmul.f32 1.442695, %v2237_v18  ;;  %v1790_v63 = vmul.f32 0.3275911, %v1758_v33 }
 0x159   : > { %v2075_v52 = vadd.f32 -0.28449672, %v2043_v56  ;;  %v1391_v25 = vmul.f32 %v4174_v29, %v4246_v23  ;;  %v1624_v17 = vadd.f32 %v1592_v53, %v1523_v12  ;;  %v1321_v9 = vadd.f32 %v1289_v15, %v1220_v36 }
 0x15a   : > { %v2426_v59 = vsub.f32 0.0, %v2362_v22  ;;  %v2012_v2 = vadd.f32 1.4214138, %v1980_v6  ;;  %v3279_v8 = vpop.eup %3278  ;;  %v1822_v11 = vadd.f32 1.0, %v1790_v63  ;;  %v2206_v34 = vsub.f32 0.0, %v1758_v33 }
 0x15b   : > { %v2107_v48 = vmul.f32 %v4201_v60, %v2075_v52  ;;  %v1492_v41 = vmul.f32 %v4188_v26, %v4255_v1  ;;  %v4268_v18 = vadd.f32 %v4228_v32, %v1624_v17  ;;  %v1423_v46 = vadd.f32 %v1391_v25, %v1321_v9 }
 0x15c   : > { %v2458_v27 = vsel %vm2394_vm11, %v2362_v22, %v2426_v59  ;;  %v2044_v43 = vmul.f32 %v4221_v62, %v2012_v2  ;;  %v1691_v47 = vmul.f32 0.5, %v4070_v51  ;;  %3282 = vrcp.f32 %v1822_v11 }
 0x15d   : > { %v2490_v54 = vadd.f32 1.0, %v2458_v27  ;;  %v2139_v4 = vadd.f32 0.2548296, %v2107_v48  ;;  %v4271_v49 = vpop.eup %3280  ;;  %v4274_v53 = vmul.f32 0.70710677, %v4268_v18  ;;  %v1524_v15 = vadd.f32 %v1492_v41, %v1423_v46 }
 0x15e   : > { %v2076_v56 = vadd.f32 -0.28449672, %v2044_v43  ;;  %v1593_v55 = vmul.f32 %v4197_v40, %v4262_v28  ;;  %v1917_v12 = vmul.f32 1.0614054, %v4271_v49  ;;  %3284 = vpow2.f32 %v2279_v16 }
 0x15f   : > { %v2522_v22 = vmul.f32 %v2490_v54, %v4140_v5  ;;  %v2171_v6 = vmul.f32 %v4201_v60, %v2139_v4  ;;  %v2238_v36 = vmul.f32 %v2206_v34, %v1758_v33  ;;  %v1759_v52 = vand.u32 2147483647, %v4274_v53 }
 0x160   : > { %v2108_v51 = vmul.f32 %v4221_v62, %v2076_v56  ;;  %v1625_v63 = vadd.f32 %v1593_v55, %v1524_v15  ;;  %v1949_v59 = vadd.f32 -1.4531521, %v1917_v12  ;;  %v785_v2 = vmul.f32 %v4095_v0, %v4083_v38 }
 0x161   : > { %3193 = vmatmul.mubr.msk.f32.gmra.mxu1 %vm645_vm2, %v2522_v22  ;;  %v2331_v25 = vmul.f32 %v3277_v61, %v2171_v6  ;;  %v886_v5 = vmul.f32 %v4112_v31, %v4090_v35  ;;  %v1791_v17 = vmul.f32 0.3275911, %v1759_v52  ;;  %v2207_v9 = vsub.f32 0.0, %v1759_v52 }
 0x162   : > { %v2140_v60 = vadd.f32 0.2548296, %v2108_v51  ;;  %v4289_v16 = vadd.f32 %v4228_v32, %v1625_v63  ;;  %v1981_v48 = vmul.f32 %v4271_v49, %v1949_v59  ;;  %v987_v61 = vmul.f32 %v4126_v45, %v4107_v30  ;;  %v4308_v51 = vld [vmem:[#allocation2 + $0xd8] sm:$0xff] }
 0x163   : > { %v2363_v33 = vsub.f32 1.0, %v2331_v25  ;;  %v918_v11 = vadd.f32 %v886_v5, %v785_v2  ;;  %vm2395_vm12 = vcmp.ge.f32.partialorder %v4075_v7, 0.0  ;;  %v2281_v34 = vmul.f32 1.442695, %v2238_v36 }
 0x164   : > { %v2172_v38 = vmul.f32 %v4221_v62, %v2140_v60  ;;  %v1823_v41 = vadd.f32 1.0, %v1791_v17  ;;  %v2013_v27 = vadd.f32 1.4214138, %v1981_v48  ;;  %v4297_v43 = vmul.f32 0.70710677, %v4289_v16 }
 0x165   : > { %v2427_v35 = vsub.f32 0.0, %v2363_v33  ;;  %v1019_v46 = vadd.f32 %v987_v61, %v918_v11  ;;  %v1692_v54 = vmul.f32 0.5, %v4086_v13  ;;  %v1088_v56 = vmul.f32 %v4133_v58, %v4211_v14  ;;  %v4323_v11 = vld [vmem:[#allocation2 + $0xd9] sm:$0xff] }
 0x166   : > { %v2332_v4 = vmul.f32 %v3279_v8, %v2172_v38  ;;  %3286 = vrcp.f32 %v1823_v41  ;;  %v2045_v7 = vmul.f32 %v4271_v49, %v2013_v27  ;;  %v2239_v15 = vmul.f32 %v2207_v9, %v1759_v52 }
 0x167   : > { %v2459_v30 = vsel %vm2395_vm12, %v2363_v33, %v2427_v35  ;;  %v1760_v62 = vand.u32 2147483647, %v4297_v43  ;;  %vm2396_vm13 = vcmp.ge.f32.partialorder %v4100_v19, 0.0  ;;  %v1120_v6 = vadd.f32 %v1088_v56, %v1019_v46 }
 0x168   : > { %v2491_v55 = vadd.f32 1.0, %v2459_v30  ;;  %v2364_v22 = vsub.f32 1.0, %v2332_v4  ;;  %v4306_v12 = vmul.f32 0.5, %v4143_v50  ;;  %v2077_v13 = vadd.f32 -0.28449672, %v2045_v7  ;;  %v4334_v7 = vld [vmem:[#allocation2 + $0xda] sm:$0xff] }
 0x169   : > { %3288 = vpow2.f32 %v2281_v34  ;;  %v1792_v8 = vmul.f32 0.3275911, %v1760_v62  ;;  %v4310_v36 = vpop.eup %3282  ;;  %v2208_v52 = vsub.f32 0.0, %v1760_v62  ;;  %v1189_v59 = vmul.f32 %v4148_v21, %v4213_v10 }
 0x16a   : > { %v2523_v63 = vmul.f32 %v2491_v55, %v1691_v47  ;;  %v2428_v25 = vsub.f32 0.0, %v2364_v22  ;;  %v2109_v2 = vmul.f32 %v4271_v49, %v2077_v13  ;;  %v1918_v5 = vmul.f32 1.0614054, %v4310_v36 }
 0x16b   : > { %v2283_v60 = vmul.f32 1.442695, %v2239_v15  ;;  %v1824_v50 = vadd.f32 1.0, %v1792_v8  ;;  %v3285_v17 = vpop.eup %3284  ;;  %v1221_v33 = vadd.f32 %v1189_v59, %v1120_v6  ;;  %v1290_v47 = vmul.f32 %v4158_v24, %v4239_v44 }
 0x16c   : > { %3195 = vmatprep.mubr.msk.f32.mxu1 %vm645_vm2, %v2523_v63  ;;  %v2460_v9 = vsel %vm2396_vm13, %v2364_v22, %v2428_v25  ;;  %v1392_v48 = vmul.f32 %v4174_v29, %v4308_v51  ;;  %v2141_v38 = vadd.f32 0.2548296, %v2109_v2  ;;  %v1950_v34 = vadd.f32 -1.4531521, %v1918_v5  ;;  %v4346_v63 = vld [vmem:[#allocation2 + $0xe0] sm:$0xff] }
 0x16d   : > { %v2492_v61 = vadd.f32 1.0, %v2460_v9  ;;  %3290 = vrcp.f32 %v1824_v50  ;;  %vm2397_vm14 = vcmp.ge.f32.partialorder %v4163_v20, 0.0  ;;  %v2240_v41 = vmul.f32 %v2208_v52, %v1760_v62 }
 0x16e   : > { %v1322_v35 = vadd.f32 %v1290_v47, %v1221_v33  ;;  %v786_v19 = vmul.f32 %v4095_v0, %v4152_v39  ;;  %v887_v27 = vmul.f32 %v4112_v31, %v4165_v57  ;;  %v2173_v4 = vmul.f32 %v4271_v49, %v2141_v38 }
 0x16f   : > { %v2524_v46 = vmul.f32 %v2492_v61, %v1692_v54  ;;  %v1982_v56 = vmul.f32 %v4310_v36, %v1950_v34  ;;  %v1493_v30 = vmul.f32 %v4188_v26, %v4323_v11  ;;  %v988_v62 = vmul.f32 %v4126_v45, %v4178_v42 }
 0x170   : > { %v1424_v15 = vadd.f32 %v1392_v48, %v1322_v35  ;;  %v919_v55 = vadd.f32 %v887_v27, %v786_v19  ;;  %v1089_v39 = vmul.f32 %v4133_v58, %v4246_v23  ;;  %v2333_v57 = vmul.f32 %v3285_v17, %v2173_v4  ;;  %v4362_v48 = vld [vmem:[#allocation2 + $0xe1] sm:$0xff] }
 0x171   : > { %3196 = vmatmul.mubr.msk.f32.gmra.mxu1 %vm645_vm2, %v2524_v46  ;;  %v4342_v49 = vmul.f32 0.5, %v4231_v3  ;;  %v2014_v54 = vadd.f32 1.4214138, %v1982_v56  ;;  %3292 = vpow2.f32 %v2283_v60  ;;  %v2285_v22 = vmul.f32 1.442695, %v2240_v41  ;;  %v4367_v41 = vld [vmem:[#allocation2 + $0xe2] sm:$0xff] }
 0x172   : > { %v1525_v6 = vadd.f32 %v1493_v30, %v1424_v15  ;;  %v1594_v13 = vmul.f32 %v4197_v40, %v4334_v7  ;;  %v1020_v8 = vadd.f32 %v988_v62, %v919_v55  ;;  %v2365_v25 = vsub.f32 1.0, %v2333_v57 }
 0x173   : > { %v4348_v42 = vpop.eup %3286  ;;  %v2046_v52 = vmul.f32 %v4310_v36, %v2014_v54  ;;  %v1190_v59 = vmul.f32 %v4148_v21, %v4255_v1  ;;  %v787_v3 = vmul.f32 %v4095_v0, %v4211_v14  ;;  %v888_v50 = vmul.f32 %v4112_v31, %v4213_v10 }
 0x174   : > { %v1919_v2 = vmul.f32 1.0614054, %v4348_v42  ;;  %v1626_v5 = vadd.f32 %v1594_v13, %v1525_v6  ;;  %v1121_v60 = vadd.f32 %v1089_v39, %v1020_v8  ;;  %v2429_v17 = vsub.f32 0.0, %v2365_v25 }
 0x175   : > { %v2078_v9 = vadd.f32 -0.28449672, %v2046_v52  ;;  %v1291_v33 = vmul.f32 %v4158_v24, %v4262_v28  ;;  %v1393_v47 = vmul.f32 %v4174_v29, %v4346_v63  ;;  %v920_v35 = vadd.f32 %v888_v50, %v787_v3  ;;  %v4393_v3 = vld [vmem:[#allocation2 + $0xf0] sm:$0xff] }
 0x176   : > { %v3289_v61 = vpop.eup %3288  ;;  %v1951_v38 = vadd.f32 -1.4531521, %v1919_v2  ;;  %v4365_v14 = vadd.f32 %v4228_v32, %v1626_v5  ;;  %v1222_v34 = vadd.f32 %v1190_v59, %v1121_v60  ;;  %v2461_v10 = vsel %vm2397_vm14, %v2365_v25, %v2429_v17 }
 0x177   : > { %v2110_v19 = vmul.f32 %v4310_v36, %v2078_v9  ;;  %v989_v27 = vmul.f32 %v4126_v45, %v4239_v44  ;;  %v1090_v46 = vmul.f32 %v4133_v58, %v4308_v51  ;;  %v2493_v4 = vadd.f32 1.0, %v2461_v10 }
 0x178   : > { %v1983_v56 = vmul.f32 %v4348_v42, %v1951_v38  ;;  %v4378_v30 = vmul.f32 0.70710677, %v4365_v14  ;;  %v1494_v15 = vmul.f32 %v4188_v26, %v4362_v48  ;;  %v1323_v20 = vadd.f32 %v1291_v33, %v1222_v34 }
 0x179   : > { %v2142_v55 = vadd.f32 0.2548296, %v2110_v19  ;;  %v1595_v62 = vmul.f32 %v4197_v40, %v4367_v41  ;;  %v1021_v39 = vadd.f32 %v989_v27, %v920_v35  ;;  %v2525_v44 = vmul.f32 %v2493_v4, %v4306_v12  ;;  %v4404_v4 = vld [vmem:[#allocation2 + $0xf2] sm:$0xff] }
 0x17a   : > { %v4384_v57 = vpop.eup %3290  ;;  %vm2398_vm15 = vcmp.ge.f32.partialorder %v4242_v37, 0.0  ;;  %v2015_v54 = vadd.f32 1.4214138, %v1983_v56  ;;  %v1761_v6 = vand.u32 2147483647, %v4378_v30  ;;  %v1191_v13 = vmul.f32 %v4148_v21, %v4323_v11 }
 0x17b   : > { %v2174_v8 = vmul.f32 %v4310_v36, %v2142_v55  ;;  %v1920_v25 = vmul.f32 1.0614054, %v4384_v57  ;;  %v1425_v52 = vadd.f32 %v1393_v47, %v1323_v20  ;;  %v1122_v59 = vadd.f32 %v1090_v46, %v1021_v39  ;;  %3198 = vmatprep.mubr.msk.f32.mxu1 %vm645_vm2, %v2525_v44  ;;  %v4402_v46 = vld [vmem:[#allocation2 + $0xf1] sm:$0xff] }
 0x17c   : > { %v2047_v12 = vmul.f32 %v4348_v42, %v2015_v54  ;;  %v1793_v2 = vmul.f32 0.3275911, %v1761_v6  ;;  %v2209_v5 = vsub.f32 0.0, %v1761_v6  ;;  %v1292_v60 = vmul.f32 %v4158_v24, %v4334_v7 }
 0x17d   : > { %v2334_v50 = vmul.f32 %v3289_v61, %v2174_v8  ;;  %v1952_v17 = vadd.f32 -1.4531521, %v1920_v25  ;;  %v1526_v9 = vadd.f32 %v1494_v15, %v1425_v52  ;;  %v1223_v33 = vadd.f32 %v1191_v13, %v1122_v59 }
 0x17e   : > { %v3293_v36 = vpop.eup %3292  ;;  %v2079_v38 = vadd.f32 -0.28449672, %v2047_v12  ;;  %3294 = vpow2.f32 %v2285_v22  ;;  %v1825_v47 = vadd.f32 1.0, %v1793_v2  ;;  %v1394_v34 = vmul.f32 %v4174_v29, %v4393_v3 }
 0x17f   : > { %v2366_v35 = vsub.f32 1.0, %v2334_v50  ;;  %v1984_v10 = vmul.f32 %v4384_v57, %v1952_v17  ;;  %v1627_v19 = vadd.f32 %v1595_v62, %v1526_v9  ;;  %v1324_v27 = vadd.f32 %v1292_v60, %v1223_v33 }
 0x180   : > { %v2111_v61 = vmul.f32 %v4348_v42, %v2079_v38  ;;  %3296 = vrcp.f32 %v1825_v47  ;;  %v2241_v56 = vmul.f32 %v2209_v5, %v1761_v6  ;;  %v788_v22 = vmul.f32 %v4095_v0, %v4246_v23 }
 0x181   : > { %v2430_v15 = vsub.f32 0.0, %v2366_v35  ;;  %v2016_v55 = vadd.f32 1.4214138, %v1984_v10  ;;  %v4410_v20 = vadd.f32 %v4228_v32, %v1627_v19  ;;  %v1426_v39 = vadd.f32 %v1394_v34, %v1324_v27 }
 0x182   : > { %v2143_v44 = vadd.f32 0.2548296, %v2111_v61  ;;  %v1495_v62 = vmul.f32 %v4188_v26, %v4402_v46  ;;  %v1596_v54 = vmul.f32 %v4197_v40, %v4404_v4  ;;  %v889_v13 = vmul.f32 %v4112_v31, %v4255_v1  ;;  %v4439_v61 = vld [vmem:[#allocation2 + $0xf8] sm:$0xff] }
 0x183   : > { %v2462_v6 = vsel %vm2398_vm15, %v2366_v35, %v2430_v15  ;;  %v2048_v23 = vmul.f32 %v4384_v57, %v2016_v55  ;;  %v4422_v8 = vmul.f32 0.70710677, %v4410_v20  ;;  %v990_v25 = vmul.f32 %v4126_v45, %v4262_v28  ;;  %v4446_v55 = vld [vmem:[#allocation2 + $0xf9] sm:$0xff] }
 0x184   : > { %v2494_v52 = vadd.f32 1.0, %v2462_v6  ;;  %v2175_v59 = vmul.f32 %v4348_v42, %v2143_v44  ;;  %v1527_v12 = vadd.f32 %v1495_v62, %v1426_v39  ;;  %v921_v2 = vadd.f32 %v889_v13, %v788_v22 }
 0x185   : > { %v2080_v5 = vadd.f32 -0.28449672, %v2048_v23  ;;  %v2287_v60 = vmul.f32 1.442695, %v2241_v56  ;;  %v1762_v1 = vand.u32 2147483647, %v4422_v8  ;;  %v1091_v37 = vmul.f32 %v4133_v58, %v4346_v63 }
 0x186   : > { %v2526_v50 = vmul.f32 %v2494_v52, %v4342_v49  ;;  %v2335_v17 = vmul.f32 %v3293_v36, %v2175_v59  ;;  %v1628_v9 = vadd.f32 %v1596_v54, %v1527_v12  ;;  %v1022_v33 = vadd.f32 %v990_v25, %v921_v2  ;;  %v4458_v12 = vld [vmem:[#allocation2 + $0xfa] sm:$0xff] }
 0x187   : > { %v1695_v38 = vmul.f32 0.5, %v4268_v18  ;;  %v2112_v28 = vmul.f32 %v4384_v57, %v2080_v5  ;;  %v1794_v47 = vmul.f32 0.3275911, %v1762_v1  ;;  %v2210_v42 = vsub.f32 0.0, %v1762_v1 }
 0x188   : > { %3199 = vmatmul.mubr.msk.f32.gmra.mxu1 %vm645_vm2, %v2526_v50  ;;  %v2367_v34 = vsub.f32 1.0, %v2335_v17  ;;  %v4435_v35 = vadd.f32 %v4228_v32, %v1628_v9  ;;  %v1123_v10 = vadd.f32 %v1091_v37, %v1022_v33  ;;  %v1192_v19 = vmul.f32 %v4148_v21, %v4362_v48 }
 0x189   : > { %v2144_v49 = vadd.f32 0.2548296, %v2112_v28  ;;  %3298 = vpow2.f32 %v2287_v60  ;;  %v1826_v36 = vadd.f32 1.0, %v1794_v47  ;;  %v2242_v27 = vmul.f32 %v2210_v42, %v1762_v1 }
 0x18a   : > { %v2431_v18 = vsub.f32 0.0, %v2367_v34  ;;  %v4442_v56 = vmul.f32 0.70710677, %v4435_v35  ;;  %v1224_v22 = vadd.f32 %v1192_v19, %v1123_v10  ;;  %v1293_v15 = vmul.f32 %v4158_v24, %v4367_v41 }
 0x18b   : > { %v3295_v39 = vpop.eup %3294  ;;  %vm2399_vm0 = vcmp.ge.f32.partialorder %v4274_v53, 0.0  ;;  %v2176_v44 = vmul.f32 %v4384_v57, %v2144_v49  ;;  %vm2400_vm3 = vcmp.ge.f32.partialorder %v4297_v43, 0.0  ;;  %3300 = vrcp.f32 %v1826_v36 }
 0x18c   : > { %v2463_v62 = vsel %vm2399_vm0, %v2367_v34, %v2431_v18  ;;  %v1763_v54 = vand.u32 2147483647, %v4442_v56  ;;  %v1325_v13 = vadd.f32 %v1293_v15, %v1224_v22  ;;  %v1395_v6 = vmul.f32 %v4174_v29, %v4439_v61 }
 0x18d   : > { %v4454_v23 = vpop.eup %3296  ;;  %v2495_v25 = vadd.f32 1.0, %v2463_v62  ;;  %v2336_v52 = vmul.f32 %v3295_v39, %v2176_v44  ;;  %v2289_v59 = vmul.f32 1.442695, %v2242_v27  ;;  %v1496_v53 = vmul.f32 %v4188_v26, %v4446_v55  ;;  %v4484_v62 = vld [vmem:[#allocation2 + $0x108] sm:$0xff] }
 0x18e   : > { %v1921_v57 = vmul.f32 1.0614054, %v4454_v23  ;;  %v1795_v2 = vmul.f32 0.3275911, %v1763_v54  ;;  %v2211_v5 = vsub.f32 0.0, %v1763_v54  ;;  %v1427_v60 = vadd.f32 %v1395_v6, %v1325_v13 }
 0x18f   : > { %v2527_v1 = vmul.f32 %v2495_v25, %v1695_v38  ;;  %v2368_v37 = vsub.f32 1.0, %v2336_v52  ;;  %v789_v50 = vmul.f32 %v4095_v0, %v4308_v51  ;;  %v890_v17 = vmul.f32 %v4112_v31, %v4323_v11 }
 0x190   : > { %v1953_v9 = vadd.f32 -1.4531521, %v1921_v57  ;;  %v1827_v33 = vadd.f32 1.0, %v1795_v2  ;;  %v1528_v28 = vadd.f32 %v1496_v53, %v1427_v60  ;;  %v1597_v47 = vmul.f32 %v4197_v40, %v4458_v12  ;;  %v4502_v60 = vld [vmem:[#allocation2 + $0x109] sm:$0xff] }
 0x191   : > { %3201 = vmatprep.mubr.msk.f32.mxu1 %vm645_vm2, %v2527_v1  ;;  %v2432_v42 = vsub.f32 0.0, %v2368_v37  ;;  %v922_v34 = vadd.f32 %v890_v17, %v789_v50  ;;  %v991_v38 = vmul.f32 %v4126_v45, %v4334_v7  ;;  %v1092_v10 = vmul.f32 %v4133_v58, %v4393_v3  ;;  %v4507_v50 = vld [vmem:[#allocation2 + $0x10a] sm:$0xff] }
 0x192   : > { %v1985_v51 = vmul.f32 %v4454_v23, %v1953_v9  ;;  %3302 = vrcp.f32 %v1827_v33  ;;  %v2243_v11 = vmul.f32 %v2211_v5, %v1763_v54  ;;  %v1629_v19 = vadd.f32 %v1597_v47, %v1528_v28 }
 0x193   : > { %v2464_v49 = vsel %vm2400_vm3, %v2368_v37, %v2432_v42  ;;  %v1023_v36 = vadd.f32 %v991_v38, %v922_v34  ;;  %v1696_v27 = vmul.f32 0.5, %v4289_v16  ;;  %v4480_v7 = vmul.f32 0.5, %v4365_v14 }
 0x194   : > { %v2496_v18 = vadd.f32 1.0, %v2464_v49  ;;  %v2017_v22 = vadd.f32 1.4214138, %v1985_v51  ;;  %v4477_v15 = vadd.f32 %v4228_v32, %v1629_v19  ;;  %3304 = vpow2.f32 %v2289_v59 }
 0x195   : > { %v1124_v39 = vadd.f32 %v1092_v10, %v1023_v36  ;;  %v1193_v44 = vmul.f32 %v4148_v21, %v4402_v46  ;;  %v2291_v16 = vmul.f32 1.442695, %v2243_v11  ;;  %v1294_v14 = vmul.f32 %v4158_v24, %v4404_v4 }
 0x196   : > { %v3299_v43 = vpop.eup %3298  ;;  %v2528_v54 = vmul.f32 %v2496_v18, %v1696_v27  ;;  %v2049_v13 = vmul.f32 %v4454_v23, %v2017_v22  ;;  %v4488_v6 = vmul.f32 0.70710677, %v4477_v15  ;;  %v790_v52 = vmul.f32 %v4095_v0, %v4346_v63  ;;  %v4523_v27 = vld [vmem:[#allocation2 + $0x110] sm:$0xff] }
 0x197   : > { %v1225_v25 = vadd.f32 %v1193_v44, %v1124_v39  ;;  %v891_v59 = vmul.f32 %v4112_v31, %v4362_v48  ;;  %v1396_v5 = vmul.f32 %v4174_v29, %v4484_v62  ;;  %v992_v1 = vmul.f32 %v4126_v45, %v4367_v41 }
 0x198   : > { %v4496_v53 = vpop.eup %3300  ;;  %3202 = vmatmul.mubr.msk.f32.gmra.mxu1 %vm645_vm2, %v2528_v54  ;;  %v2081_v57 = vadd.f32 -0.28449672, %v2049_v13  ;;  %v1764_v2 = vand.u32 2147483647, %v4488_v6  ;;  %v1093_v17 = vmul.f32 %v4133_v58, %v4439_v61  ;;  %v4513_v33 = vmul.f32 0.5, %v4410_v20 }
 0x199   : > { %v1922_v63 = vmul.f32 1.0614054, %v4496_v53  ;;  %v1326_v37 = vadd.f32 %v1294_v14, %v1225_v25  ;;  %v923_v48 = vadd.f32 %v891_v59, %v790_v52  ;;  %3306 = vpow2.f32 %v2291_v16 }
 0x19a   : > { %v2113_v9 = vmul.f32 %v4454_v23, %v2081_v57  ;;  %v1796_v28 = vmul.f32 0.3275911, %v1764_v2  ;;  %v1497_v41 = vmul.f32 %v4188_v26, %v4502_v60  ;;  %v2212_v51 = vsub.f32 0.0, %v1764_v2  ;;  %v4537_v57 = vld [vmem:[#allocation2 + $0x111] sm:$0xff] }
 0x19b   : > { %v1954_v47 = vadd.f32 -1.4531521, %v1922_v63  ;;  %v1428_v42 = vadd.f32 %v1396_v5, %v1326_v37  ;;  %v1024_v34 = vadd.f32 %v992_v1, %v923_v48  ;;  %v1598_v11 = vmul.f32 %v4197_v40, %v4507_v50  ;;  %v4543_v63 = vld [vmem:[#allocation2 + $0x112] sm:$0xff] }
 0x19c   : > { %v2145_v38 = vadd.f32 0.2548296, %v2113_v9  ;;  %v1828_v10 = vadd.f32 1.0, %v1796_v28  ;;  %vm2401_vm4 = vcmp.ge.f32.partialorder %v4378_v30, 0.0  ;;  %v1194_v36 = vmul.f32 %v4148_v21, %v4446_v55 }
 0x19d   : > { %v1986_v19 = vmul.f32 %v4496_v53, %v1954_v47  ;;  %v1529_v20 = vadd.f32 %v1497_v41, %v1428_v42  ;;  %v1125_v49 = vadd.f32 %v1093_v17, %v1024_v34  ;;  %v1295_v22 = vmul.f32 %v4158_v24, %v4458_v12 }
 0x19e   : > { %v2177_v18 = vmul.f32 %v4454_v23, %v2145_v38  ;;  %3308 = vrcp.f32 %v1828_v10  ;;  %v791_v39 = vmul.f32 %v4095_v0, %v4393_v3  ;;  %v892_v25 = vmul.f32 %v4112_v31, %v4402_v46 }
 0x19f   : > { %v4530_v44 = vpop.eup %3302  ;;  %v2018_v54 = vadd.f32 1.4214138, %v1986_v19  ;;  %v1630_v13 = vadd.f32 %v1598_v11, %v1529_v20  ;;  %v1226_v16 = vadd.f32 %v1194_v36, %v1125_v49  ;;  %v2244_v59 = vmul.f32 %v2212_v51, %v1764_v2 }
 0x1a0   : > { %v2337_v14 = vmul.f32 %v3299_v43, %v2177_v18  ;;  %v1923_v52 = vmul.f32 1.0614054, %v4530_v44  ;;  %v1397_v23 = vmul.f32 %v4174_v29, %v4523_v27  ;;  %v924_v37 = vadd.f32 %v892_v25, %v791_v39 }
 0x1a1   : > { %v2050_v5 = vmul.f32 %v4496_v53, %v2018_v54  ;;  %v4541_v3 = vadd.f32 %v4228_v32, %v1630_v13  ;;  %v1327_v1 = vadd.f32 %v1295_v22, %v1226_v16  ;;  %v3305_v48 = vpop.eup %3304  ;;  %v993_v2 = vmul.f32 %v4126_v45, %v4404_v4 }
 0x1a2   : > { %v2369_v46 = vsub.f32 1.0, %v2337_v14  ;;  %v1955_v43 = vadd.f32 -1.4531521, %v1923_v52  ;;  %v1094_v17 = vmul.f32 %v4133_v58, %v4484_v62  ;;  %v1498_v42 = vmul.f32 %v4188_v26, %v4537_v57 }
 0x1a3   : > { %v2082_v9 = vadd.f32 -0.28449672, %v2050_v5  ;;  %v4550_v28 = vmul.f32 0.70710677, %v4541_v3  ;;  %v1429_v47 = vadd.f32 %v1397_v23, %v1327_v1  ;;  %v1599_v38 = vmul.f32 %v4197_v40, %v4543_v63 }
 0x1a4   : > { %v2433_v41 = vsub.f32 0.0, %v2369_v46  ;;  %v1987_v34 = vmul.f32 %v4530_v44, %v1955_v43  ;;  %v1025_v10 = vadd.f32 %v993_v2, %v924_v37  ;;  %v2293_v51 = vmul.f32 1.442695, %v2244_v59  ;;  %v4567_v59 = vld [vmem:[#allocation2 + $0x120] sm:$0xff] }
 0x1a5   : > { %v2114_v4 = vmul.f32 %v4496_v53, %v2082_v9  ;;  %v1765_v11 = vand.u32 2147483647, %v4550_v28  ;;  %v1530_v19 = vadd.f32 %v1498_v42, %v1429_v47  ;;  %v1195_v18 = vmul.f32 %v4148_v21, %v4502_v60 }
 0x1a6   : > { %v2465_v20 = vsel %vm2401_vm4, %v2369_v46, %v2433_v41  ;;  %v2019_v49 = vadd.f32 1.4214138, %v1987_v34  ;;  %v1126_v36 = vadd.f32 %v1094_v17, %v1025_v10  ;;  %v3307_v22 = vpop.eup %3306  ;;  %vm2402_vm5 = vcmp.ge.f32.partialorder %v4422_v8, 0.0  ;;  %v4571_v46 = vld [vmem:[#allocation2 + $0x121] sm:$0xff] }
 0x1a7   : > { %v2497_v39 = vadd.f32 1.0, %v2465_v20  ;;  %v2146_v54 = vadd.f32 0.2548296, %v2114_v4  ;;  %v1797_v13 = vmul.f32 0.3275911, %v1765_v11  ;;  %v2213_v16 = vsub.f32 0.0, %v1765_v11 }
 0x1a8   : > { %v2051_v25 = vmul.f32 %v4530_v44, %v2019_v49  ;;  %v1631_v14 = vadd.f32 %v1599_v38, %v1530_v19  ;;  %v1227_v52 = vadd.f32 %v1195_v18, %v1126_v36  ;;  %v1296_v30 = vmul.f32 %v4158_v24, %v4507_v50 }
 0x1a9   : > { %v2529_v23 = vmul.f32 %v2497_v39, %v4480_v7  ;;  %v2178_v5 = vmul.f32 %v4496_v53, %v2146_v54  ;;  %v1829_v1 = vadd.f32 1.0, %v1797_v13  ;;  %v2245_v37 = vmul.f32 %v2213_v16, %v1765_v11  ;;  %v4581_v53 = vld [vmem:[#allocation2 + $0x122] sm:$0xff] }
 0x1aa   : > { %v2083_v43 = vadd.f32 -0.28449672, %v2051_v25  ;;  %3310 = vpow2.f32 %v2293_v51  ;;  %v4574_v2 = vadd.f32 %v4228_v32, %v1631_v14  ;;  %v1328_v17 = vadd.f32 %v1296_v30, %v1227_v52 }
 0x1ab   : > { %v4576_v9 = vpop.eup %3308  ;;  %3204 = vmatprep.mubr.msk.f32.mxu1 %vm645_vm2, %v2529_v23  ;;  %v2338_v47 = vmul.f32 %v3305_v48, %v2178_v5  ;;  %3312 = vrcp.f32 %v1829_v1  ;;  %v1398_v7 = vmul.f32 %v4174_v29, %v4567_v59  ;;  %v792_v42 = vmul.f32 %v4095_v0, %v4439_v61 }
 0x1ac   : > { %v2115_v41 = vmul.f32 %v4530_v44, %v2083_v43  ;;  %v1924_v34 = vmul.f32 1.0614054, %v4576_v9  ;;  %v4588_v38 = vmul.f32 0.70710677, %v4574_v2  ;;  %v1499_v10 = vmul.f32 %v4188_v26, %v4571_v46 }
 0x1ad   : > { %v2370_v48 = vsub.f32 1.0, %v2338_v47  ;;  %v2295_v4 = vmul.f32 1.442695, %v2245_v37  ;;  %v1430_v51 = vadd.f32 %v1398_v7, %v1328_v17  ;;  %v893_v11 = vmul.f32 %v4112_v31, %v4446_v55  ;;  %v4612_v47 = vld [vmem:[#allocation2 + $0x128] sm:$0xff] }
 0x1ae   : > { %v2147_v19 = vadd.f32 0.2548296, %v2115_v41  ;;  %v1956_v20 = vadd.f32 -1.4531521, %v1924_v34  ;;  %v1766_v0 = vand.u32 2147483647, %v4588_v38  ;;  %v1600_v61 = vmul.f32 %v4197_v40, %v4581_v53 }
 0x1af   : > { %v2434_v49 = vsub.f32 0.0, %v2370_v48  ;;  %v1531_v36 = vadd.f32 %v1499_v10, %v1430_v51  ;;  %v925_v18 = vadd.f32 %v893_v11, %v792_v42  ;;  %v994_v39 = vmul.f32 %v4126_v45, %v4458_v12  ;;  %v4621_v41 = vld [vmem:[#allocation2 + $0x12a] sm:$0xff] }
 0x1b0   : > { %v2179_v54 = vmul.f32 %v4530_v44, %v2147_v19  ;;  %v1988_v13 = vmul.f32 %v4576_v9, %v1956_v20  ;;  %v1798_v16 = vmul.f32 0.3275911, %v1766_v0  ;;  %v2214_v25 = vsub.f32 0.0, %v1766_v0 }
 0x1b1   : > { %v2466_v31 = vsel %vm2402_vm5, %v2370_v48, %v2434_v49  ;;  %v1632_v55 = vadd.f32 %v1600_v61, %v1531_v36  ;;  %v1026_v14 = vadd.f32 %v994_v39, %v925_v18  ;;  %v1095_v52 = vmul.f32 %v4133_v58, %v4523_v27  ;;  %v4614_v58 = vld [vmem:[#allocation2 + $0x129] sm:$0xff] }
 0x1b2   : > { %v2498_v30 = vadd.f32 1.0, %v2466_v31  ;;  %v2339_v23 = vmul.f32 %v3307_v22, %v2179_v54  ;;  %v2020_v5 = vadd.f32 1.4214138, %v1988_v13  ;;  %v1830_v1 = vadd.f32 1.0, %v1798_v16  ;;  %v4647_v54 = vld [vmem:[%s5262_s3 + $0x1] ss:$0 sm:$0xff] }
 0x1b3   : > { %v2246_v37 = vmul.f32 %v2214_v25, %v1766_v0  ;;  %v4606_v45 = vadd.f32 %v4228_v32, %v1632_v55  ;;  %v1127_v12 = vadd.f32 %v1095_v52, %v1026_v14  ;;  %v1196_v44 = vmul.f32 %v4148_v21, %v4537_v57 }
 0x1b4   : > { %v2530_v8 = vmul.f32 %v2498_v30, %v4513_v33  ;;  %v2371_v43 = vsub.f32 1.0, %v2339_v23  ;;  %v2052_v17 = vmul.f32 %v4576_v9, %v2020_v5  ;;  %3314 = vrcp.f32 %v1830_v1  ;;  %v4664_v23 = vld [vmem:[%s5262_s3 + $0x3] ss:$0 sm:$0xff] }
 0x1b5   : > { %v1699_v22 = vmul.f32 0.5, %v4435_v35  ;;  %vm2403_vm6 = vcmp.ge.f32.partialorder %v4442_v56, 0.0  ;;  %v4619_v7 = vmul.f32 0.70710677, %v4606_v45  ;;  %v1228_v42 = vadd.f32 %v1196_v44, %v1127_v12 }
 0x1b6   : > { %3205 = vmatmul.mubr.msk.f32.gmra.mxu1 %vm645_vm2, %v2530_v8  ;;  %v2435_v21 = vsub.f32 0.0, %v2371_v43  ;;  %v2084_v33 = vadd.f32 -0.28449672, %v2052_v17  ;;  %3316 = vpow2.f32 %v2295_v4  ;;  %v1297_v34 = vmul.f32 %v4158_v24, %v4543_v63 }
 0x1b7   : > { %v3311_v10 = vpop.eup %3310  ;;  %v2297_v48 = vmul.f32 1.442695, %v2246_v37  ;;  %v1767_v35 = vand.u32 2147483647, %v4619_v7  ;;  %v1399_v56 = vmul.f32 %v4174_v29, %v4612_v47  ;;  %v1500_v51 = vmul.f32 %v4188_v26, %v4614_v58  ;;  %v4640_v29 = vld [vmem:[%s5262_s3] ss:$0 sm:$0xff] }
 0x1b8   : > { %v4631_v11 = vpop.eup %3312  ;;  %v2467_v19 = vsel %vm2403_vm6, %v2371_v43, %v2435_v21  ;;  %v2116_v20 = vmul.f32 %v4576_v9, %v2084_v33  ;;  %v1329_v0 = vadd.f32 %v1297_v34, %v1228_v42  ;;  %v1601_v4 = vmul.f32 %v4197_v40, %v4621_v41  ;;  %v4682_v21 = vld [vmem:[%s5262_s3 + $0x4] ss:$0 sm:$0xff]  ;;  %v4686_v33 = vld [vmem:[#allocation2 + $0x138] sm:$0xff] }
 0x1b9   : > { %v2499_v24 = vadd.f32 1.0, %v2467_v19  ;;  %v1925_v61 = vmul.f32 1.0614054, %v4631_v11  ;;  %v1799_v49 = vmul.f32 0.3275911, %v1767_v35  ;;  %v2215_v36 = vsub.f32 0.0, %v1767_v35 }
 0x1ba   : > { %v2148_v18 = vadd.f32 0.2548296, %v2116_v20  ;;  %v1431_v39 = vadd.f32 %v1399_v56, %v1329_v0  ;;  %v793_v26 = vmul.f32 %v4640_v29, %v4484_v62  ;;  %v894_v40 = vmul.f32 %v4647_v54, %v4502_v60  ;;  %v4655_v62 = vld [vmem:[%s5262_s3 + $0x2] ss:$0 sm:$0xff]  ;;  %v4699_v56 = vld [vmem:[%s5262_s3 + $0x5] ss:$0 sm:$0xff] }
 0x1bb   : > { %v2531_v13 = vmul.f32 %v2499_v24, %v1699_v22  ;;  %v1957_v16 = vadd.f32 -1.4531521, %v1925_v61  ;;  %v1831_v25 = vadd.f32 1.0, %v1799_v49  ;;  %v2247_v31 = vmul.f32 %v2215_v36, %v1767_v35  ;;  %v4703_v0 = vld [vmem:[#allocation2 + $0x139] sm:$0xff]  ;;  %v4713_v36 = vld [vmem:[%s5262_s3 + $0x6] ss:$0 sm:$0xff] }
 0x1bc   : > { %v2180_v55 = vmul.f32 %v4576_v9, %v2148_v18  ;;  %v1532_v14 = vadd.f32 %v1500_v51, %v1431_v39  ;;  %v926_v52 = vadd.f32 %v894_v40, %v793_v26  ;;  %v995_v30 = vmul.f32 %v4655_v62, %v4507_v50 }
 0x1bd   : > { %3207 = vmatprep.mubr.msk.f32.mxu1 %vm645_vm2, %v2531_v13  ;;  %v1989_v60 = vmul.f32 %v4631_v11, %v1957_v16  ;;  %3318 = vrcp.f32 %v1831_v25  ;;  %v1096_v9 = vmul.f32 %v4664_v23, %v4567_v59  ;;  %v1700_v5 = vmul.f32 0.5, %v4477_v15  ;;  %v4722_v16 = vld [vmem:[%s5262_s3 + $0x7] ss:$0 sm:$0xff] }
 0x1be   : > { %v2340_v1 = vmul.f32 %v3311_v10, %v2180_v55  ;;  %v1633_v37 = vadd.f32 %v1601_v4, %v1532_v14  ;;  %v1027_v12 = vadd.f32 %v995_v30, %v926_v52  ;;  %vm2404_vm7 = vcmp.ge.f32.partialorder %v4488_v6, 0.0 }
 0x1bf   : > { %v4671_v50 = vmul.f32 0.5, %v4541_v3  ;;  %v2021_v44 = vadd.f32 1.4214138, %v1989_v60  ;;  %3320 = vpow2.f32 %v2297_v48  ;;  %v2299_v43 = vmul.f32 1.442695, %v2247_v31  ;;  %v4726_v31 = vld [vmem:[#allocation2 + $0x13a] sm:$0xff] }
 0x1c0   : > { %v2372_v8 = vsub.f32 1.0, %v2340_v1  ;;  %v4674_v17 = vadd.f32 %v4228_v32, %v1633_v37  ;;  %v1128_v22 = vadd.f32 %v1096_v9, %v1027_v12  ;;  %v1197_v3 = vmul.f32 %v4682_v21, %v4571_v46 }
 0x1c1   : > { %v4676_v42 = vpop.eup %3314  ;;  %v2053_v15 = vmul.f32 %v4631_v11, %v2021_v44  ;;  %v794_v34 = vmul.f32 %v4640_v29, %v4523_v27  ;;  %v895_v32 = vmul.f32 %v4647_v54, %v4537_v57  ;;  %v1298_v51 = vmul.f32 %v4699_v56, %v4581_v53 }
 0x1c2   : > { %v2436_v10 = vsub.f32 0.0, %v2372_v8  ;;  %v1926_v48 = vmul.f32 1.0614054, %v4676_v42  ;;  %v4694_v35 = vmul.f32 0.70710677, %v4674_v17  ;;  %v1229_v27 = vadd.f32 %v1197_v3, %v1128_v22  ;;  %v4744_v3 = vld [vmem:[#allocation2 + $0x141] sm:$0xff] }
 0x1c3   : > { %v3317_v19 = vpop.eup %3316  ;;  %v2085_v20 = vadd.f32 -0.28449672, %v2053_v15  ;;  %v927_v57 = vadd.f32 %v895_v32, %v794_v34  ;;  %v996_v4 = vmul.f32 %v4655_v62, %v4543_v63  ;;  %v1400_v18 = vmul.f32 %v4713_v36, %v4686_v33  ;;  %v4742_v15 = vld [vmem:[#allocation2 + $0x140] sm:$0xff] }
 0x1c4   : > { %v2468_v24 = vsel %vm2404_vm7, %v2372_v8, %v2436_v10  ;;  %v1958_v61 = vadd.f32 -1.4531521, %v1926_v48  ;;  %v1768_v49 = vand.u32 2147483647, %v4694_v35  ;;  %v1330_v40 = vadd.f32 %v1298_v51, %v1229_v27  ;;  %v4752_v27 = vld [vmem:[#allocation2 + $0x142] sm:$0xff] }
 0x1c5   : > { %v2500_v39 = vadd.f32 1.0, %v2468_v24  ;;  %v2117_v26 = vmul.f32 %v4631_v11, %v2085_v20  ;;  %v1028_v13 = vadd.f32 %v996_v4, %v927_v57  ;;  %v1501_v25 = vmul.f32 %v4722_v16, %v4703_v0 }
 0x1c6   : > { %v1990_v63 = vmul.f32 %v4676_v42, %v1958_v61  ;;  %v1800_v6 = vmul.f32 0.3275911, %v1768_v49  ;;  %v1097_v55 = vmul.f32 %v4664_v23, %v4612_v47  ;;  %v2216_v30 = vsub.f32 0.0, %v1768_v49 }
 0x1c7   : > { %v2532_v14 = vmul.f32 %v2500_v39, %v1700_v5  ;;  %v2149_v52 = vadd.f32 0.2548296, %v2117_v26  ;;  %v1432_v60 = vadd.f32 %v1400_v18, %v1330_v40  ;;  %vm2405_vm8 = vcmp.ge.f32.partialorder %v4550_v28, 0.0  ;;  %v4738_v5 = vld [vmem:[%s5262_s3 + $0x8] ss:$0 sm:$0xff] }
 0x1c8   : > { %v2022_v9 = vadd.f32 1.4214138, %v1990_v63  ;;  %v1832_v1 = vadd.f32 1.0, %v1800_v6  ;;  %v1129_v37 = vadd.f32 %v1097_v55, %v1028_v13  ;;  %v1198_v12 = vmul.f32 %v4682_v21, %v4614_v58 }
 0x1c9   : > { %3208 = vmatmul.mubr.msk.f32.gmra.mxu1 %vm645_vm2, %v2532_v14  ;;  %v2181_v44 = vmul.f32 %v4631_v11, %v2149_v52  ;;  %3322 = vpow2.f32 %v2299_v43  ;;  %v1533_v8 = vadd.f32 %v1501_v25, %v1432_v60  ;;  %v1602_v22 = vmul.f32 %v4738_v5, %v4726_v31 }
 0x1ca   : > { %v4746_v34 = vpop.eup %3318  ;;  %v2054_v32 = vmul.f32 %v4676_v42, %v2022_v9  ;;  %3324 = vrcp.f32 %v1832_v1  ;;  %v1230_v11 = vadd.f32 %v1198_v12, %v1129_v37  ;;  %v1299_v43 = vmul.f32 %v4699_v56, %v4621_v41 }
 0x1cb   : > { %v2341_v10 = vmul.f32 %v3317_v19, %v2181_v44  ;;  %v1927_v48 = vmul.f32 1.0614054, %v4746_v34  ;;  %v2248_v51 = vmul.f32 %v2216_v30, %v1768_v49  ;;  %v1634_v20 = vadd.f32 %v1602_v22, %v1533_v8  ;;  %v4761_v19 = vld [vmem:[%s5263_s4] ss:$0 sm:$0xff] }
 0x1cc   : > { %v3321_v57 = vpop.eup %3320  ;;  %v2086_v4 = vadd.f32 -0.28449672, %v2054_v32  ;;  %v1331_v24 = vadd.f32 %v1299_v43, %v1230_v11  ;;  %v1401_v61 = vmul.f32 %v4713_v36, %v4742_v15  ;;  %v1502_v18 = vmul.f32 %v4722_v16, %v4744_v3 }
 0x1cd   : > { %v2373_v39 = vsub.f32 1.0, %v2341_v10  ;;  %v1959_v26 = vadd.f32 -1.4531521, %v1927_v48  ;;  %v4764_v49 = vadd.f32 %v4761_v19, %v1634_v20  ;;  %v795_v40 = vmul.f32 %v4640_v29, %v4567_v59 }
 0x1ce   : > { %v2118_v13 = vmul.f32 %v4676_v42, %v2086_v4  ;;  %v1433_v63 = vadd.f32 %v1401_v61, %v1331_v24  ;;  %v1603_v6 = vmul.f32 %v4738_v5, %v4752_v27  ;;  %v896_v25 = vmul.f32 %v4647_v54, %v4571_v46 }
 0x1cf   : > { %v2437_v55 = vsub.f32 0.0, %v2373_v39  ;;  %v1991_v14 = vmul.f32 %v4746_v34, %v1959_v26  ;;  %v4775_v52 = vmul.f32 0.70710677, %v4764_v49  ;;  %v997_v30 = vmul.f32 %v4655_v62, %v4581_v53 }
 0x1d0   : > { %v2150_v60 = vadd.f32 0.2548296, %v2118_v13  ;;  %v1534_v59 = vadd.f32 %v1502_v18, %v1433_v63  ;;  %v928_v9 = vadd.f32 %v896_v25, %v795_v40  ;;  %v1098_v1 = vmul.f32 %v4664_v23, %v4686_v33  ;;  %v4797_v63 = vld [vmem:[#allocation2 + $0x150] sm:$0xff] }
 0x1d1   : > { %v2469_v37 = vsel %vm2405_vm8, %v2373_v39, %v2437_v55  ;;  %v2023_v12 = vadd.f32 1.4214138, %v1991_v14  ;;  %v2301_v46 = vmul.f32 1.442695, %v2248_v51  ;;  %v1769_v44 = vand.u32 2147483647, %v4775_v52 }
 0x1d2   : > { %v2501_v8 = vadd.f32 1.0, %v2469_v37  ;;  %v2182_v22 = vmul.f32 %v4676_v42, %v2150_v60  ;;  %v1635_v32 = vadd.f32 %v1603_v6, %v1534_v59  ;;  %v1029_v11 = vadd.f32 %v997_v30, %v928_v9  ;;  %v4807_v14 = vld [vmem:[#allocation2 + $0x151] sm:$0xff] }
 0x1d3   : > { %v2055_v53 = vmul.f32 %v4746_v34, %v2023_v12  ;;  %v1801_v43 = vmul.f32 0.3275911, %v1769_v44  ;;  %v2217_v10 = vsub.f32 0.0, %v1769_v44  ;;  %v1199_v48 = vmul.f32 %v4682_v21, %v4703_v0  ;;  %v4811_v9 = vld [vmem:[#allocation2 + $0x152] sm:$0xff] }
 0x1d4   : > { %v2533_v20 = vmul.f32 %v2501_v8, %v4671_v50  ;;  %v2342_v28 = vmul.f32 %v3321_v57, %v2182_v22  ;;  %v4790_v4 = vadd.f32 %v4761_v19, %v1635_v32  ;;  %v1130_v51 = vadd.f32 %v1098_v1, %v1029_v11 }
 0x1d5   : > { %v2087_v24 = vadd.f32 -0.28449672, %v2055_v53  ;;  %v1833_v61 = vadd.f32 1.0, %v1801_v43  ;;  %v2249_v18 = vmul.f32 %v2217_v10, %v1769_v44  ;;  %v1702_v39 = vmul.f32 0.5, %v4574_v2 }
 0x1d6   : > { %v3323_v42 = vpop.eup %3322  ;;  %3210 = vmatprep.mubr.msk.f32.mxu1 %vm645_vm2, %v2533_v20  ;;  %v2374_v26 = vsub.f32 1.0, %v2342_v28  ;;  %v4795_v40 = vmul.f32 0.70710677, %v4790_v4  ;;  %v1231_v13 = vadd.f32 %v1199_v48, %v1130_v51  ;;  %vm2406_vm9 = vcmp.ge.f32.partialorder %v4588_v38, 0.0 }
 0x1d7   : > { %v4799_v50 = vpop.eup %3324  ;;  %v2119_v57 = vmul.f32 %v4746_v34, %v2087_v24  ;;  %3326 = vrcp.f32 %v1833_v61  ;;  %v1300_v6 = vmul.f32 %v4699_v56, %v4726_v31  ;;  %v2303_v60 = vmul.f32 1.442695, %v2249_v18 }
 0x1d8   : > { %v2438_v25 = vsub.f32 0.0, %v2374_v26  ;;  %v1928_v2 = vmul.f32 1.0614054, %v4799_v50  ;;  %3328 = vpow2.f32 %v2301_v46  ;;  %v1770_v55 = vand.u32 2147483647, %v4795_v40 }
 0x1d9   : > { %v2151_v30 = vadd.f32 0.2548296, %v2119_v57  ;;  %v1332_v59 = vadd.f32 %v1300_v6, %v1231_v13  ;;  %v1402_v38 = vmul.f32 %v4713_v36, %v4797_v63  ;;  %v1503_v32 = vmul.f32 %v4722_v16, %v4807_v14  ;;  %v4834_v6 = vld [vmem:[#allocation2 + $0x158] sm:$0xff] }
 0x1da   : > { %v2470_v1 = vsel %vm2406_vm9, %v2374_v26, %v2438_v25  ;;  %v1960_v37 = vadd.f32 -1.4531521, %v1928_v2  ;;  %v1802_v12 = vmul.f32 0.3275911, %v1770_v55  ;;  %v2218_v44 = vsub.f32 0.0, %v1770_v55 }
 0x1db   : > { %v2502_v8 = vadd.f32 1.0, %v2470_v1  ;;  %v2183_v22 = vmul.f32 %v4746_v34, %v2151_v30  ;;  %v1434_v46 = vadd.f32 %v1402_v38, %v1332_v59  ;;  %v1604_v43 = vmul.f32 %v4738_v5, %v4811_v9 }
 0x1dc   : > { %v1992_v11 = vmul.f32 %v4799_v50, %v1960_v37  ;;  %v1834_v53 = vadd.f32 1.0, %v1802_v12  ;;  %v796_v10 = vmul.f32 %v4640_v29, %v4612_v47  ;;  %v897_v51 = vmul.f32 %v4647_v54, %v4614_v58 }
 0x1dd   : > { %v2534_v48 = vmul.f32 %v2502_v8, %v1702_v39  ;;  %v2343_v20 = vmul.f32 %v3323_v42, %v2183_v22  ;;  %v1535_v28 = vadd.f32 %v1503_v32, %v1434_v46  ;;  %v2250_v24 = vmul.f32 %v2218_v44, %v1770_v55  ;;  %v4854_v32 = vld [vmem:[#allocation2 + $0x159] sm:$0xff] }
 0x1de   : > { %v2024_v34 = vadd.f32 1.4214138, %v1992_v11  ;;  %3330 = vrcp.f32 %v1834_v53  ;;  %v998_v61 = vmul.f32 %v4655_v62, %v4621_v41  ;;  %v929_v13 = vadd.f32 %v897_v51, %v796_v10  ;;  %v4858_v10 = vld [vmem:[#allocation2 + $0x15a] sm:$0xff] }
 0x1df   : > { %3211 = vmatmul.mubr.msk.f32.gmra.mxu1 %vm645_vm2, %v2534_v48  ;;  %v2375_v18 = vsub.f32 1.0, %v2343_v20  ;;  %v1636_v26 = vadd.f32 %v1604_v43, %v1535_v28  ;;  %v1099_v47 = vmul.f32 %v4664_v23, %v4742_v15  ;;  %v1703_v42 = vmul.f32 0.5, %v4606_v45 }
 0x1e0   : > { %vm2407_vm10 = vcmp.ge.f32.partialorder %v4619_v7, 0.0  ;;  %v2056_v58 = vmul.f32 %v4799_v50, %v2024_v34  ;;  %3332 = vpow2.f32 %v2303_v60  ;;  %v1030_v41 = vadd.f32 %v998_v61, %v929_v13 }
 0x1e1   : > { %v2439_v39 = vsub.f32 0.0, %v2375_v18  ;;  %v4832_v57 = vadd.f32 %v4761_v19, %v1636_v26  ;;  %v2305_v2 = vmul.f32 1.442695, %v2250_v24  ;;  %v1200_v55 = vmul.f32 %v4682_v21, %v4744_v3 }
 0x1e2   : > { %v2088_v25 = vadd.f32 -0.28449672, %v2056_v58  ;;  %v797_v45 = vmul.f32 %v4640_v29, %v4686_v33  ;;  %v1131_v59 = vadd.f32 %v1099_v47, %v1030_v41  ;;  %v1301_v60 = vmul.f32 %v4699_v56, %v4752_v27 }
 0x1e3   : > { %v2471_v30 = vsel %vm2407_vm10, %v2375_v18, %v2439_v39  ;;  %v4841_v7 = vmul.f32 0.70710677, %v4832_v57  ;;  %v1403_v12 = vmul.f32 %v4713_v36, %v4834_v6  ;;  %v898_v44 = vmul.f32 %v4647_v54, %v4703_v0 }
 0x1e4   : > { %v4845_v38 = vpop.eup %3326  ;;  %v2503_v1 = vadd.f32 1.0, %v2471_v30  ;;  %v2120_v37 = vmul.f32 %v4799_v50, %v2088_v25  ;;  %v1232_v46 = vadd.f32 %v1200_v55, %v1131_v59  ;;  %v999_v11 = vmul.f32 %v4655_v62, %v4726_v31  ;;  %v4876_v25 = vld [vmem:[#allocation2 + $0x169] sm:$0xff] }
 0x1e5   : > { %v3329_v33 = vpop.eup %3328  ;;  %v1929_v8 = vmul.f32 1.0614054, %v4845_v38  ;;  %v1771_v22 = vand.u32 2147483647, %v4841_v7  ;;  %v930_v48 = vadd.f32 %v898_v44, %v797_v45  ;;  %v1100_v20 = vmul.f32 %v4664_v23, %v4797_v63 }
 0x1e6   : > { %v2535_v53 = vmul.f32 %v2503_v1, %v1703_v42  ;;  %v2152_v43 = vadd.f32 0.2548296, %v2120_v37  ;;  %vm2408_vm11 = vcmp.ge.f32.partialorder %v4694_v35, 0.0  ;;  %v1333_v34 = vadd.f32 %v1301_v60, %v1232_v46  ;;  %v4870_v42 = vld [vmem:[#allocation2 + $0x168] sm:$0xff] }
 0x1e7   : > { %v1961_v0 = vadd.f32 -1.4531521, %v1929_v8  ;;  %v1803_v28 = vmul.f32 0.3275911, %v1771_v22  ;;  %v2219_v51 = vsub.f32 0.0, %v1771_v22  ;;  %3334 = vpow2.f32 %v2305_v2 }
 0x1e8   : > { %3213 = vmatprep.mubr.msk.f32.mxu1 %vm645_vm2, %v2535_v53  ;;  %v2184_v24 = vmul.f32 %v4799_v50, %v2152_v43  ;;  %v1504_v31 = vmul.f32 %v4722_v16, %v4854_v32  ;;  %v1031_v61 = vadd.f32 %v999_v11, %v930_v48  ;;  %v1435_v13 = vadd.f32 %v1403_v12, %v1333_v34 }
 0x1e9   : > { %v1993_v18 = vmul.f32 %v4845_v38, %v1961_v0  ;;  %v1835_v26 = vadd.f32 1.0, %v1803_v28  ;;  %v1605_v47 = vmul.f32 %v4738_v5, %v4858_v10  ;;  %v1201_v41 = vmul.f32 %v4682_v21, %v4807_v14  ;;  %v4893_v0 = vld [vmem:[#allocation2 + $0x16a] sm:$0xff] }
 0x1ea   : > { %v2344_v58 = vmul.f32 %v3329_v33, %v2184_v24  ;;  %v1132_v39 = vadd.f32 %v1100_v20, %v1031_v61  ;;  %v1302_v50 = vmul.f32 %v4699_v56, %v4811_v9  ;;  %v2251_v45 = vmul.f32 %v2219_v51, %v1771_v22 }
 0x1eb   : > { %v4878_v2 = vpop.eup %3330  ;;  %v2025_v55 = vadd.f32 1.4214138, %v1993_v18  ;;  %3336 = vrcp.f32 %v1835_v26  ;;  %v1536_v30 = vadd.f32 %v1504_v31, %v1435_v13  ;;  %v1404_v37 = vmul.f32 %v4713_v36, %v4870_v42 }
 0x1ec   : > { %v2376_v59 = vsub.f32 1.0, %v2344_v58  ;;  %v1930_v60 = vmul.f32 1.0614054, %v4878_v2  ;;  %v1233_v1 = vadd.f32 %v1201_v41, %v1132_v39  ;;  %v1505_v33 = vmul.f32 %v4722_v16, %v4876_v25 }
 0x1ed   : > { %v2057_v12 = vmul.f32 %v4845_v38, %v2025_v55  ;;  %v1637_v44 = vadd.f32 %v1605_v47, %v1536_v30  ;;  %v798_v8 = vmul.f32 %v4640_v29, %v4742_v15  ;;  %v3333_v46 = vpop.eup %3332  ;;  %v899_v43 = vmul.f32 %v4647_v54, %v4744_v3 }
 0x1ee   : > { %v2440_v11 = vsub.f32 0.0, %v2376_v59  ;;  %v1962_v22 = vadd.f32 -1.4531521, %v1930_v60  ;;  %v1334_v53 = vadd.f32 %v1302_v50, %v1233_v1  ;;  %v1000_v28 = vmul.f32 %v4655_v62, %v4752_v27 }
 0x1ef   : > { %v2089_v48 = vadd.f32 -0.28449672, %v2057_v12  ;;  %v4891_v20 = vadd.f32 %v4761_v19, %v1637_v44  ;;  %v1101_v51 = vmul.f32 %v4664_v23, %v4834_v6  ;;  %v931_v31 = vadd.f32 %v899_v43, %v798_v8 }
 0x1f0   : > { %v2472_v15 = vsel %vm2408_vm11, %v2376_v59, %v2440_v11  ;;  %v1994_v34 = vmul.f32 %v4878_v2, %v1962_v22  ;;  %v1436_v24 = vadd.f32 %v1404_v37, %v1334_v53  ;;  %v1704_v3 = vmul.f32 0.5, %v4674_v17 }
 0x1f1   : > { %v2504_v61 = vadd.f32 1.0, %v2472_v15  ;;  %v2121_v18 = vmul.f32 %v4845_v38, %v2089_v48  ;;  %v4905_v26 = vmul.f32 0.70710677, %v4891_v20  ;;  %v1606_v47 = vmul.f32 %v4738_v5, %v4893_v0 }
 0x1f2   : > { %v2026_v13 = vadd.f32 1.4214138, %v1994_v34  ;;  %v1537_v27 = vadd.f32 %v1505_v33, %v1436_v24  ;;  %v1032_v58 = vadd.f32 %v1000_v28, %v931_v31  ;;  %v2307_v41 = vmul.f32 1.442695, %v2251_v45  ;;  %v4916_v33 = vld [vmem:[#allocation2 + $0x170] sm:$0xff] }
 0x1f3   : > { %v2536_v35 = vmul.f32 %v2504_v61, %v1704_v3  ;;  %v2153_v39 = vadd.f32 0.2548296, %v2121_v18  ;;  %v1772_v50 = vand.u32 2147483647, %v4905_v26  ;;  %v1202_v59 = vmul.f32 %v4682_v21, %v4854_v32  ;;  %v4934_v34 = vld [vmem:[#allocation2 + $0x172] sm:$0xff] }
 0x1f4   : > { %v2058_v55 = vmul.f32 %v4878_v2, %v2026_v13  ;;  %v1638_v17 = vadd.f32 %v1606_v47, %v1537_v27  ;;  %v1133_v30 = vadd.f32 %v1101_v51, %v1032_v58  ;;  %v3335_v60 = vpop.eup %3334  ;;  %v1705_v1 = vmul.f32 0.5, %v4764_v49  ;;  %v4924_v49 = vld [vmem:[#allocation2 + $0x171] sm:$0xff] }
 0x1f5   : > { %3214 = vmatmul.mubr.msk.f32.gmra.mxu1 %vm645_vm2, %v2536_v35  ;;  %v2185_v37 = vmul.f32 %v4845_v38, %v2153_v39  ;;  %v1804_v12 = vmul.f32 0.3275911, %v1772_v50  ;;  %v2220_v44 = vsub.f32 0.0, %v1772_v50  ;;  %v1303_v22 = vmul.f32 %v4699_v56, %v4858_v10 }
 0x1f6   : > { %v2090_v45 = vadd.f32 -0.28449672, %v2058_v55  ;;  %v4919_v8 = vadd.f32 %v4761_v19, %v1638_v17  ;;  %v1234_v11 = vadd.f32 %v1202_v59, %v1133_v30  ;;  %vm2409_vm12 = vcmp.ge.f32.partialorder %v4775_v52, 0.0 }
 0x1f7   : > { %v2345_v53 = vmul.f32 %v3333_v46, %v2185_v37  ;;  %3338 = vpow2.f32 %v2307_v41  ;;  %v1836_v43 = vadd.f32 1.0, %v1804_v12  ;;  %v1405_v15 = vmul.f32 %v4713_v36, %v4916_v33 }
 0x1f8   : > { %v4926_v38 = vpop.eup %3336  ;;  %v2122_v48 = vmul.f32 %v4878_v2, %v2090_v45  ;;  %v4930_v28 = vmul.f32 0.70710677, %v4919_v8  ;;  %v1335_v51 = vadd.f32 %v1303_v22, %v1234_v11  ;;  %v2252_v31 = vmul.f32 %v2220_v44, %v1772_v50 }
 0x1f9   : > { %v2377_v46 = vsub.f32 1.0, %v2345_v53  ;;  %v1931_v24 = vmul.f32 1.0614054, %v4926_v38  ;;  %3340 = vrcp.f32 %v1836_v43  ;;  %v1506_v13 = vmul.f32 %v4722_v16, %v4924_v49 }
 0x1fa   : > { %v2154_v3 = vadd.f32 0.2548296, %v2122_v48  ;;  %v1773_v61 = vand.u32 2147483647, %v4930_v28  ;;  %v1437_v18 = vadd.f32 %v1405_v15, %v1335_v51  ;;  %v1607_v58 = vmul.f32 %v4738_v5, %v4934_v34 }
 0x1fb   : > { %v2441_v27 = vsub.f32 0.0, %v2377_v46  ;;  %v1963_v47 = vadd.f32 -1.4531521, %v1931_v24  ;;  %v799_v35 = vmul.f32 %v4640_v29, %v4797_v63  ;;  %v2309_v59 = vmul.f32 1.442695, %v2252_v31 }
 0x1fc   : > { %v2186_v39 = vmul.f32 %v4878_v2, %v2154_v3  ;;  %v1805_v41 = vmul.f32 0.3275911, %v1773_v61  ;;  %v2221_v55 = vsub.f32 0.0, %v1773_v61  ;;  %v1538_v50 = vadd.f32 %v1506_v13, %v1437_v18  ;;  %v4967_v3 = vld [vmem:[#allocation2 + $0x180] sm:$0xff] }
 0x1fd   : > { %v2473_v17 = vsel %vm2409_vm12, %v2377_v46, %v2441_v27  ;;  %v1995_v30 = vmul.f32 %v4926_v38, %v1963_v47  ;;  %v900_v37 = vmul.f32 %v4647_v54, %v4807_v14  ;;  %v1001_v63 = vmul.f32 %v4655_v62, %v4811_v9 }
 0x1fe   : > { %v2505_v12 = vadd.f32 1.0, %v2473_v17  ;;  %v2346_v44 = vmul.f32 %v3335_v60, %v2186_v39  ;;  %v1837_v45 = vadd.f32 1.0, %v1805_v41  ;;  %v1639_v2 = vadd.f32 %v1607_v58, %v1538_v50  ;;  %v4983_v50 = vld [vmem:[#allocation2 + $0x182] sm:$0xff] }
 0x1ff   : > { %v2027_v11 = vadd.f32 1.4214138, %v1995_v30  ;;  %v932_v22 = vadd.f32 %v900_v37, %v799_v35  ;;  %v1102_v53 = vmul.f32 %v4664_v23, %v4870_v42  ;;  %v2253_v48 = vmul.f32 %v2221_v55, %v1773_v61  ;;  %v4981_v55 = vld [vmem:[#allocation2 + $0x181] sm:$0xff] }
 0x200   : > { %v2537_v52 = vmul.f32 %v2505_v12, %v1705_v1  ;;  %v2378_v43 = vsub.f32 1.0, %v2346_v44  ;;  %3342 = vrcp.f32 %v1837_v45  ;;  %v4956_v14 = vadd.f32 %v4761_v19, %v1639_v2 }
 0x201   : > { %v2059_v51 = vmul.f32 %v4926_v38, %v2027_v11  ;;  %v1033_v60 = vadd.f32 %v1001_v63, %v932_v22  ;;  %v1706_v9 = vmul.f32 0.5, %v4790_v4  ;;  %vm2410_vm13 = vcmp.ge.f32.partialorder %v4795_v40, 0.0 }
 0x202   : > { %3216 = vmatprep.mubr.msk.f32.mxu1 %vm645_vm2, %v2537_v52  ;;  %v2442_v15 = vsub.f32 0.0, %v2378_v43  ;;  %v4962_v46 = vmul.f32 0.5, %v4832_v57  ;;  %3344 = vpow2.f32 %v2309_v59  ;;  %v4965_v24 = vmul.f32 0.70710677, %v4956_v14 }
 0x203   : > { %v2091_v1 = vadd.f32 -0.28449672, %v2059_v51  ;;  %v1134_v31 = vadd.f32 %v1102_v53, %v1033_v60  ;;  %v2311_v13 = vmul.f32 1.442695, %v2253_v48  ;;  %v1203_v4 = vmul.f32 %v4682_v21, %v4876_v25 }
 0x204   : > { %v3339_v61 = vpop.eup %3338  ;;  %v2474_v18 = vsel %vm2410_vm13, %v2378_v43, %v2442_v15  ;;  %v800_v40 = vmul.f32 %v4640_v29, %v4834_v6  ;;  %v1774_v47 = vand.u32 2147483647, %v4965_v24  ;;  %v1304_v58 = vmul.f32 %v4699_v56, %v4893_v0 }
 0x205   : > { %v2506_v27 = vadd.f32 1.0, %v2474_v18  ;;  %v2123_v57 = vmul.f32 %v4926_v38, %v2091_v1  ;;  %v1235_v39 = vadd.f32 %v1203_v4, %v1134_v31  ;;  %v1406_v41 = vmul.f32 %v4713_v36, %v4967_v3 }
 0x206   : > { %v4977_v35 = vpop.eup %3340  ;;  %v901_v6 = vmul.f32 %v4647_v54, %v4854_v32  ;;  %v1002_v17 = vmul.f32 %v4655_v62, %v4858_v10  ;;  %v1806_v12 = vmul.f32 0.3275911, %v1774_v47  ;;  %vm2411_vm14 = vcmp.ge.f32.partialorder %v4841_v7, 0.0 }
 0x207   : > { %v2538_v30 = vmul.f32 %v2506_v27, %v1706_v9  ;;  %v2155_v59 = vadd.f32 0.2548296, %v2123_v57  ;;  %v1932_v37 = vmul.f32 1.0614054, %v4977_v35  ;;  %v2222_v44 = vsub.f32 0.0, %v1774_v47  ;;  %v5002_v9 = vld [vmem:[#allocation2 + $0x188] sm:$0xff] }
 0x208   : > { %v1336_v45 = vadd.f32 %v1304_v58, %v1235_v39  ;;  %v933_v63 = vadd.f32 %v901_v6, %v800_v40  ;;  %v1103_v11 = vmul.f32 %v4664_v23, %v4916_v33  ;;  %3346 = vpow2.f32 %v2311_v13  ;;  %v5015_v39 = vld [vmem:[#allocation2 + $0x189] sm:$0xff] }
 0x209   : > { %3217 = vmatmul.mubr.msk.f32.gmra.mxu1 %vm645_vm2, %v2538_v30  ;;  %v2187_v32 = vmul.f32 %v4926_v38, %v2155_v59  ;;  %v1964_v2 = vadd.f32 -1.4531521, %v1932_v37  ;;  %v1838_v10 = vadd.f32 1.0, %v1806_v12  ;;  %v1507_v53 = vmul.f32 %v4722_v16, %v4981_v55  ;;  %v5020_v30 = vld [vmem:[#allocation2 + $0x18a] sm:$0xff] }
 0x20a   : > { %v1438_v22 = vadd.f32 %v1406_v41, %v1336_v45  ;;  %v1608_v52 = vmul.f32 %v4738_v5, %v4983_v50  ;;  %v1034_v43 = vadd.f32 %v1002_v17, %v933_v63  ;;  %v1204_v60 = vmul.f32 %v4682_v21, %v4924_v49  ;;  %v5017_v41 = vpop.f32.mrf.mxu1 }
 0x20b   : > { %v2347_v48 = vmul.f32 %v3339_v61, %v2187_v32  ;;  %v1996_v51 = vmul.f32 %v4977_v35, %v1964_v2  ;;  %3348 = vrcp.f32 %v1838_v10  ;;  %v2254_v38 = vmul.f32 %v2222_v44, %v1774_v47 }
 0x20c   : > { %v1539_v15 = vadd.f32 %v1507_v53, %v1438_v22  ;;  %v1135_v1 = vadd.f32 %v1103_v11, %v1034_v43  ;;  %v1305_v31 = vmul.f32 %v4699_v56, %v4934_v34  ;;  %v801_v61 = vmul.f32 %v4640_v29, %v4870_v42  ;;  %v5039_v43 = vpop.f32.mrf.mxu1 }
 0x20d   : > { %v5006_v18 = vpop.eup %3342  ;;  %v2379_v13 = vsub.f32 1.0, %v2347_v48  ;;  %v2028_v4 = vadd.f32 1.4214138, %v1996_v51  ;;  %v902_v40 = vmul.f32 %v4647_v54, %v4876_v25  ;;  %v1407_v47 = vmul.f32 %v4713_v36, %v5002_v9 }
 0x20e   : > { %v1933_v27 = vmul.f32 1.0614054, %v5006_v18  ;;  %v1640_v57 = vadd.f32 %v1608_v52, %v1539_v15  ;;  %v1236_v58 = vadd.f32 %v1204_v60, %v1135_v1  ;;  %v1003_v25 = vmul.f32 %v4655_v62, %v4893_v0  ;;  %v1371_v52 = vld [vmem:[#allocation2 + $0x198] sm:$0xff] }
 0x20f   : > { %v2443_v6 = vsub.f32 0.0, %v2379_v13  ;;  %v2060_v17 = vmul.f32 %v4977_v35, %v2028_v4  ;;  %v934_v42 = vadd.f32 %v902_v40, %v801_v61  ;;  %v3345_v59 = vpop.eup %3344  ;;  %v1104_v45 = vmul.f32 %v4664_v23, %v4967_v3 }
 0x210   : > { %v1965_v37 = vadd.f32 -1.4531521, %v1933_v27  ;;  %v5025_v12 = vadd.f32 %v4761_v19, %v1640_v57  ;;  %v1337_v44 = vadd.f32 %v1305_v31, %v1236_v58  ;;  %v1508_v32 = vmul.f32 %v4722_v16, %v5015_v39  ;;  %v1472_v27 = vld [vmem:[#allocation2 + $0x199] sm:$0xff] }
 0x211   : > { %v2475_v63 = vsel %vm2411_vm14, %v2379_v13, %v2443_v6  ;;  %v2092_v11 = vadd.f32 -0.28449672, %v2060_v17  ;;  %v1035_v2 = vadd.f32 %v1003_v25, %v934_v42  ;;  %v1609_v53 = vmul.f32 %v4738_v5, %v5020_v30 }
 0x212   : > { %v2507_v10 = vadd.f32 1.0, %v2475_v63  ;;  %v1997_v0 = vmul.f32 %v5006_v18, %v1965_v37  ;;  %v5035_v22 = vmul.f32 0.70710677, %v5025_v12  ;;  %v1439_v3 = vadd.f32 %v1407_v47, %v1337_v44  ;;  %v5051_v47 = vpop.f32.mrf.mxu1 }
 0x213   : > { %v2124_v7 = vmul.f32 %v4977_v35, %v2092_v11  ;;  %v1136_v48 = vadd.f32 %v1104_v45, %v1035_v2  ;;  %v1205_v51 = vmul.f32 %v4682_v21, %v4981_v55  ;;  %v1306_v31 = vmul.f32 %v4699_v56, %v4983_v50  ;;  %v1573_v50 = vld [vmem:[#allocation2 + $0x19a] sm:$0xff] }
 0x214   : > { %v2539_v60 = vmul.f32 %v2507_v10, %v4962_v46  ;;  %v2029_v15 = vadd.f32 1.4214138, %v1997_v0  ;;  %v1775_v1 = vand.u32 2147483647, %v5035_v22  ;;  %v1540_v4 = vadd.f32 %v1508_v32, %v1439_v3 }
 0x215   : > { %v2156_v13 = vadd.f32 0.2548296, %v2124_v7  ;;  %v1237_v61 = vadd.f32 %v1205_v51, %v1136_v48  ;;  %v1408_v40 = vmul.f32 %v4713_v36, %v1371_v52  ;;  %v3347_v57 = vpop.eup %3346  ;;  %v2313_v6 = vmul.f32 1.442695, %v2254_v38 }
 0x216   : > { %3219 = vmatprep.mubr.msk.f32.mxu1 %vm645_vm2, %v2539_v60  ;;  %v2061_v58 = vmul.f32 %v5006_v18, %v2029_v15  ;;  %v1807_v55 = vmul.f32 0.3275911, %v1775_v1  ;;  %v1641_v17 = vadd.f32 %v1609_v53, %v1540_v4  ;;  %v1509_v45 = vmul.f32 %v4722_v16, %v1472_v27  ;;  %v5067_v53 = vpop.f32.mrf.mxu1 }
 0x217   : > { %v2188_v46 = vmul.f32 %v4977_v35, %v2156_v13  ;;  %v1338_v42 = vadd.f32 %v1306_v31, %v1237_v61  ;;  %v802_v63 = vmul.f32 %v4640_v29, %v4916_v33  ;;  %v1610_v10 = vmul.f32 %v4738_v5, %v1573_v50  ;;  %v1372_v50 = vld [vmem:[#allocation2 + $0x1a0] sm:$0xff] }
 0x218   : > { %v5054_v25 = vpop.eup %3348  ;;  %v2093_v37 = vadd.f32 -0.28449672, %v2061_v58  ;;  %v1839_v44 = vadd.f32 1.0, %v1807_v55  ;;  %v5061_v2 = vadd.f32 %v4761_v19, %v1641_v17  ;;  %v903_v0 = vmul.f32 %v4647_v54, %v4924_v49  ;;  %v5081_v13 = vpop.f32.mrf.mxu1 }
 0x219   : > { %v2348_v11 = vmul.f32 %v3345_v59, %v2188_v46  ;;  %v1934_v32 = vmul.f32 1.0614054, %v5054_v25  ;;  %v1440_v35 = vadd.f32 %v1408_v40, %v1338_v42  ;;  %v1708_v52 = vmul.f32 0.5, %v4891_v20 }
 0x21a   : > { %v2125_v38 = vmul.f32 %v5006_v18, %v2093_v37  ;;  %3350 = vrcp.f32 %v1839_v44  ;;  %v5071_v59 = vmul.f32 0.70710677, %v5061_v2  ;;  %vm2412_vm15 = vcmp.ge.f32.partialorder %v4905_v26, 0.0  ;;  %v2740_v37 = vpop.f32.mrf.mxu1 }
 0x21b   : > { %v2380_v29 = vsub.f32 1.0, %v2348_v11  ;;  %v1966_v33 = vadd.f32 -1.4531521, %v1934_v32  ;;  %v1541_v3 = vadd.f32 %v1509_v45, %v1440_v35  ;;  %v935_v48 = vadd.f32 %v903_v0, %v802_v63  ;;  %v1473_v63 = vld [vmem:[#allocation2 + $0x1a1] sm:$0xff] }
 0x21c   : > { %v2157_v7 = vadd.f32 0.2548296, %v2125_v38  ;;  %3352 = vpow2.f32 %v2313_v6  ;;  %v5076_v54 = vand.u32 2147483647, %v5071_v59  ;;  %v2223_v20 = vsub.f32 0.0, %v1775_v1 }
 0x21d   : > { %v2444_v51 = vsub.f32 0.0, %v2380_v29  ;;  %v1998_v60 = vmul.f32 %v5054_v25, %v1966_v33  ;;  %v1642_v15 = vadd.f32 %v1610_v10, %v1541_v3  ;;  %v1004_v31 = vmul.f32 %v4655_v62, %v4934_v34 }
 0x21e   : > { %v2189_v49 = vmul.f32 %v5006_v18, %v2157_v7  ;;  %v1808_v61 = vmul.f32 0.3275911, %v5076_v54  ;;  %v1105_v40 = vmul.f32 %v4664_v23, %v5002_v9  ;;  %v2255_v34 = vmul.f32 %v2223_v20, %v1775_v1 }
 0x21f   : > { %v2476_v26 = vsel %vm2412_vm15, %v2380_v29, %v2444_v51  ;;  %v2030_v4 = vadd.f32 1.4214138, %v1998_v60  ;;  %v5087_v55 = vadd.f32 %v4761_v19, %v1642_v15  ;;  %v1036_v18 = vadd.f32 %v1004_v31, %v935_v48 }
 0x220   : > { %v2508_v27 = vadd.f32 1.0, %v2476_v26  ;;  %v2349_v58 = vmul.f32 %v3347_v57, %v2189_v49  ;;  %v1840_v6 = vadd.f32 1.0, %v1808_v61  ;;  %v1206_v9 = vmul.f32 %v4682_v21, %v5015_v39  ;;  %v1574_v39 = vld [vmem:[#allocation2 + $0x1a2] sm:$0xff] }
 0x221   : > { %v2062_v46 = vmul.f32 %v5054_v25, %v2030_v4  ;;  %v5091_v42 = vmul.f32 0.70710677, %v5087_v55  ;;  %v1137_v23 = vadd.f32 %v1105_v40, %v1036_v18  ;;  %v1709_v57 = vmul.f32 0.5, %v4919_v8  ;;  %v5108_v8 = vld [vmem:[%s5265_s6] ss:$0 sm:$0xff] }
 0x222   : > { %v2540_v17 = vmul.f32 %v2508_v27, %v1708_v52  ;;  %v2381_v62 = vsub.f32 1.0, %v2349_v58  ;;  %3354 = vrcp.f32 %v1840_v6  ;;  %vm2413_vm0 = vcmp.ge.f32.partialorder %v4930_v28, 0.0  ;;  %v3194_v52 = vpop.f32.mrf.mxu1 }
 0x223   : > { %v2094_v44 = vadd.f32 -0.28449672, %v2062_v46  ;;  %v5099_v1 = vand.u32 2147483647, %v5091_v42  ;;  %v1238_v32 = vadd.f32 %v1206_v9, %v1137_v23  ;;  %v1307_v35 = vmul.f32 %v4699_v56, %v5020_v30 }
 0x224   : > { %3220 = vmatmul.mubr.msk.f32.gmra.mxu1 %vm645_vm2, %v2540_v17  ;;  %v2445_v45 = vsub.f32 0.0, %v2381_v62  ;;  %v1409_v21 = vmul.f32 %v4713_v36, %v1372_v50  ;;  %v2315_v38 = vmul.f32 1.442695, %v2255_v34  ;;  %v2224_v10 = vsub.f32 0.0, %v5076_v54 }
 0x225   : > { %v2126_v11 = vmul.f32 %v5054_v25, %v2094_v44  ;;  %v1809_v0 = vmul.f32 0.3275911, %v5099_v1  ;;  %v1339_v30 = vadd.f32 %v1307_v35, %v1238_v32  ;;  %v1510_v33 = vmul.f32 %v4722_v16, %v1473_v63 }
 0x226   : > { %v2477_v28 = vsel %vm2413_vm0, %v2381_v62, %v2445_v45  ;;  %v1611_v48 = vmul.f32 %v4738_v5, %v1574_v39  ;;  %v2726_v51 = vadd.f32 %v5017_v41, %v5108_v8  ;;  %v2721_v15 = vadd.f32 %v5108_v8, %v5039_v43  ;;  %v2750_v5 = vpop.f32.mrf.mxu1 }
 0x227   : > { %v5112_v29 = vpop.eup %3350  ;;  %v2509_v56 = vadd.f32 1.0, %v2477_v28  ;;  %v2158_v36 = vadd.f32 0.2548296, %v2126_v11  ;;  %v1841_v3 = vadd.f32 1.0, %v1809_v0  ;;  %v1441_v20 = vadd.f32 %v1409_v21, %v1339_v30 }
 0x228   : > { %v1935_v7 = vmul.f32 1.0614054, %v5112_v29  ;;  %2880 = vst.msk [vmem:[%s5119_s23 + $0x8] sm:$0xff] %vm319_vm1, %v2726_v51  ;;  %v2736_v16 = vadd.f32 %v5051_v47, %v5108_v8  ;;  %2879 = vst.msk [vmem:[%s5119_s23] sm:$0xff] %vm319_vm1, %v2721_v15  ;;  %v2731_v43 = vadd.f32 %v5108_v8, %v5067_v53  ;;  %v2746_v4 = vadd.f32 %v5081_v13, %v5108_v8 }
 0x229   : > { %v2541_v60 = vmul.f32 %v2509_v56, %v1709_v57  ;;  %v2190_v49 = vmul.f32 %v5054_v25, %v2158_v36  ;;  %v3353_v31 = vpop.eup %3352  ;;  %3356 = vrcp.f32 %v1841_v3  ;;  %v1542_v25 = vadd.f32 %v1510_v33, %v1441_v20 }
 0x22a   : > { %v1967_v26 = vadd.f32 -1.4531521, %v1935_v7  ;;  %3358 = vpow2.f32 %v2315_v38  ;;  %2882 = vst.msk [vmem:[%s5119_s23 + $0x18] sm:$0xff] %vm319_vm1, %v2736_v16  ;;  %v2741_v47 = vadd.f32 %v5108_v8, %v2740_v37  ;;  %v2756_v40 = vadd.f32 %v3194_v52, %v5108_v8  ;;  %2881 = vst.msk [vmem:[%s5119_s23 + $0x10] sm:$0xff] %vm319_vm1, %v2731_v43 }
 0x22b   : > { %3222 = vmatprep.mubr.msk.f32.mxu1 %vm645_vm2, %v2541_v60  ;;  %v2350_v41 = vmul.f32 %v3353_v31, %v2190_v49  ;;  %v2256_v58 = vmul.f32 %v2224_v10, %v5076_v54  ;;  %v1643_v18 = vadd.f32 %v1611_v48, %v1542_v25  ;;  %2884 = vst.msk [vmem:[%s5119_s23 + $0x28] sm:$0xff] %vm319_vm1, %v2746_v4  ;;  %vm2414_vm3 = vcmp.ge.f32.partialorder %v4965_v24, 0.0 }
 0x22c   : > { %v1999_v61 = vmul.f32 %v5112_v29, %v1967_v26  ;;  %v2751_v53 = vadd.f32 %v5108_v8, %v2750_v5  ;;  %2883 = vst.msk [vmem:[%s5119_s23 + $0x20] sm:$0xff] %vm319_vm1, %v2741_v47  ;;  %2886 = vst.msk [vmem:[%s5119_s23 + $0x38] sm:$0xff] %vm319_vm1, %v2756_v40  ;;  %v2225_v62 = vsub.f32 0.0, %v5099_v1  ;;  %vm2415_vm4 = vcmp.ge.f32.partialorder %v5035_v22, 0.0 }
 0x22d   : > { %v2382_v27 = vsub.f32 1.0, %v2350_v41  ;;  %v5156_v6 = vadd.f32 %v4761_v19, %v1643_v18  ;;  %v2317_v37 = vmul.f32 1.442695, %v2256_v58  ;;  %v1710_v19 = vmul.f32 0.5, %v4956_v14 }
 0x22e   : > { %v2031_v13 = vadd.f32 1.4214138, %v1999_v61  ;;  %2885 = vst.msk [vmem:[%s5119_s23 + $0x30] sm:$0xff] %vm319_vm1, %v2751_v53  ;;  %v2257_v21 = vmul.f32 %v2225_v62, %v5099_v1  ;;  %v1711_v5 = vmul.f32 0.5, %v5025_v12  ;;  %vm2416_vm5 = vcmp.ge.f32.partialorder %v5071_v59, 0.0 }
 0x22f   : > { %v2446_v46 = vsub.f32 0.0, %v2382_v27  ;;  %v3355_v17 = vpop.eup %3354  ;;  %v5164_v44 = vmul.f32 0.70710677, %v5156_v6  ;;  %3360 = vpow2.f32 %v2317_v37  ;;  %v1712_v37 = vmul.f32 0.5, %v5061_v2 }
 0x230   : > { %v2063_v54 = vmul.f32 %v5112_v29, %v2031_v13  ;;  %v1936_v50 = vmul.f32 1.0614054, %v3355_v17  ;;  %v2319_v30 = vmul.f32 1.442695, %v2257_v21  ;;  %vm2417_vm6 = vcmp.ge.f32.partialorder %v5091_v42, 0.0 }
 0x231   : > { %v2478_v34 = vsel %vm2414_vm3, %v2382_v27, %v2446_v46  ;;  %v3197_v23 = vpop.f32.mrf.mxu1  ;;  %v1778_v63 = vand.u32 2147483647, %v5164_v44  ;;  %vm2418_vm7 = vcmp.ge.f32.partialorder %v5164_v44, 0.0 }
 0x232   : > { %v2510_v9 = vadd.f32 1.0, %v2478_v34  ;;  %v2095_v57 = vadd.f32 -0.28449672, %v2063_v54  ;;  %v2766_v45 = vadd.f32 %v3197_v23, %v5108_v8  ;;  %v1968_v24 = vadd.f32 -1.4531521, %v1936_v50 }
 0x233   : > { %v2760_v11 = vpop.f32.mrf.mxu1  ;;  %v1810_v14 = vmul.f32 0.3275911, %v1778_v63  ;;  %v2226_v26 = vsub.f32 0.0, %v1778_v63 }
 0x234   : > { %v2542_v32 = vmul.f32 %v2510_v9, %v1710_v19  ;;  %v2127_v35 = vmul.f32 %v5112_v29, %v2095_v57  ;;  %2888 = vst.msk [vmem:[%s5119_s23 + $0x48] sm:$0xff] %vm319_vm1, %v2766_v45  ;;  %v2761_v39 = vadd.f32 %v5108_v8, %v2760_v11  ;;  %v2000_v28 = vmul.f32 %v3355_v17, %v1968_v24 }
 0x235   : > { %v1842_v52 = vadd.f32 1.0, %v1810_v14  ;;  %v2258_v40 = vmul.f32 %v2226_v26, %v1778_v63 }
 0x236   : > { %3223 = vmatmul.mubr.msk.f32.gmra.mxu1 %vm645_vm2, %v2542_v32  ;;  %v2159_v38 = vadd.f32 0.2548296, %v2127_v35  ;;  %2887 = vst.msk [vmem:[%s5119_s23 + $0x40] sm:$0xff] %vm319_vm1, %v2761_v39  ;;  %v3357_v10 = vpop.eup %3356  ;;  %v2032_v0 = vadd.f32 1.4214138, %v2000_v28  ;;  %v1713_v35 = vmul.f32 0.5, %v5087_v55 }
 0x237   : > { %v1937_v36 = vmul.f32 1.0614054, %v3357_v10  ;;  %v3359_v1 = vpop.eup %3358  ;;  %3362 = vrcp.f32 %v1842_v52  ;;  %v2321_v46 = vmul.f32 1.442695, %v2258_v40 }
 0x238   : > { %v2191_v56 = vmul.f32 %v5112_v29, %v2159_v38  ;;  %v2064_v33 = vmul.f32 %v3355_v17, %v2032_v0  ;;  %3364 = vpow2.f32 %v2319_v30 }
 0x239   : > { %v1969_v3 = vadd.f32 -1.4531521, %v1937_v36  ;;  %3366 = vpow2.f32 %v2321_v46 }
 0x23a   : > { %v2351_v7 = vmul.f32 %v3359_v1, %v2191_v56  ;;  %v2096_v48 = vadd.f32 -0.28449672, %v2064_v33 }
 0x23b   : > { %v2001_v60 = vmul.f32 %v3357_v10, %v1969_v3 }
 0x23c   : > { %v2383_v51 = vsub.f32 1.0, %v2351_v7  ;;  %v2128_v49 = vmul.f32 %v3355_v17, %v2096_v48  ;;  %v3361_v43 = vpop.eup %3360  ;;  %v1714_v7 = vmul.f32 0.5, %v5156_v6 }
 0x23d   : > { %v2033_v15 = vadd.f32 1.4214138, %v2001_v60 }
 0x23e   : > { %v2447_v20 = vsub.f32 0.0, %v2383_v51  ;;  %v2160_v31 = vadd.f32 0.2548296, %v2128_v49 }
 0x23f   : > { %v2065_v29 = vmul.f32 %v3357_v10, %v2033_v15 }
 0x240   : > { %v2479_v16 = vsel %vm2415_vm4, %v2383_v51, %v2447_v20  ;;  %v2192_v25 = vmul.f32 %v3355_v17, %v2160_v31 }
 0x241   : > { %v2511_v41 = vadd.f32 1.0, %v2479_v16  ;;  %v2097_v4 = vadd.f32 -0.28449672, %v2065_v29 }
 0x242   : > { %v2352_v47 = vmul.f32 %v3361_v43, %v2192_v25 }
 0x243   : > { %v2543_v61 = vmul.f32 %v2511_v41, %v1711_v5  ;;  %v2129_v27 = vmul.f32 %v3357_v10, %v2097_v4 }
 0x244   : > { %v2384_v58 = vsub.f32 1.0, %v2352_v47  ;;  %v3363_v18 = vpop.eup %3362 }
 0x245   : > { %3225 = vmatprep.mubr.msk.f32.mxu1 %vm645_vm2, %v2543_v61  ;;  %v2161_v53 = vadd.f32 0.2548296, %v2129_v27  ;;  %v1938_v13 = vmul.f32 1.0614054, %v3363_v18  ;;  %v3365_v17 = vpop.eup %3364 }
 0x246   : > { %v2448_v22 = vsub.f32 0.0, %v2384_v58  ;;  %v3367_v0 = vpop.eup %3366 }
 0x247   : > { %v2193_v12 = vmul.f32 %v3357_v10, %v2161_v53  ;;  %v1970_v34 = vadd.f32 -1.4531521, %v1938_v13 }
 0x248   : > { %v3200_v54 = vpop.f32.mrf.mxu1  ;;  %v2480_v62 = vsel %vm2416_vm5, %v2384_v58, %v2448_v22 }
 0x249   : > { %v2776_v50 = vadd.f32 %v3200_v54, %v5108_v8  ;;  %v2512_v23 = vadd.f32 1.0, %v2480_v62  ;;  %v2353_v19 = vmul.f32 %v3365_v17, %v2193_v12  ;;  %v2002_v57 = vmul.f32 %v3363_v18, %v1970_v34 }
 0x24a   : > { %v2770_v9 = vpop.f32.mrf.mxu1 }
 0x24b   : > { %2890 = vst.msk [vmem:[%s5119_s23 + $0x58] sm:$0xff] %vm319_vm1, %v2776_v50  ;;  %v2771_v45 = vadd.f32 %v5108_v8, %v2770_v9  ;;  %v2544_v59 = vmul.f32 %v2512_v23, %v1712_v37  ;;  %v2385_v24 = vsub.f32 1.0, %v2353_v19  ;;  %v2034_v63 = vadd.f32 1.4214138, %v2002_v57 }
 0x24d   : > { %2889 = vst.msk [vmem:[%s5119_s23 + $0x50] sm:$0xff] %vm319_vm1, %v2771_v45  ;;  %3226 = vmatmul.mubr.msk.f32.gmra.mxu1 %vm645_vm2, %v2544_v59  ;;  %v2449_v11 = vsub.f32 0.0, %v2385_v24  ;;  %v2066_v2 = vmul.f32 %v3363_v18, %v2034_v63 }
 0x24f   : > { %v2481_v32 = vsel %vm2417_vm6, %v2385_v24, %v2449_v11  ;;  %v2098_v39 = vadd.f32 -0.28449672, %v2066_v2 }
 0x250   : > { %v2513_v21 = vadd.f32 1.0, %v2481_v32 }
 0x251   : > { %v2130_v14 = vmul.f32 %v3363_v18, %v2098_v39 }
 0x252   : > { %v2545_v28 = vmul.f32 %v2513_v21, %v1713_v35 }
 0x253   : > { %v2162_v38 = vadd.f32 0.2548296, %v2130_v14 }
 0x254   : > { %3228 = vmatprep.mubr.msk.f32.mxu1 %vm645_vm2, %v2545_v28 }
 0x255   : > { %v2194_v10 = vmul.f32 %v3363_v18, %v2162_v38 }
 0x257   : > { %v2354_v56 = vmul.f32 %v3367_v0, %v2194_v10 }
 0x258   : > { %v3203_v52 = vpop.f32.mrf.mxu1 }
 0x259   : > { %v2786_v36 = vadd.f32 %v3203_v52, %v5108_v8  ;;  %v2386_v30 = vsub.f32 1.0, %v2354_v56 }
 0x25a   : > { %v2780_v42 = vpop.f32.mrf.mxu1 }
 0x25b   : > { %2892 = vst.msk [vmem:[%s5119_s23 + $0x68] sm:$0xff] %vm319_vm1, %v2786_v36  ;;  %v2781_v55 = vadd.f32 %v5108_v8, %v2780_v42  ;;  %v2450_v1 = vsub.f32 0.0, %v2386_v30 }
 0x25d   : > { %2891 = vst.msk [vmem:[%s5119_s23 + $0x60] sm:$0xff] %vm319_vm1, %v2781_v55  ;;  %v2482_v33 = vsel %vm2418_vm7, %v2386_v30, %v2450_v1 }
 0x25e   : > { %v2514_v3 = vadd.f32 1.0, %v2482_v33 }
 0x260   : > { %v2546_v48 = vmul.f32 %v2514_v3, %v1714_v7 }
 0x262   : > { %3229 = vmatmul.mubr.msk.f32.gmra.mxu1 %vm645_vm2, %v2546_v48 }
 0x276   : > { %v3206_v51 = vpop.f32.mrf.mxu1 }
 0x277   : > { %v2796_v60 = vadd.f32 %v3206_v51, %v5108_v8 }
 0x278   : > { %v2790_v49 = vpop.f32.mrf.mxu1 }
 0x279   : > { %2894 = vst.msk [vmem:[%s5119_s23 + $0x78] sm:$0xff] %vm319_vm1, %v2796_v60  ;;  %v2791_v20 = vadd.f32 %v5108_v8, %v2790_v49 }
 0x27b   : > { %2893 = vst.msk [vmem:[%s5119_s23 + $0x70] sm:$0xff] %vm319_vm1, %v2791_v20 }
 0x289   : > { %v3209_v44 = vpop.f32.mrf.mxu1 }
 0x28a   : > { %v2806_v6 = vadd.f32 %v3209_v44, %v5108_v8 }
 0x28b   : > { %v2800_v15 = vpop.f32.mrf.mxu1 }
 0x28c   : > { %2896 = vst.msk [vmem:[%s5119_s23 + $0x88] sm:$0xff] %vm319_vm1, %v2806_v6  ;;  %v2801_v31 = vadd.f32 %v5108_v8, %v2800_v15 }
 0x28e   : > { %2895 = vst.msk [vmem:[%s5119_s23 + $0x80] sm:$0xff] %vm319_vm1, %v2801_v31 }
 0x29f   : > { %v3212_v26 = vpop.f32.mrf.mxu1 }
 0x2a0   : > { %v2816_v16 = vadd.f32 %v3212_v26, %v5108_v8 }
 0x2a1   : > { %v2810_v29 = vpop.f32.mrf.mxu1 }
 0x2a2   : > { %2898 = vst.msk [vmem:[%s5119_s23 + $0x98] sm:$0xff] %vm319_vm1, %v2816_v16  ;;  %v2811_v5 = vadd.f32 %v5108_v8, %v2810_v29 }
 0x2a4   : > { %2897 = vst.msk [vmem:[%s5119_s23 + $0x90] sm:$0xff] %vm319_vm1, %v2811_v5 }
 0x2b5   : > { %v3215_v41 = vpop.f32.mrf.mxu1 }
 0x2b6   : > { %v2826_v25 = vadd.f32 %v3215_v41, %v5108_v8 }
 0x2b7   : > { %v2820_v43 = vpop.f32.mrf.mxu1 }
 0x2b8   : > { %2900 = vst.msk [vmem:[%s5119_s23 + $0xa8] sm:$0xff] %vm319_vm1, %v2826_v25  ;;  %v2821_v4 = vadd.f32 %v5108_v8, %v2820_v43 }
 0x2ba   : > { %2899 = vst.msk [vmem:[%s5119_s23 + $0xa0] sm:$0xff] %vm319_vm1, %v2821_v4 }
 0x2c9   : > { %v3218_v61 = vpop.f32.mrf.mxu1 }
 0x2ca   : > { %v2836_v47 = vadd.f32 %v3218_v61, %v5108_v8 }
 0x2cb   : > { %v2830_v40 = vpop.f32.mrf.mxu1 }
 0x2cc   : > { %2902 = vst.msk [vmem:[%s5119_s23 + $0xb8] sm:$0xff] %vm319_vm1, %v2836_v47  ;;  %v2831_v27 = vadd.f32 %v5108_v8, %v2830_v40 }
 0x2ce   : > { %2901 = vst.msk [vmem:[%s5119_s23 + $0xb0] sm:$0xff] %vm319_vm1, %v2831_v27 }
 0x2e4   : > { %v3221_v58 = vpop.f32.mrf.mxu1 }
 0x2e5   : > { %v2846_v18 = vadd.f32 %v3221_v58, %v5108_v8 }
 0x2e6   : > { %v2840_v53 = vpop.f32.mrf.mxu1 }
 0x2e7   : > { %2904 = vst.msk [vmem:[%s5119_s23 + $0xc8] sm:$0xff] %vm319_vm1, %v2846_v18  ;;  %v2841_v22 = vadd.f32 %v5108_v8, %v2840_v53 }
 0x2e9   : > { %2903 = vst.msk [vmem:[%s5119_s23 + $0xc0] sm:$0xff] %vm319_vm1, %v2841_v22 }
 0x2f6   : > { %v3224_v13 = vpop.f32.mrf.mxu1 }
 0x2f7   : > { %v2856_v46 = vadd.f32 %v3224_v13, %v5108_v8 }
 0x2f8   : > { %v2850_v12 = vpop.f32.mrf.mxu1 }
 0x2f9   : > { %2906 = vst.msk [vmem:[%s5119_s23 + $0xd8] sm:$0xff] %vm319_vm1, %v2856_v46  ;;  %v2851_v54 = vadd.f32 %v5108_v8, %v2850_v12 }
 0x2fb   : > { %2905 = vst.msk [vmem:[%s5119_s23 + $0xd0] sm:$0xff] %vm319_vm1, %v2851_v54 }
 0x30d   : > { %v3227_v17 = vpop.f32.mrf.mxu1 }
 0x30e   : > { %v2866_v62 = vadd.f32 %v3227_v17, %v5108_v8 }
 0x30f   : > { %v2860_v34 = vpop.f32.mrf.mxu1 }
 0x310   : > { %2908 = vst.msk [vmem:[%s5119_s23 + $0xe8] sm:$0xff] %vm319_vm1, %v2866_v62  ;;  %v2861_v50 = vadd.f32 %v5108_v8, %v2860_v34 }
 0x312   : > { %2907 = vst.msk [vmem:[%s5119_s23 + $0xe0] sm:$0xff] %vm319_vm1, %v2861_v50 }
 0x322   : > { %v3230_v37 = vpop.f32.mrf.mxu1 }
 0x323   : > { %v2876_v23 = vadd.f32 %v3230_v37, %v5108_v8 }
 0x324   : > { %v2870_v19 = vpop.f32.mrf.mxu1 }
 0x325   : > { %2910 = vst.msk [vmem:[%s5119_s23 + $0xf8] sm:$0xff] %vm319_vm1, %v2876_v23  ;;  %v2871_v9 = vadd.f32 %v5108_v8, %v2870_v19 }
 0x327   : > { %2909 = vst.msk [vmem:[%s5119_s23 + $0xf0] sm:$0xff] %vm319_vm1, %v2871_v9 }
 0x328 PF: > { %s17_s24 = sadd.s32 1, %s3394_s24  }
 0x329   : > { %p14_p4 = scmp.ge.s32.totalorder %s17_s24, 4  }
 0x32b   :  { %16 = sbr.rel (!%p14_p4) target bundleno = 1 (0x1), region = 80 }

</bundles_post_ra>
